<compile_context>
chip_gen: v5e
topology: v5e:2x2
jax: 0.10.0
libtpu: 0.0.40
codegen_flags: <defaults>
</compile_context>

<pallas_src>
import functools
import math

import jax
import jax.numpy as jnp
import numpy as np
from jax import lax
from jax.experimental import pallas as pl
from jax.experimental.pallas import tpu as pltpu

_DOT_DTYPE = jnp.bfloat16      # MXU input dtype (f32 accumulation everywhere)
_ACT_DTYPE = jnp.bfloat16      # inter-kernel activation storage dtype (HBM)
_LN_EPS = 1e-12                # BERT LayerNorm eps


def _default_vmem_limit():
    """~half of physical VMEM: 64 MiB on v5e/v6e (128 MiB), 32 MiB on v7x."""
    try:
        cap = pltpu.get_tpu_info().vmem_capacity_bytes
    except Exception:
        cap = 64 * 1024 * 1024
    return int(min(cap // 2, 96 * 1024 * 1024))


_VMEM_LIMIT = _default_vmem_limit()


# ----------------------------- Pallas kernels -----------------------------

def _matmul_k1_kernel(x_ref, w_ref, b_ref, o_ref, *, activation):
    """y = act(x @ w + b); whole K in one block (no accumulator scratch)."""
    y = jnp.dot(x_ref[...], w_ref[...], preferred_element_type=jnp.float32)
    y = y + b_ref[...].astype(jnp.float32)
    if activation == "gelu":
        y = jax.nn.gelu(y, approximate=True)
    o_ref[...] = y.astype(o_ref.dtype)


def _matmul_kernel(x_ref, w_ref, b_ref, o_ref, acc_ref, *, activation):
    """Tiled y = act(x @ w + b); K-reduction over grid axis 2."""
    @pl.when(pl.program_id(2) == 0)
    def _():
        acc_ref[...] = jnp.zeros_like(acc_ref)

    acc_ref[...] += jnp.dot(x_ref[...], w_ref[...],
                            preferred_element_type=jnp.float32)

    @pl.when(pl.program_id(2) == pl.num_programs(2) - 1)
    def _():
        y = acc_ref[...] + b_ref[...].astype(jnp.float32)
        if activation == "gelu":
            y = jax.nn.gelu(y, approximate=True)
        o_ref[...] = y.astype(o_ref.dtype)


def _res_ln_epilogue(y, res, g, bln, o_ref):
    y = y + res.astype(jnp.float32)
    mu = jnp.mean(y, axis=-1, keepdims=True)
    var = jnp.mean((y - mu) ** 2, axis=-1, keepdims=True)
    yn = (y - mu) * lax.rsqrt(var + _LN_EPS)
    o_ref[...] = (yn * g.astype(jnp.float32)
                  + bln.astype(jnp.float32)).astype(o_ref.dtype)


def _matmul_res_ln_k1_kernel(x_ref, w_ref, b_ref, res_ref, g_ref, bln_ref, o_ref):
    """y = LayerNorm(res + x @ w + b); whole K in one block, full N in block."""
    y = jnp.dot(x_ref[...], w_ref[...], preferred_element_type=jnp.float32)
    y = y + b_ref[...].astype(jnp.float32)
    _res_ln_epilogue(y, res_ref[...], g_ref[...], bln_ref[...], o_ref)


def _matmul_res_ln_kernel(x_ref, w_ref, b_ref, res_ref, g_ref, bln_ref,
                          o_ref, acc_ref):
    """Tiled y = LayerNorm(res + x @ w + b); K-reduction over grid axis 2."""
    @pl.when(pl.program_id(2) == 0)
    def _():
        acc_ref[...] = jnp.zeros_like(acc_ref)

    acc_ref[...] += jnp.dot(x_ref[...], w_ref[...],
                            preferred_element_type=jnp.float32)

    @pl.when(pl.program_id(2) == pl.num_programs(2) - 1)
    def _():
        y = acc_ref[...] + b_ref[...].astype(jnp.float32)
        _res_ln_epilogue(y, res_ref[...], g_ref[...], bln_ref[...], o_ref)


def _embed_ln_kernel(word_ref, pt_ref, g_ref, b_ref, o_ref):
    """Fused (word + pos + type) add + LayerNorm for one batch element."""
    x = word_ref[...].astype(jnp.float32) + pt_ref[...].astype(jnp.float32)
    mu = jnp.mean(x, axis=-1, keepdims=True)
    var = jnp.mean((x - mu) ** 2, axis=-1, keepdims=True)
    y = (x - mu) * lax.rsqrt(var + _LN_EPS)
    o_ref[...] = (y * g_ref[...] + b_ref[...]).astype(o_ref.dtype)


def _attention_kernel(qkv_ref, o_ref, *, num_heads, head_dim):
    """One batch element per grid step; qkv_ref: [S, 3H] bf16, o_ref: [S, H]."""
    H = num_heads * head_dim
    scale = 1.0 / math.sqrt(head_dim)
    ctxs = []
    for h in range(num_heads):                      # static unrolled head loop
        lo = h * head_dim
        q = qkv_ref[:, lo:lo + head_dim]            # bf16 (stored bf16 in HBM)
        k = qkv_ref[:, H + lo:H + lo + head_dim]
        v = qkv_ref[:, 2 * H + lo:2 * H + lo + head_dim]
        # q @ k^T without materializing a transpose (NT dot_general), bf16 MXU.
        s = lax.dot_general(q, k, (((1,), (1,)), ((), ())),
                            preferred_element_type=jnp.float32) * scale
        s = s - jnp.max(s, axis=-1, keepdims=True)
        p = jnp.exp(s)
        p = p / jnp.sum(p, axis=-1, keepdims=True)
        ctxs.append(jnp.dot(p.astype(_DOT_DTYPE), v,
                            preferred_element_type=jnp.float32))
    # Single lane-dense [S, H] store (no per-head narrow masked stores).
    o_ref[...] = jnp.concatenate(ctxs, axis=-1).astype(o_ref.dtype)


def _lstm_dir_kernel(gx_ref, whh_ref, o_ref, *, hidden, reverse):
    """One LSTM direction (reverse is a static Python flag).

    gx_ref: [B, S, 4H]  precomputed x@Wih + b (input projection hoisted out)
    whh_ref: [H, 4H]    recurrent weights (bf16)
    o_ref:  [B, S, H]   hidden states written at their natural time index.
    """
    B, S, _ = gx_ref.shape
    Hl = hidden
    whh = whh_ref[...]                               # hoisted out of the loop

    def step(i, carry):
        h, c = carry
        t = (S - 1) - i if reverse else i
        gx_t = gx_ref[:, pl.ds(t, 1), :][:, 0, :].astype(jnp.float32)   # [B,4H]
        gates = gx_t + jnp.dot(h.astype(_DOT_DTYPE), whh,
                               preferred_element_type=jnp.float32)
        ig = jax.nn.sigmoid(gates[:, 0 * Hl:1 * Hl])
        fg = jax.nn.sigmoid(gates[:, 1 * Hl:2 * Hl])
        gg = jnp.tanh(gates[:, 2 * Hl:3 * Hl])
        og = jax.nn.sigmoid(gates[:, 3 * Hl:4 * Hl])
        c_new = fg * c + ig * gg
        h_new = og * jnp.tanh(c_new)
        o_ref[:, pl.ds(t, 1), :] = h_new[:, None, :].astype(o_ref.dtype)
        return h_new, c_new

    h0 = jnp.zeros((B, Hl), jnp.float32)
    c0 = jnp.zeros((B, Hl), jnp.float32)
    # TODO(synk): pad lstm_hidden (and the 4*Hl gate layout) to a multiple of
    #             128 for lane-dense gate slices / hidden-state stores at prod.
    unroll = True if S <= 32 else 8
    lax.fori_loop(0, S, step, (h0, c0), unroll=unroll)


# ----------------------------- Pallas wrappers -----------------------------

def _pick_tile(dim, pref, align):
    """Largest tile <= pref that divides dim (multiple of align), else full dim."""
    if dim <= pref:
        return dim
    t = (pref // align) * align
    while t >= align:
        if dim % t == 0:
            return t
        t -= align
    return dim


def linear_pallas(x2d, w, b, *, activation=None, residual=None,
                  ln_gamma=None, ln_beta=None, out_dtype=None,
                  tm=1024, tn=512, tk=1024):
    """Tiled y = x @ w + b with optional fused GELU or residual+LayerNorm.

    Weights are expected pre-cast to bf16; activations in/out are bf16
    (f32 accumulation inside).  When K fits in one block a scratch-free
    single-K kernel with a 2-D parallel grid is used.
    """
    M, K = x2d.shape
    N = w.shape[1]
    out_dtype = _ACT_DTYPE if out_dtype is None else out_dtype
    fuse_ln = ln_gamma is not None

    w = w.astype(_DOT_DTYPE)                     # no-op when already bf16
    b2 = b.reshape(1, N).astype(jnp.float32)

    tm_e = _pick_tile(M, tm, 8)
    tn_e = N if fuse_ln else _pick_tile(N, tn, 128)   # LN needs full N in-block
    tk_e = _pick_tile(K, tk, 128)
    kb = K // tk_e

    if kb == 1:
        grid = (M // tm_e, N // tn_e)
        x_spec = pl.BlockSpec((tm_e, K), lambda i, j: (i, 0))
        w_spec = pl.BlockSpec((K, tn_e), lambda i, j: (0, j))
        v_spec = pl.BlockSpec((1, tn_e), lambda i, j: (0, j))
        o_spec = pl.BlockSpec((tm_e, tn_e), lambda i, j: (i, j))
        r_spec = pl.BlockSpec((tm_e, tn_e), lambda i, j: (i, j))
        dims = ("parallel", "parallel")
        scratch = []
        if fuse_ln:
            kernel = _matmul_res_ln_k1_kernel
        else:
            kernel = functools.partial(_matmul_k1_kernel, activation=activation)
    else:
        grid = (M // tm_e, N // tn_e, kb)
        x_spec = pl.BlockSpec((tm_e, tk_e), lambda i, j, k: (i, k))
        w_spec = pl.BlockSpec((tk_e, tn_e), lambda i, j, k: (k, j))
        v_spec = pl.BlockSpec((1, tn_e), lambda i, j, k: (0, j))
        o_spec = pl.BlockSpec((tm_e, tn_e), lambda i, j, k: (i, j))
        r_spec = pl.BlockSpec((tm_e, tn_e), lambda i, j, k: (i, j))
        dims = ("parallel", "parallel", "arbitrary")
        scratch = [pltpu.VMEM((tm_e, tn_e), jnp.float32)]
        if fuse_ln:
            kernel = _matmul_res_ln_kernel
        else:
            kernel = functools.partial(_matmul_kernel, activation=activation)

    cp = pltpu.CompilerParams(dimension_semantics=dims,
                              vmem_limit_bytes=_VMEM_LIMIT)

    if fuse_ln:
        return pl.pallas_call(
            kernel,
            out_shape=jax.ShapeDtypeStruct((M, N), out_dtype),
            grid=grid,
            in_specs=[x_spec, w_spec, v_spec, r_spec, v_spec, v_spec],
            out_specs=o_spec,
            scratch_shapes=scratch,
            compiler_params=cp,
        )(x2d, w, b2, residual,
          ln_gamma.reshape(1, N).astype(jnp.float32),
          ln_beta.reshape(1, N).astype(jnp.float32))

    return pl.pallas_call(
        kernel,
        out_shape=jax.ShapeDtypeStruct((M, N), out_dtype),
        grid=grid,
        in_specs=[x_spec, w_spec, v_spec],
        out_specs=o_spec,
        scratch_shapes=scratch,
        compiler_params=cp,
    )(x2d, w, b2)


def embed_layernorm_pallas(word_bsd, pos_type_sd, gamma, beta):
    """Fused embedding add + LayerNorm.  word: [B,S,H] f32, pos_type: [S,H] f32."""
    B, S, H = word_bsd.shape
    return pl.pallas_call(
        _embed_ln_kernel,
        out_shape=jax.ShapeDtypeStruct((B, S, H), _ACT_DTYPE),
        grid=(B,),
        in_specs=[pl.BlockSpec((None, S, H), lambda b: (b, 0, 0)),
                  pl.BlockSpec((S, H), lambda b: (0, 0)),
                  pl.BlockSpec((1, H), lambda b: (0, 0)),
                  pl.BlockSpec((1, H), lambda b: (0, 0))],
        out_specs=pl.BlockSpec((None, S, H), lambda b: (b, 0, 0)),
        compiler_params=pltpu.CompilerParams(
            dimension_semantics=("parallel",), vmem_limit_bytes=_VMEM_LIMIT),
    )(word_bsd, pos_type_sd, gamma.reshape(1, H).astype(jnp.float32),
      beta.reshape(1, H).astype(jnp.float32))


def attention_pallas(qkv_bs3h, num_heads, head_dim):
    """qkv_bs3h: [B, S, 3H] (fused QKV projection output, bf16) -> [B, S, H]."""
    B, S, H3 = qkv_bs3h.shape
    H = num_heads * head_dim
    # TODO(synk): add a second (head-group) parallel grid axis so both v7x
    #             TensorCores stay busy when B is small.
    return pl.pallas_call(
        functools.partial(_attention_kernel, num_heads=num_heads,
                          head_dim=head_dim),
        out_shape=jax.ShapeDtypeStruct((B, S, H), _ACT_DTYPE),
        grid=(B,),
        in_specs=[pl.BlockSpec((None, S, H3), lambda b: (b, 0, 0))],
        out_specs=pl.BlockSpec((None, S, H), lambda b: (b, 0, 0)),
        compiler_params=pltpu.CompilerParams(
            dimension_semantics=("parallel",), vmem_limit_bytes=_VMEM_LIMIT),
    )(qkv_bs3h)


def bilstm_layer_pallas(h_in, wih, b, whh, hidden):
    """One bidirectional LSTM layer.  h_in: [B,S,D] bf16 -> [B,S,2*hidden] bf16.

    wih: [2, D, 4H] bf16, b: [2, 4H] f32, whh: [2, H, 4H] bf16.
    """
    B, S, D = h_in.shape
    Hl = hidden
    x2d = h_in.reshape(B * S, D)
    outs = []
    for d, rev in ((0, False), (1, True)):
        # Hoisted input projection for this direction (one tiled matmul).
        gx = linear_pallas(x2d, wih[d], b[d]).reshape(B, S, 4 * Hl)   # bf16
        out_d = pl.pallas_call(
            functools.partial(_lstm_dir_kernel, hidden=Hl, reverse=rev),
            out_shape=jax.ShapeDtypeStruct((B, S, Hl), _ACT_DTYPE),
            grid=(1,),
            in_specs=[pl.BlockSpec((B, S, 4 * Hl), lambda i: (0, 0, 0)),
                      pl.BlockSpec((Hl, 4 * Hl), lambda i: (0, 0))],
            out_specs=pl.BlockSpec((B, S, Hl), lambda i: (0, 0, 0)),
            compiler_params=pltpu.CompilerParams(
                vmem_limit_bytes=_VMEM_LIMIT),
        )(gx, whh[d])
        outs.append(out_d)
    # TODO(synk): on v7x the two directions could share one call with a
    #             parallel grid=(2,) to use both TensorCores; kept as two
    #             calls here to avoid the HBM transposes entirely.
    return jnp.concatenate(outs, axis=-1)            # == concat([fwd, bwd], -1)


# ----------------------------- model (glue + kernels) -----------------------------

def init_params(key, cfg):
    H, I = cfg["bert_hidden"], cfg["intermediate"]
    Hl, C = cfg["lstm_hidden"], cfg["n_classes"]

    keys = iter(jax.random.split(key, 256))

    def w_init(shape):   # matmul weights stored bf16 (halves weight HBM traffic)
        return (jax.random.normal(next(keys), shape, jnp.float32)
                * 0.02).astype(_DOT_DTYPE)

    def f_init(shape):   # biases / LN params / embeddings stay f32
        return jax.random.normal(next(keys), shape, jnp.float32) * 0.02

    p = {
        "word_emb": f_init((cfg["vocab"], H)),
        "pos_emb": f_init((cfg["max_pos"], H)),
        "type_emb": f_init((2, H)),
        "emb_ln_g": jnp.ones((H,), jnp.float32),
        "emb_ln_b": f_init((H,)),
    }
    layers = []
    for _ in range(cfg["num_bert_layers"]):
        layers.append(dict(
            wqkv=w_init((H, 3 * H)), bqkv=f_init((3 * H,)),
            wo=w_init((H, H)), bo=f_init((H,)),
            ln1_g=jnp.ones((H,), jnp.float32), ln1_b=f_init((H,)),
            w1=w_init((H, I)), b1=f_init((I,)),
            w2=w_init((I, H)), b2=f_init((H,)),
            ln2_g=jnp.ones((H,), jnp.float32), ln2_b=f_init((H,)),
        ))
    p["bert_layers"] = layers

    lstm_layers = []
    din = H
    for _ in range(cfg["num_layers"]):
        lstm_layers.append(dict(
            wih=w_init((2, din, 4 * Hl)),       # per-direction input projection
            b=f_init((2, 4 * Hl)),              # == torch b_ih + b_hh (summed)
            whh=w_init((2, Hl, 4 * Hl)),
        ))
        din = 2 * Hl
    p["lstm_layers"] = lstm_layers

    p["wf"] = w_init((2 * Hl, C))
    p["bf"] = f_init((C,))
    return p


def ner_forward(params, input_ids, cfg):
    """Inference path of NerModel.forward (target=None, use_crf=False)."""
    B, S = input_ids.shape
    H, nh = cfg["bert_hidden"], cfg["num_heads"]
    dh = H // nh
    Hl, C = cfg["lstm_hidden"], cfg["n_classes"]

    # --- BERT embeddings: gather (XLA glue) + fused add+LayerNorm kernel ---
    word = params["word_emb"][input_ids]                          # [B, S, H] f32
    pos_type = params["pos_emb"][:S] + params["type_emb"][0]      # [S, H] f32
    x2 = embed_layernorm_pallas(word, pos_type, params["emb_ln_g"],
                                params["emb_ln_b"]).reshape(B * S, H)   # bf16

    # --- BERT encoder layers (5 pallas_calls / layer) ---
    for lyr in params["bert_layers"]:
        qkv = linear_pallas(x2, lyr["wqkv"], lyr["bqkv"])             # fused QKV
        ctx = attention_pallas(qkv.reshape(B, S, 3 * H), nh, dh)      # [B,S,H]
        x2 = linear_pallas(ctx.reshape(B * S, H), lyr["wo"], lyr["bo"],
                           residual=x2, ln_gamma=lyr["ln1_g"],
                           ln_beta=lyr["ln1_b"])
        ff = linear_pallas(x2, lyr["w1"], lyr["b1"], activation="gelu")
        x2 = linear_pallas(ff, lyr["w2"], lyr["b2"],
                           residual=x2, ln_gamma=lyr["ln2_g"],
                           ln_beta=lyr["ln2_b"])

    # --- stacked bidirectional LSTM (batch_first) ---
    h_in = x2.reshape(B, S, H)
    for layer in params["lstm_layers"]:
        h_in = bilstm_layer_pallas(h_in, layer["wih"], layer["b"],
                                   layer["whh"], Hl)

    # --- final classifier: lane-dense padded output, sliced back to C ---
    CP = ((C + 127) // 128) * 128
    wf_p = jnp.pad(params["wf"], ((0, 0), (0, CP - C)))
    bf_p = jnp.pad(params["bf"], (0, CP - C))
    logits = linear_pallas(h_in.reshape(B * S, 2 * Hl), wf_p, bf_p,
                           out_dtype=jnp.float32)[:, :C]
    return logits.reshape(B, S, C)


# ----------------------------- pure-JAX reference -----------------------------

def _ln_ref(x, g, b):
    mu = jnp.mean(x, -1, keepdims=True)
    var = jnp.mean((x - mu) ** 2, -1, keepdims=True)
    return (x - mu) * lax.rsqrt(var + _LN_EPS) * g + b


def _bilstm_ref(x_bsd, wih, b, whh, Hl):
    B, S, D = x_bsd.shape
    f32, bf16 = jnp.float32, jnp.bfloat16
    x2d = x_bsd.reshape(B * S, D)
    outs = []
    for d, rev in ((0, False), (1, True)):
        gx = (jnp.dot(x2d, wih[d], preferred_element_type=f32)
              + b[d]).astype(bf16).reshape(B, S, 4 * Hl)
        h = jnp.zeros((B, Hl), f32)
        c = jnp.zeros((B, Hl), f32)
        order = range(S - 1, -1, -1) if rev else range(S)
        hs = [None] * S
        for t in order:
            gates = gx[:, t].astype(f32) + jnp.dot(
                h.astype(bf16), whh[d], preferred_element_type=f32)
            ig = jax.nn.sigmoid(gates[:, :Hl])
            fg = jax.nn.sigmoid(gates[:, Hl:2 * Hl])
            gg = jnp.tanh(gates[:, 2 * Hl:3 * Hl])
            og = jax.nn.sigmoid(gates[:, 3 * Hl:])
            c = fg * c + ig * gg
            h = og * jnp.tanh(c)
            hs[t] = h.astype(bf16)
        outs.append(jnp.stack(hs, axis=1))
    return jnp.concatenate(outs, axis=-1)


def ner_forward_ref(params, input_ids, cfg):
    """Pure-JAX reference mirroring the kernel's bf16 storage points."""
    B, S = input_ids.shape
    H, nh = cfg["bert_hidden"], cfg["num_heads"]
    dh = H // nh
    Hl, C = cfg["lstm_hidden"], cfg["n_classes"]
    f32, bf16 = jnp.float32, jnp.bfloat16

    word = params["word_emb"][input_ids]
    pos_type = params["pos_emb"][:S] + params["type_emb"][0]
    x = _ln_ref(word + pos_type[None], params["emb_ln_g"], params["emb_ln_b"])
    x2 = x.astype(bf16).reshape(B * S, H)

    for lyr in params["bert_layers"]:
        qkv = (jnp.dot(x2, lyr["wqkv"], preferred_element_type=f32)
               + lyr["bqkv"]).astype(bf16).reshape(B, S, 3 * H)
        q, k, v = qkv[..., :H], qkv[..., H:2 * H], qkv[..., 2 * H:]

        def sh(t):
            return t.reshape(B, S, nh, dh).transpose(0, 2, 1, 3)

        qh, kh, vh = sh(q), sh(k), sh(v)
        s = jnp.einsum("bhqd,bhkd->bhqk", qh, kh,
                       preferred_element_type=f32) / math.sqrt(dh)
        s = s - jnp.max(s, axis=-1, keepdims=True)
        p = jnp.exp(s)
        p = p / jnp.sum(p, axis=-1, keepdims=True)
        ctx = jnp.einsum("bhqk,bhkd->bhqd", p.astype(bf16), vh,
                         preferred_element_type=f32)
        ctx = ctx.transpose(0, 2, 1, 3).reshape(B * S, H).astype(bf16)

        x2 = _ln_ref(jnp.dot(ctx, lyr["wo"], preferred_element_type=f32)
                     + lyr["bo"] + x2.astype(f32),
                     lyr["ln1_g"], lyr["ln1_b"]).astype(bf16)
        ff = jax.nn.gelu(jnp.dot(x2, lyr["w1"], preferred_element_type=f32)
                         + lyr["b1"], approximate=True).astype(bf16)
        x2 = _ln_ref(jnp.dot(ff, lyr["w2"], preferred_element_type=f32)
                     + lyr["b2"] + x2.astype(f32),
                     lyr["ln2_g"], lyr["ln2_b"]).astype(bf16)

    h_in = x2.reshape(B, S, H)
    for layer in params["lstm_layers"]:
        h_in = _bilstm_ref(h_in, layer["wih"], layer["b"], layer["whh"], Hl)

    logits = (jnp.dot(h_in.reshape(B * S, 2 * Hl), params["wf"],
                      preferred_element_type=f32) + params["bf"])
    return logits.reshape(B, S, C)


# ----------------------------- main -----------------------------

if __name__ == "__main__":
    cfg = dict(
        vocab=30, max_pos=32,
        bert_hidden=32, num_heads=2, intermediate=64, num_bert_layers=1,
        lstm_hidden=16, num_layers=1,       # config['num_layers'] (BiLSTM layers)
        n_classes=5, use_crf=False,
    )
    key = jax.random.PRNGKey(0)
    kp, kx = jax.random.split(key)
    params = init_params(kp, cfg)
    input_ids = jax.random.randint(kx, (2, 8), 0, cfg["vocab"])   # [B, S] ids

    fwd = jax.jit(functools.partial(ner_forward, cfg=cfg))
    out = jax.block_until_ready(fwd(params, input_ids))

    ref = ner_forward_ref(params, input_ids, cfg)
    np.testing.assert_allclose(np.asarray(out), np.asarray(ref),
                               rtol=1e-2, atol=1e-2)
    assert out.shape == (2, 8, cfg["n_classes"])
    print("KERNEL_OK")
</pallas_src>

<mosaic_0001>
module attributes {stable_mosaic.version = 11 : i64} {
  func.func @_matmul_k1_kernel(%arg0: i32, %arg1: i32, %arg2: memref<16x32xbf16, #tpu.memory_space<vmem>>, %arg3: memref<32x96xbf16, #tpu.memory_space<vmem>>, %arg4: memref<1x96xf32, #tpu.memory_space<vmem>>, %arg5: memref<16x96xbf16, #tpu.memory_space<vmem>>) attributes {dimension_semantics = [#tpu.dimension_semantics<parallel>, #tpu.dimension_semantics<parallel>], iteration_bounds = array<i64: 1, 1>, scalar_prefetch = 0 : i64, scratch_operands = 0 : i64, tpu.core_type = #tpu.core_type<tc>, window_params = [{transform_indices = @transform_0, window_bounds = array<i64: 16, 32>}, {transform_indices = @transform_1, window_bounds = array<i64: 32, 96>}, {transform_indices = @transform_2, window_bounds = array<i64: 1, 96>}, {transform_indices = @transform_3, window_bounds = array<i64: 16, 96>}]} {
    %c0 = arith.constant 0 : index
    %c0_0 = arith.constant 0 : index
    %0 = vector.load %arg2[%c0, %c0_0] : memref<16x32xbf16, #tpu.memory_space<vmem>>, vector<16x32xbf16>
    %c0_1 = arith.constant 0 : index
    %c0_2 = arith.constant 0 : index
    %1 = vector.load %arg3[%c0_1, %c0_2] : memref<32x96xbf16, #tpu.memory_space<vmem>>, vector<32x96xbf16>
    %cst = arith.constant dense<0.000000e+00> : vector<16x96xf32>
    %2 = tpu.matmul %0, %1, %cst {dimension_numbers = #tpu.dot_dimension_numbers<[1], [0], [0], [1], [0, 0, 1, 1], [], []>} : vector<16x32xbf16>, vector<32x96xbf16>, vector<16x96xf32> -> vector<16x96xf32>
    %c0_3 = arith.constant 0 : index
    %c0_4 = arith.constant 0 : index
    %3 = vector.load %arg4[%c0_3, %c0_4] : memref<1x96xf32, #tpu.memory_space<vmem>>, vector<1x96xf32>
    %4 = vector.broadcast %3 : vector<1x96xf32> to vector<16x96xf32>
    %5 = arith.addf %2, %4 : vector<16x96xf32>
    %6 = arith.truncf %5 : vector<16x96xf32> to vector<16x96xbf16>
    %c0_5 = arith.constant 0 : index
    %c0_6 = arith.constant 0 : index
    %7 = vector.load %arg5[%c0_5, %c0_6] : memref<16x96xbf16, #tpu.memory_space<vmem>>, vector<16x96xbf16>
    tpu.vector_store %arg5[%c0_5, %c0_6], %6 {strides = array<i32>} : memref<16x96xbf16, #tpu.memory_space<vmem>>, vector<16x96xbf16>,
    return
  }
  func.func @transform_0(%arg0: i32, %arg1: i32) -> (i32, i32) {
    %c0_i32 = arith.constant 0 : i32
    %c0_i32_0 = arith.constant 0 : i32
    return %arg0, %c0_i32 : i32, i32
  }
  func.func @transform_1(%arg0: i32, %arg1: i32) -> (i32, i32) {
    %c0_i32 = arith.constant 0 : i32
    %c0_i32_0 = arith.constant 0 : i32
    return %c0_i32, %arg1 : i32, i32
  }
  func.func @transform_2(%arg0: i32, %arg1: i32) -> (i32, i32) {
    %c0_i32 = arith.constant 0 : i32
    %c0_i32_0 = arith.constant 0 : i32
    return %c0_i32, %arg1 : i32, i32
  }
  func.func @transform_3(%arg0: i32, %arg1: i32) -> (i32, i32) {
    %c0_i32 = arith.constant 0 : i32
    return %arg0, %arg1 : i32, i32
  }
}

module attributes {stable_mosaic.version = 11 : i64} {
  func.func @_matmul_res_ln_k1_kernel(%arg0: i32, %arg1: i32, %arg2: memref<16x32xbf16, #tpu.memory_space<vmem>>, %arg3: memref<32x32xbf16, #tpu.memory_space<vmem>>, %arg4: memref<1x32xf32, #tpu.memory_space<vmem>>, %arg5: memref<16x32xbf16, #tpu.memory_space<vmem>>, %arg6: memref<1x32xf32, #tpu.memory_space<vmem>>, %arg7: memref<1x32xf32, #tpu.memory_space<vmem>>, %arg8: memref<16x32xbf16, #tpu.memory_space<vmem>>) attributes {dimension_semantics = [#tpu.dimension_semantics<parallel>, #tpu.dimension_semantics<parallel>], iteration_bounds = array<i64: 1, 1>, scalar_prefetch = 0 : i64, scratch_operands = 0 : i64, tpu.core_type = #tpu.core_type<tc>, window_params = [{transform_indices = @transform_0, window_bounds = array<i64: 16, 32>}, {transform_indices = @transform_1, window_bounds = array<i64: 32, 32>}, {transform_indices = @transform_2, window_bounds = array<i64: 1, 32>}, {transform_indices = @transform_3, window_bounds = array<i64: 16, 32>}, {transform_indices = @transform_4, window_bounds = array<i64: 1, 32>}, {transform_indices = @transform_5, window_bounds = array<i64: 1, 32>}, {transform_indices = @transform_6, window_bounds = array<i64: 16, 32>}]} {
    %c0 = arith.constant 0 : index
    %c0_0 = arith.constant 0 : index
    %0 = vector.load %arg2[%c0, %c0_0] : memref<16x32xbf16, #tpu.memory_space<vmem>>, vector<16x32xbf16>
    %c0_1 = arith.constant 0 : index
    %c0_2 = arith.constant 0 : index
    %1 = vector.load %arg3[%c0_1, %c0_2] : memref<32x32xbf16, #tpu.memory_space<vmem>>, vector<32x32xbf16>
    %cst = arith.constant dense<0.000000e+00> : vector<16x32xf32>
    %2 = tpu.matmul %0, %1, %cst {dimension_numbers = #tpu.dot_dimension_numbers<[1], [0], [0], [1], [0, 0, 1, 1], [], []>} : vector<16x32xbf16>, vector<32x32xbf16>, vector<16x32xf32> -> vector<16x32xf32>
    %c0_3 = arith.constant 0 : index
    %c0_4 = arith.constant 0 : index
    %3 = vector.load %arg4[%c0_3, %c0_4] : memref<1x32xf32, #tpu.memory_space<vmem>>, vector<1x32xf32>
    %4 = vector.broadcast %3 : vector<1x32xf32> to vector<16x32xf32>
    %5 = arith.addf %2, %4 : vector<16x32xf32>
    %c0_5 = arith.constant 0 : index
    %c0_6 = arith.constant 0 : index
    %6 = vector.load %arg5[%c0_5, %c0_6] : memref<16x32xbf16, #tpu.memory_space<vmem>>, vector<16x32xbf16>
    %c0_7 = arith.constant 0 : index
    %c0_8 = arith.constant 0 : index
    %7 = vector.load %arg6[%c0_7, %c0_8] : memref<1x32xf32, #tpu.memory_space<vmem>>, vector<1x32xf32>
    %c0_9 = arith.constant 0 : index
    %c0_10 = arith.constant 0 : index
    %8 = vector.load %arg7[%c0_9, %c0_10] : memref<1x32xf32, #tpu.memory_space<vmem>>, vector<1x32xf32>
    %9 = arith.extf %6 : vector<16x32xbf16> to vector<16x32xf32>
    %10 = arith.addf %5, %9 : vector<16x32xf32>
    %cst_11 = arith.constant dense<0.000000e+00> : vector<16xf32>
    %11 = vector.multi_reduction <add>, %10, %cst_11 [1] : vector<16x32xf32> to vector<16xf32>
    %12 = vector.shape_cast %11 : vector<16xf32> to vector<16x1xf32>
    %cst_12 = arith.constant 3.200000e+01 : f32
    %13 = vector.broadcast %cst_12 : f32 to vector<16x1xf32>
    %14 = arith.divf %12, %13 : vector<16x1xf32>
    %15 = vector.broadcast %14 : vector<16x1xf32> to vector<16x32xf32>
    %16 = arith.subf %10, %15 : vector<16x32xf32>
    %17 = arith.mulf %16, %16 : vector<16x32xf32>
    %cst_13 = arith.constant dense<0.000000e+00> : vector<16xf32>
    %18 = vector.multi_reduction <add>, %17, %cst_13 [1] : vector<16x32xf32> to vector<16xf32>
    %19 = vector.shape_cast %18 : vector<16xf32> to vector<16x1xf32>
    %cst_14 = arith.constant 3.200000e+01 : f32
    %20 = vector.broadcast %cst_14 : f32 to vector<16x1xf32>
    %21 = arith.divf %19, %20 : vector<16x1xf32>
    %22 = vector.broadcast %14 : vector<16x1xf32> to vector<16x32xf32>
    %23 = arith.subf %10, %22 : vector<16x32xf32>
    %cst_15 = arith.constant 9.99999996E-13 : f32
    %24 = vector.broadcast %cst_15 : f32 to vector<16x1xf32>
    %25 = arith.addf %21, %24 : vector<16x1xf32>
    %26 = math.rsqrt %25 : vector<16x1xf32>
    %27 = vector.broadcast %26 : vector<16x1xf32> to vector<16x32xf32>
    %28 = arith.mulf %23, %27 : vector<16x32xf32>
    %29 = vector.broadcast %7 : vector<1x32xf32> to vector<16x32xf32>
    %30 = arith.mulf %28, %29 : vector<16x32xf32>
    %31 = vector.broadcast %8 : vector<1x32xf32> to vector<16x32xf32>
    %32 = arith.addf %30, %31 : vector<16x32xf32>
    %33 = arith.truncf %32 : vector<16x32xf32> to vector<16x32xbf16>
    %c0_16 = arith.constant 0 : index
    %c0_17 = arith.constant 0 : index
    %34 = vector.load %arg8[%c0_16, %c0_17] : memref<16x32xbf16, #tpu.memory_space<vmem>>, vector<16x32xbf16>
    tpu.vector_store %arg8[%c0_16, %c0_17], %33 {strides = array<i32>} : memref<16x32xbf16, #tpu.memory_space<vmem>>, vector<16x32xbf16>,
    return
  }
  func.func @transform_0(%arg0: i32, %arg1: i32) -> (i32, i32) {
    %c0_i32 = arith.constant 0 : i32
    %c0_i32_0 = arith.constant 0 : i32
    return %arg0, %c0_i32 : i32, i32
  }
  func.func @transform_1(%arg0: i32, %arg1: i32) -> (i32, i32) {
    %c0_i32 = arith.constant 0 : i32
    %c0_i32_0 = arith.constant 0 : i32
    return %c0_i32, %arg1 : i32, i32
  }
  func.func @transform_2(%arg0: i32, %arg1: i32) -> (i32, i32) {
    %c0_i32 = arith.constant 0 : i32
    %c0_i32_0 = arith.constant 0 : i32
    return %c0_i32, %arg1 : i32, i32
  }
  func.func @transform_3(%arg0: i32, %arg1: i32) -> (i32, i32) {
    %c0_i32 = arith.constant 0 : i32
    return %arg0, %arg1 : i32, i32
  }
  func.func @transform_4(%arg0: i32, %arg1: i32) -> (i32, i32) {
    %c0_i32 = arith.constant 0 : i32
    %c0_i32_0 = arith.constant 0 : i32
    return %c0_i32, %arg1 : i32, i32
  }
  func.func @transform_5(%arg0: i32, %arg1: i32) -> (i32, i32) {
    %c0_i32 = arith.constant 0 : i32
    %c0_i32_0 = arith.constant 0 : i32
    return %c0_i32, %arg1 : i32, i32
  }
  func.func @transform_6(%arg0: i32, %arg1: i32) -> (i32, i32) {
    %c0_i32 = arith.constant 0 : i32
    return %arg0, %arg1 : i32, i32
  }
}

module attributes {stable_mosaic.version = 11 : i64} {
  func.func @_embed_ln_kernel(%arg0: i32, %arg1: memref<1x8x32xf32, #tpu.memory_space<vmem>>, %arg2: memref<8x32xf32, #tpu.memory_space<vmem>>, %arg3: memref<1x32xf32, #tpu.memory_space<vmem>>, %arg4: memref<1x32xf32, #tpu.memory_space<vmem>>, %arg5: memref<1x8x32xbf16, #tpu.memory_space<vmem>>) attributes {dimension_semantics = [#tpu.dimension_semantics<parallel>], iteration_bounds = array<i64: 2>, scalar_prefetch = 0 : i64, scratch_operands = 0 : i64, tpu.core_type = #tpu.core_type<tc>, window_params = [{transform_indices = @transform_0, window_bounds = array<i64: 1, 8, 32>}, {pipeline_mode = #tpu.pipeline_mode<synchronous>, transform_indices = @transform_1, window_bounds = array<i64: 8, 32>}, {pipeline_mode = #tpu.pipeline_mode<synchronous>, transform_indices = @transform_2, window_bounds = array<i64: 1, 32>}, {pipeline_mode = #tpu.pipeline_mode<synchronous>, transform_indices = @transform_3, window_bounds = array<i64: 1, 32>}, {transform_indices = @transform_4, window_bounds = array<i64: 1, 8, 32>}]} {
    %c0 = arith.constant 0 : index
    %c0_0 = arith.constant 0 : index
    %c0_1 = arith.constant 0 : index
    %0 = vector.load %arg1[%c0, %c0_0, %c0_1] : memref<1x8x32xf32, #tpu.memory_space<vmem>>, vector<1x8x32xf32>
    %1 = vector.shape_cast %0 : vector<1x8x32xf32> to vector<8x32xf32>
    %c0_2 = arith.constant 0 : index
    %c0_3 = arith.constant 0 : index
    %2 = vector.load %arg2[%c0_2, %c0_3] : memref<8x32xf32, #tpu.memory_space<vmem>>, vector<8x32xf32>
    %3 = arith.addf %1, %2 : vector<8x32xf32>
    %cst = arith.constant dense<0.000000e+00> : vector<8xf32>
    %4 = vector.multi_reduction <add>, %3, %cst [1] : vector<8x32xf32> to vector<8xf32>
    %5 = vector.shape_cast %4 : vector<8xf32> to vector<8x1xf32>
    %cst_4 = arith.constant 3.200000e+01 : f32
    %6 = vector.broadcast %cst_4 : f32 to vector<8x1xf32>
    %7 = arith.divf %5, %6 : vector<8x1xf32>
    %8 = vector.broadcast %7 : vector<8x1xf32> to vector<8x32xf32>
    %9 = arith.subf %3, %8 : vector<8x32xf32>
    %10 = arith.mulf %9, %9 : vector<8x32xf32>
    %cst_5 = arith.constant dense<0.000000e+00> : vector<8xf32>
    %11 = vector.multi_reduction <add>, %10, %cst_5 [1] : vector<8x32xf32> to vector<8xf32>
    %12 = vector.shape_cast %11 : vector<8xf32> to vector<8x1xf32>
    %cst_6 = arith.constant 3.200000e+01 : f32
    %13 = vector.broadcast %cst_6 : f32 to vector<8x1xf32>
    %14 = arith.divf %12, %13 : vector<8x1xf32>
    %15 = vector.broadcast %7 : vector<8x1xf32> to vector<8x32xf32>
    %16 = arith.subf %3, %15 : vector<8x32xf32>
    %cst_7 = arith.constant 9.99999996E-13 : f32
    %17 = vector.broadcast %cst_7 : f32 to vector<8x1xf32>
    %18 = arith.addf %14, %17 : vector<8x1xf32>
    %19 = math.rsqrt %18 : vector<8x1xf32>
    %20 = vector.broadcast %19 : vector<8x1xf32> to vector<8x32xf32>
    %21 = arith.mulf %16, %20 : vector<8x32xf32>
    %c0_8 = arith.constant 0 : index
    %c0_9 = arith.constant 0 : index
    %22 = vector.load %arg3[%c0_8, %c0_9] : memref<1x32xf32, #tpu.memory_space<vmem>>, vector<1x32xf32>
    %23 = vector.broadcast %22 : vector<1x32xf32> to vector<8x32xf32>
    %24 = arith.mulf %21, %23 : vector<8x32xf32>
    %c0_10 = arith.constant 0 : index
    %c0_11 = arith.constant 0 : index
    %25 = vector.load %arg4[%c0_10, %c0_11] : memref<1x32xf32, #tpu.memory_space<vmem>>, vector<1x32xf32>
    %26 = vector.broadcast %25 : vector<1x32xf32> to vector<8x32xf32>
    %27 = arith.addf %24, %26 : vector<8x32xf32>
    %28 = arith.truncf %27 : vector<8x32xf32> to vector<8x32xbf16>
    %c0_12 = arith.constant 0 : index
    %c0_13 = arith.constant 0 : index
    %c0_14 = arith.constant 0 : index
    %29 = vector.load %arg5[%c0_12, %c0_13, %c0_14] : memref<1x8x32xbf16, #tpu.memory_space<vmem>>, vector<1x8x32xbf16>
    %30 = vector.shape_cast %29 : vector<1x8x32xbf16> to vector<8x32xbf16>
    %31 = vector.shape_cast %28 : vector<8x32xbf16> to vector<1x8x32xbf16>
    tpu.vector_store %arg5[%c0_12, %c0_13, %c0_14], %31 {strides = array<i32>} : memref<1x8x32xbf16, #tpu.memory_space<vmem>>, vector<1x8x32xbf16>,
    return
  }
  func.func @transform_0(%arg0: i32) -> (i32, i32, i32) {
    %c0_i32 = arith.constant 0 : i32
    %c0_i32_0 = arith.constant 0 : i32
    %c0_i32_1 = arith.constant 0 : i32
    return %arg0, %c0_i32, %c0_i32_0 : i32, i32, i32
  }
  func.func @transform_1(%arg0: i32) -> (i32, i32) {
    %c0_i32 = arith.constant 0 : i32
    %c0_i32_0 = arith.constant 0 : i32
    %c0_i32_1 = arith.constant 0 : i32
    return %c0_i32, %c0_i32_0 : i32, i32
  }
  func.func @transform_2(%arg0: i32) -> (i32, i32) {
    %c0_i32 = arith.constant 0 : i32
    %c0_i32_0 = arith.constant 0 : i32
    %c0_i32_1 = arith.constant 0 : i32
    return %c0_i32, %c0_i32_0 : i32, i32
  }
  func.func @transform_3(%arg0: i32) -> (i32, i32) {
    %c0_i32 = arith.constant 0 : i32
    %c0_i32_0 = arith.constant 0 : i32
    %c0_i32_1 = arith.constant 0 : i32
    return %c0_i32, %c0_i32_0 : i32, i32
  }
  func.func @transform_4(%arg0: i32) -> (i32, i32, i32) {
    %c0_i32 = arith.constant 0 : i32
    %c0_i32_0 = arith.constant 0 : i32
    %c0_i32_1 = arith.constant 0 : i32
    return %arg0, %c0_i32, %c0_i32_0 : i32, i32, i32
  }
}

module attributes {stable_mosaic.version = 11 : i64} {
  func.func @_attention_kernel(%arg0: i32, %arg1: memref<1x8x96xbf16, #tpu.memory_space<vmem>>, %arg2: memref<1x8x32xbf16, #tpu.memory_space<vmem>>) attributes {dimension_semantics = [#tpu.dimension_semantics<parallel>], iteration_bounds = array<i64: 2>, scalar_prefetch = 0 : i64, scratch_operands = 0 : i64, tpu.core_type = #tpu.core_type<tc>, window_params = [{transform_indices = @transform_0, window_bounds = array<i64: 1, 8, 96>}, {transform_indices = @transform_1, window_bounds = array<i64: 1, 8, 32>}]} {
    %c0 = arith.constant 0 : index
    %c0_0 = arith.constant 0 : index
    %c0_1 = arith.constant 0 : index
    %0 = vector.load %arg1[%c0, %c0_0, %c0_1] : memref<1x8x96xbf16, #tpu.memory_space<vmem>>, vector<1x8x16xbf16>
    %1 = vector.shape_cast %0 : vector<1x8x16xbf16> to vector<8x16xbf16>
    %c0_2 = arith.constant 0 : index
    %c0_3 = arith.constant 0 : index
    %c32 = arith.constant 32 : index
    %2 = vector.load %arg1[%c0_2, %c0_3, %c32] : memref<1x8x96xbf16, #tpu.memory_space<vmem>>, vector<1x8x16xbf16>
    %3 = vector.shape_cast %2 : vector<1x8x16xbf16> to vector<8x16xbf16>
    %c0_4 = arith.constant 0 : index
    %c0_5 = arith.constant 0 : index
    %c64 = arith.constant 64 : index
    %4 = vector.load %arg1[%c0_4, %c0_5, %c64] : memref<1x8x96xbf16, #tpu.memory_space<vmem>>, vector<1x8x16xbf16>
    %5 = vector.shape_cast %4 : vector<1x8x16xbf16> to vector<8x16xbf16>
    %cst = arith.constant dense<0.000000e+00> : vector<8x8xf32>
    %6 = tpu.matmul %1, %3, %cst {dimension_numbers = #tpu.dot_dimension_numbers<[1], [1], [0], [0], [0, 0, 1, 0], [], []>} : vector<8x16xbf16>, vector<8x16xbf16>, vector<8x8xf32> -> vector<8x8xf32>
    %cst_6 = arith.constant 2.500000e-01 : f32
    %7 = vector.broadcast %cst_6 : f32 to vector<8x8xf32>
    %8 = arith.mulf %6, %7 : vector<8x8xf32>
    %cst_7 = arith.constant dense<0xFF800000> : vector<8xf32>
    %9 = vector.multi_reduction <maximumf>, %8, %cst_7 [1] : vector<8x8xf32> to vector<8xf32>
    %10 = vector.shape_cast %9 : vector<8xf32> to vector<8x1xf32>
    %11 = vector.broadcast %10 : vector<8x1xf32> to vector<8x8xf32>
    %12 = arith.subf %8, %11 : vector<8x8xf32>
    %13 = math.exp %12 : vector<8x8xf32>
    %cst_8 = arith.constant dense<0.000000e+00> : vector<8xf32>
    %14 = vector.multi_reduction <add>, %13, %cst_8 [1] : vector<8x8xf32> to vector<8xf32>
    %15 = vector.shape_cast %14 : vector<8xf32> to vector<8x1xf32>
    %16 = vector.broadcast %15 : vector<8x1xf32> to vector<8x8xf32>
    %17 = arith.divf %13, %16 : vector<8x8xf32>
    %18 = arith.truncf %17 : vector<8x8xf32> to vector<8x8xbf16>
    %cst_9 = arith.constant dense<0.000000e+00> : vector<8x16xf32>
    %19 = tpu.matmul %18, %5, %cst_9 {dimension_numbers = #tpu.dot_dimension_numbers<[1], [0], [0], [1], [0, 0, 1, 1], [], []>} : vector<8x8xbf16>, vector<8x16xbf16>, vector<8x16xf32> -> vector<8x16xf32>
    %c0_10 = arith.constant 0 : index
    %c0_11 = arith.constant 0 : index
    %c16 = arith.constant 16 : index
    %20 = vector.load %arg1[%c0_10, %c0_11, %c16] : memref<1x8x96xbf16, #tpu.memory_space<vmem>>, vector<1x8x16xbf16>
    %21 = vector.shape_cast %20 : vector<1x8x16xbf16> to vector<8x16xbf16>
    %c0_12 = arith.constant 0 : index
    %c0_13 = arith.constant 0 : index
    %c48 = arith.constant 48 : index
    %22 = vector.load %arg1[%c0_12, %c0_13, %c48] : memref<1x8x96xbf16, #tpu.memory_space<vmem>>, vector<1x8x16xbf16>
    %23 = vector.shape_cast %22 : vector<1x8x16xbf16> to vector<8x16xbf16>
    %c0_14 = arith.constant 0 : index
    %c0_15 = arith.constant 0 : index
    %c80 = arith.constant 80 : index
    %24 = vector.load %arg1[%c0_14, %c0_15, %c80] : memref<1x8x96xbf16, #tpu.memory_space<vmem>>, vector<1x8x16xbf16>
    %25 = vector.shape_cast %24 : vector<1x8x16xbf16> to vector<8x16xbf16>
    %cst_16 = arith.constant dense<0.000000e+00> : vector<8x8xf32>
    %26 = tpu.matmul %21, %23, %cst_16 {dimension_numbers = #tpu.dot_dimension_numbers<[1], [1], [0], [0], [0, 0, 1, 0], [], []>} : vector<8x16xbf16>, vector<8x16xbf16>, vector<8x8xf32> -> vector<8x8xf32>
    %cst_17 = arith.constant 2.500000e-01 : f32
    %27 = vector.broadcast %cst_17 : f32 to vector<8x8xf32>
    %28 = arith.mulf %26, %27 : vector<8x8xf32>
    %cst_18 = arith.constant dense<0xFF800000> : vector<8xf32>
    %29 = vector.multi_reduction <maximumf>, %28, %cst_18 [1] : vector<8x8xf32> to vector<8xf32>
    %30 = vector.shape_cast %29 : vector<8xf32> to vector<8x1xf32>
    %31 = vector.broadcast %30 : vector<8x1xf32> to vector<8x8xf32>
    %32 = arith.subf %28, %31 : vector<8x8xf32>
    %33 = math.exp %32 : vector<8x8xf32>
    %cst_19 = arith.constant dense<0.000000e+00> : vector<8xf32>
    %34 = vector.multi_reduction <add>, %33, %cst_19 [1] : vector<8x8xf32> to vector<8xf32>
    %35 = vector.shape_cast %34 : vector<8xf32> to vector<8x1xf32>
    %36 = vector.broadcast %35 : vector<8x1xf32> to vector<8x8xf32>
    %37 = arith.divf %33, %36 : vector<8x8xf32>
    %38 = arith.truncf %37 : vector<8x8xf32> to vector<8x8xbf16>
    %cst_20 = arith.constant dense<0.000000e+00> : vector<8x16xf32>
    %39 = tpu.matmul %38, %25, %cst_20 {dimension_numbers = #tpu.dot_dimension_numbers<[1], [0], [0], [1], [0, 0, 1, 1], [], []>} : vector<8x8xbf16>, vector<8x16xbf16>, vector<8x16xf32> -> vector<8x16xf32>
    %40 = tpu.concatenate %19, %39 in 1 : vector<8x16xf32>, vector<8x16xf32> -> vector<8x32xf32>
    %41 = arith.truncf %40 : vector<8x32xf32> to vector<8x32xbf16>
    %c0_21 = arith.constant 0 : index
    %c0_22 = arith.constant 0 : index
    %c0_23 = arith.constant 0 : index
    %42 = vector.load %arg2[%c0_21, %c0_22, %c0_23] : memref<1x8x32xbf16, #tpu.memory_space<vmem>>, vector<1x8x32xbf16>
    %43 = vector.shape_cast %42 : vector<1x8x32xbf16> to vector<8x32xbf16>
    %44 = vector.shape_cast %41 : vector<8x32xbf16> to vector<1x8x32xbf16>
    tpu.vector_store %arg2[%c0_21, %c0_22, %c0_23], %44 {strides = array<i32>} : memref<1x8x32xbf16, #tpu.memory_space<vmem>>, vector<1x8x32xbf16>,
    return
  }
  func.func @transform_0(%arg0: i32) -> (i32, i32, i32) {
    %c0_i32 = arith.constant 0 : i32
    %c0_i32_0 = arith.constant 0 : i32
    %c0_i32_1 = arith.constant 0 : i32
    return %arg0, %c0_i32, %c0_i32_0 : i32, i32, i32
  }
  func.func @transform_1(%arg0: i32) -> (i32, i32, i32) {
    %c0_i32 = arith.constant 0 : i32
    %c0_i32_0 = arith.constant 0 : i32
    %c0_i32_1 = arith.constant 0 : i32
    return %arg0, %c0_i32, %c0_i32_0 : i32, i32, i32
  }
}

module attributes {stable_mosaic.version = 11 : i64} {
  func.func @_matmul_k1_kernel(%arg0: i32, %arg1: i32, %arg2: memref<16x32xbf16, #tpu.memory_space<vmem>>, %arg3: memref<32x64xbf16, #tpu.memory_space<vmem>>, %arg4: memref<1x64xf32, #tpu.memory_space<vmem>>, %arg5: memref<16x64xbf16, #tpu.memory_space<vmem>>) attributes {dimension_semantics = [#tpu.dimension_semantics<parallel>, #tpu.dimension_semantics<parallel>], iteration_bounds = array<i64: 1, 1>, scalar_prefetch = 0 : i64, scratch_operands = 0 : i64, tpu.core_type = #tpu.core_type<tc>, window_params = [{transform_indices = @transform_0, window_bounds = array<i64: 16, 32>}, {transform_indices = @transform_1, window_bounds = array<i64: 32, 64>}, {transform_indices = @transform_2, window_bounds = array<i64: 1, 64>}, {transform_indices = @transform_3, window_bounds = array<i64: 16, 64>}]} {
    %c0 = arith.constant 0 : index
    %c0_0 = arith.constant 0 : index
    %0 = vector.load %arg2[%c0, %c0_0] : memref<16x32xbf16, #tpu.memory_space<vmem>>, vector<16x32xbf16>
    %c0_1 = arith.constant 0 : index
    %c0_2 = arith.constant 0 : index
    %1 = vector.load %arg3[%c0_1, %c0_2] : memref<32x64xbf16, #tpu.memory_space<vmem>>, vector<32x64xbf16>
    %cst = arith.constant dense<0.000000e+00> : vector<16x64xf32>
    %2 = tpu.matmul %0, %1, %cst {dimension_numbers = #tpu.dot_dimension_numbers<[1], [0], [0], [1], [0, 0, 1, 1], [], []>} : vector<16x32xbf16>, vector<32x64xbf16>, vector<16x64xf32> -> vector<16x64xf32>
    %c0_3 = arith.constant 0 : index
    %c0_4 = arith.constant 0 : index
    %3 = vector.load %arg4[%c0_3, %c0_4] : memref<1x64xf32, #tpu.memory_space<vmem>>, vector<1x64xf32>
    %4 = vector.broadcast %3 : vector<1x64xf32> to vector<16x64xf32>
    %5 = arith.addf %2, %4 : vector<16x64xf32>
    %6 = arith.mulf %5, %5 : vector<16x64xf32>
    %7 = arith.mulf %5, %6 : vector<16x64xf32>
    %cst_5 = arith.constant 4.471500e-02 : f32
    %8 = vector.broadcast %cst_5 : f32 to vector<16x64xf32>
    %9 = arith.mulf %8, %7 : vector<16x64xf32>
    %10 = arith.addf %5, %9 : vector<16x64xf32>
    %cst_6 = arith.constant 0.797884583 : f32
    %11 = vector.broadcast %cst_6 : f32 to vector<16x64xf32>
    %12 = arith.mulf %11, %10 : vector<16x64xf32>
    %13 = math.tanh %12 : vector<16x64xf32>
    %cst_7 = arith.constant 1.000000e+00 : f32
    %14 = vector.broadcast %cst_7 : f32 to vector<16x64xf32>
    %15 = arith.addf %14, %13 : vector<16x64xf32>
    %cst_8 = arith.constant 5.000000e-01 : f32
    %16 = vector.broadcast %cst_8 : f32 to vector<16x64xf32>
    %17 = arith.mulf %16, %15 : vector<16x64xf32>
    %18 = arith.mulf %5, %17 : vector<16x64xf32>
    %19 = arith.truncf %18 : vector<16x64xf32> to vector<16x64xbf16>
    %c0_9 = arith.constant 0 : index
    %c0_10 = arith.constant 0 : index
    %20 = vector.load %arg5[%c0_9, %c0_10] : memref<16x64xbf16, #tpu.memory_space<vmem>>, vector<16x64xbf16>
    tpu.vector_store %arg5[%c0_9, %c0_10], %19 {strides = array<i32>} : memref<16x64xbf16, #tpu.memory_space<vmem>>, vector<16x64xbf16>,
    return
  }
  func.func @transform_0(%arg0: i32, %arg1: i32) -> (i32, i32) {
    %c0_i32 = arith.constant 0 : i32
    %c0_i32_0 = arith.constant 0 : i32
    return %arg0, %c0_i32 : i32, i32
  }
  func.func @transform_1(%arg0: i32, %arg1: i32) -> (i32, i32) {
    %c0_i32 = arith.constant 0 : i32
    %c0_i32_0 = arith.constant 0 : i32
    return %c0_i32, %arg1 : i32, i32
  }
  func.func @transform_2(%arg0: i32, %arg1: i32) -> (i32, i32) {
    %c0_i32 = arith.constant 0 : i32
    %c0_i32_0 = arith.constant 0 : i32
    return %c0_i32, %arg1 : i32, i32
  }
  func.func @transform_3(%arg0: i32, %arg1: i32) -> (i32, i32) {
    %c0_i32 = arith.constant 0 : i32
    return %arg0, %arg1 : i32, i32
  }
}

module attributes {stable_mosaic.version = 11 : i64} {
  func.func @_matmul_res_ln_k1_kernel(%arg0: i32, %arg1: i32, %arg2: memref<16x64xbf16, #tpu.memory_space<vmem>>, %arg3: memref<64x32xbf16, #tpu.memory_space<vmem>>, %arg4: memref<1x32xf32, #tpu.memory_space<vmem>>, %arg5: memref<16x32xbf16, #tpu.memory_space<vmem>>, %arg6: memref<1x32xf32, #tpu.memory_space<vmem>>, %arg7: memref<1x32xf32, #tpu.memory_space<vmem>>, %arg8: memref<16x32xbf16, #tpu.memory_space<vmem>>) attributes {dimension_semantics = [#tpu.dimension_semantics<parallel>, #tpu.dimension_semantics<parallel>], iteration_bounds = array<i64: 1, 1>, scalar_prefetch = 0 : i64, scratch_operands = 0 : i64, tpu.core_type = #tpu.core_type<tc>, window_params = [{transform_indices = @transform_0, window_bounds = array<i64: 16, 64>}, {transform_indices = @transform_1, window_bounds = array<i64: 64, 32>}, {transform_indices = @transform_2, window_bounds = array<i64: 1, 32>}, {transform_indices = @transform_3, window_bounds = array<i64: 16, 32>}, {transform_indices = @transform_4, window_bounds = array<i64: 1, 32>}, {transform_indices = @transform_5, window_bounds = array<i64: 1, 32>}, {transform_indices = @transform_6, window_bounds = array<i64: 16, 32>}]} {
    %c0 = arith.constant 0 : index
    %c0_0 = arith.constant 0 : index
    %0 = vector.load %arg2[%c0, %c0_0] : memref<16x64xbf16, #tpu.memory_space<vmem>>, vector<16x64xbf16>
    %c0_1 = arith.constant 0 : index
    %c0_2 = arith.constant 0 : index
    %1 = vector.load %arg3[%c0_1, %c0_2] : memref<64x32xbf16, #tpu.memory_space<vmem>>, vector<64x32xbf16>
    %cst = arith.constant dense<0.000000e+00> : vector<16x32xf32>
    %2 = tpu.matmul %0, %1, %cst {dimension_numbers = #tpu.dot_dimension_numbers<[1], [0], [0], [1], [0, 0, 1, 1], [], []>} : vector<16x64xbf16>, vector<64x32xbf16>, vector<16x32xf32> -> vector<16x32xf32>
    %c0_3 = arith.constant 0 : index
    %c0_4 = arith.constant 0 : index
    %3 = vector.load %arg4[%c0_3, %c0_4] : memref<1x32xf32, #tpu.memory_space<vmem>>, vector<1x32xf32>
    %4 = vector.broadcast %3 : vector<1x32xf32> to vector<16x32xf32>
    %5 = arith.addf %2, %4 : vector<16x32xf32>
    %c0_5 = arith.constant 0 : index
    %c0_6 = arith.constant 0 : index
    %6 = vector.load %arg5[%c0_5, %c0_6] : memref<16x32xbf16, #tpu.memory_space<vmem>>, vector<16x32xbf16>
    %c0_7 = arith.constant 0 : index
    %c0_8 = arith.constant 0 : index
    %7 = vector.load %arg6[%c0_7, %c0_8] : memref<1x32xf32, #tpu.memory_space<vmem>>, vector<1x32xf32>
    %c0_9 = arith.constant 0 : index
    %c0_10 = arith.constant 0 : index
    %8 = vector.load %arg7[%c0_9, %c0_10] : memref<1x32xf32, #tpu.memory_space<vmem>>, vector<1x32xf32>
    %9 = arith.extf %6 : vector<16x32xbf16> to vector<16x32xf32>
    %10 = arith.addf %5, %9 : vector<16x32xf32>
    %cst_11 = arith.constant dense<0.000000e+00> : vector<16xf32>
    %11 = vector.multi_reduction <add>, %10, %cst_11 [1] : vector<16x32xf32> to vector<16xf32>
    %12 = vector.shape_cast %11 : vector<16xf32> to vector<16x1xf32>
    %cst_12 = arith.constant 3.200000e+01 : f32
    %13 = vector.broadcast %cst_12 : f32 to vector<16x1xf32>
    %14 = arith.divf %12, %13 : vector<16x1xf32>
    %15 = vector.broadcast %14 : vector<16x1xf32> to vector<16x32xf32>
    %16 = arith.subf %10, %15 : vector<16x32xf32>
    %17 = arith.mulf %16, %16 : vector<16x32xf32>
    %cst_13 = arith.constant dense<0.000000e+00> : vector<16xf32>
    %18 = vector.multi_reduction <add>, %17, %cst_13 [1] : vector<16x32xf32> to vector<16xf32>
    %19 = vector.shape_cast %18 : vector<16xf32> to vector<16x1xf32>
    %cst_14 = arith.constant 3.200000e+01 : f32
    %20 = vector.broadcast %cst_14 : f32 to vector<16x1xf32>
    %21 = arith.divf %19, %20 : vector<16x1xf32>
    %22 = vector.broadcast %14 : vector<16x1xf32> to vector<16x32xf32>
    %23 = arith.subf %10, %22 : vector<16x32xf32>
    %cst_15 = arith.constant 9.99999996E-13 : f32
    %24 = vector.broadcast %cst_15 : f32 to vector<16x1xf32>
    %25 = arith.addf %21, %24 : vector<16x1xf32>
    %26 = math.rsqrt %25 : vector<16x1xf32>
    %27 = vector.broadcast %26 : vector<16x1xf32> to vector<16x32xf32>
    %28 = arith.mulf %23, %27 : vector<16x32xf32>
    %29 = vector.broadcast %7 : vector<1x32xf32> to vector<16x32xf32>
    %30 = arith.mulf %28, %29 : vector<16x32xf32>
    %31 = vector.broadcast %8 : vector<1x32xf32> to vector<16x32xf32>
    %32 = arith.addf %30, %31 : vector<16x32xf32>
    %33 = arith.truncf %32 : vector<16x32xf32> to vector<16x32xbf16>
    %c0_16 = arith.constant 0 : index
    %c0_17 = arith.constant 0 : index
    %34 = vector.load %arg8[%c0_16, %c0_17] : memref<16x32xbf16, #tpu.memory_space<vmem>>, vector<16x32xbf16>
    tpu.vector_store %arg8[%c0_16, %c0_17], %33 {strides = array<i32>} : memref<16x32xbf16, #tpu.memory_space<vmem>>, vector<16x32xbf16>,
    return
  }
  func.func @transform_0(%arg0: i32, %arg1: i32) -> (i32, i32) {
    %c0_i32 = arith.constant 0 : i32
    %c0_i32_0 = arith.constant 0 : i32
    return %arg0, %c0_i32 : i32, i32
  }
  func.func @transform_1(%arg0: i32, %arg1: i32) -> (i32, i32) {
    %c0_i32 = arith.constant 0 : i32
    %c0_i32_0 = arith.constant 0 : i32
    return %c0_i32, %arg1 : i32, i32
  }
  func.func @transform_2(%arg0: i32, %arg1: i32) -> (i32, i32) {
    %c0_i32 = arith.constant 0 : i32
    %c0_i32_0 = arith.constant 0 : i32
    return %c0_i32, %arg1 : i32, i32
  }
  func.func @transform_3(%arg0: i32, %arg1: i32) -> (i32, i32) {
    %c0_i32 = arith.constant 0 : i32
    return %arg0, %arg1 : i32, i32
  }
  func.func @transform_4(%arg0: i32, %arg1: i32) -> (i32, i32) {
    %c0_i32 = arith.constant 0 : i32
    %c0_i32_0 = arith.constant 0 : i32
    return %c0_i32, %arg1 : i32, i32
  }
  func.func @transform_5(%arg0: i32, %arg1: i32) -> (i32, i32) {
    %c0_i32 = arith.constant 0 : i32
    %c0_i32_0 = arith.constant 0 : i32
    return %c0_i32, %arg1 : i32, i32
  }
  func.func @transform_6(%arg0: i32, %arg1: i32) -> (i32, i32) {
    %c0_i32 = arith.constant 0 : i32
    return %arg0, %arg1 : i32, i32
  }
}

module attributes {stable_mosaic.version = 11 : i64} {
  func.func @_matmul_k1_kernel(%arg0: i32, %arg1: i32, %arg2: memref<16x32xbf16, #tpu.memory_space<vmem>>, %arg3: memref<32x64xbf16, #tpu.memory_space<vmem>>, %arg4: memref<1x64xf32, #tpu.memory_space<vmem>>, %arg5: memref<16x64xbf16, #tpu.memory_space<vmem>>) attributes {dimension_semantics = [#tpu.dimension_semantics<parallel>, #tpu.dimension_semantics<parallel>], iteration_bounds = array<i64: 1, 1>, scalar_prefetch = 0 : i64, scratch_operands = 0 : i64, tpu.core_type = #tpu.core_type<tc>, window_params = [{transform_indices = @transform_0, window_bounds = array<i64: 16, 32>}, {transform_indices = @transform_1, window_bounds = array<i64: 32, 64>}, {transform_indices = @transform_2, window_bounds = array<i64: 1, 64>}, {transform_indices = @transform_3, window_bounds = array<i64: 16, 64>}]} {
    %c0 = arith.constant 0 : index
    %c0_0 = arith.constant 0 : index
    %0 = vector.load %arg2[%c0, %c0_0] : memref<16x32xbf16, #tpu.memory_space<vmem>>, vector<16x32xbf16>
    %c0_1 = arith.constant 0 : index
    %c0_2 = arith.constant 0 : index
    %1 = vector.load %arg3[%c0_1, %c0_2] : memref<32x64xbf16, #tpu.memory_space<vmem>>, vector<32x64xbf16>
    %cst = arith.constant dense<0.000000e+00> : vector<16x64xf32>
    %2 = tpu.matmul %0, %1, %cst {dimension_numbers = #tpu.dot_dimension_numbers<[1], [0], [0], [1], [0, 0, 1, 1], [], []>} : vector<16x32xbf16>, vector<32x64xbf16>, vector<16x64xf32> -> vector<16x64xf32>
    %c0_3 = arith.constant 0 : index
    %c0_4 = arith.constant 0 : index
    %3 = vector.load %arg4[%c0_3, %c0_4] : memref<1x64xf32, #tpu.memory_space<vmem>>, vector<1x64xf32>
    %4 = vector.broadcast %3 : vector<1x64xf32> to vector<16x64xf32>
    %5 = arith.addf %2, %4 : vector<16x64xf32>
    %6 = arith.truncf %5 : vector<16x64xf32> to vector<16x64xbf16>
    %c0_5 = arith.constant 0 : index
    %c0_6 = arith.constant 0 : index
    %7 = vector.load %arg5[%c0_5, %c0_6] : memref<16x64xbf16, #tpu.memory_space<vmem>>, vector<16x64xbf16>
    tpu.vector_store %arg5[%c0_5, %c0_6], %6 {strides = array<i32>} : memref<16x64xbf16, #tpu.memory_space<vmem>>, vector<16x64xbf16>,
    return
  }
  func.func @transform_0(%arg0: i32, %arg1: i32) -> (i32, i32) {
    %c0_i32 = arith.constant 0 : i32
    %c0_i32_0 = arith.constant 0 : i32
    return %arg0, %c0_i32 : i32, i32
  }
  func.func @transform_1(%arg0: i32, %arg1: i32) -> (i32, i32) {
    %c0_i32 = arith.constant 0 : i32
    %c0_i32_0 = arith.constant 0 : i32
    return %c0_i32, %arg1 : i32, i32
  }
  func.func @transform_2(%arg0: i32, %arg1: i32) -> (i32, i32) {
    %c0_i32 = arith.constant 0 : i32
    %c0_i32_0 = arith.constant 0 : i32
    return %c0_i32, %arg1 : i32, i32
  }
  func.func @transform_3(%arg0: i32, %arg1: i32) -> (i32, i32) {
    %c0_i32 = arith.constant 0 : i32
    return %arg0, %arg1 : i32, i32
  }
}

module attributes {stable_mosaic.version = 11 : i64} {
  func.func @_lstm_dir_kernel(%arg0: i32, %arg1: memref<2x8x64xbf16, #tpu.memory_space<vmem>>, %arg2: memref<16x64xbf16, #tpu.memory_space<vmem>>, %arg3: memref<2x8x16xbf16, #tpu.memory_space<vmem>>) attributes {dimension_semantics = [#tpu.dimension_semantics<arbitrary>], iteration_bounds = array<i64: 1>, scalar_prefetch = 0 : i64, scratch_operands = 0 : i64, tpu.core_type = #tpu.core_type<tc>, window_params = [{pipeline_mode = #tpu.pipeline_mode<synchronous>, transform_indices = @transform_0, window_bounds = array<i64: 2, 8, 64>}, {pipeline_mode = #tpu.pipeline_mode<synchronous>, transform_indices = @transform_1, window_bounds = array<i64: 16, 64>}, {pipeline_mode = #tpu.pipeline_mode<synchronous>, transform_indices = @transform_2, window_bounds = array<i64: 2, 8, 16>}]} {
    %c0 = arith.constant 0 : index
    %c0_0 = arith.constant 0 : index
    %0 = vector.load %arg2[%c0, %c0_0] : memref<16x64xbf16, #tpu.memory_space<vmem>>, vector<16x64xbf16>
    %cst = arith.constant 0.000000e+00 : f32
    %1 = vector.broadcast %cst : f32 to vector<2x16xf32>
    %cst_1 = arith.constant 0.000000e+00 : f32
    %2 = vector.broadcast %cst_1 : f32 to vector<2x16xf32>
    %c0_i32 = arith.constant 0 : i32
    %c7_i32 = arith.constant 7 : i32
    %3 = arith.subi %c7_i32, %c0_i32 : i32
    %c0_2 = arith.constant 0 : index
    %4 = arith.index_cast %3 : i32 to index
    %c0_3 = arith.constant 0 : index
    %5 = vector.load %arg1[%c0_2, %4, %c0_3] : memref<2x8x64xbf16, #tpu.memory_space<vmem>>, vector<2x1x64xbf16>
    %6 = vector.shape_cast %5 : vector<2x1x64xbf16> to vector<2x64xbf16>
    %7 = arith.extf %6 : vector<2x64xbf16> to vector<2x64xf32>
    %8 = arith.truncf %1 : vector<2x16xf32> to vector<2x16xbf16>
    %cst_4 = arith.constant dense<0.000000e+00> : vector<2x64xf32>
    %9 = tpu.matmul %8, %0, %cst_4 {dimension_numbers = #tpu.dot_dimension_numbers<[1], [0], [0], [1], [0, 0, 1, 1], [], []>} : vector<2x16xbf16>, vector<16x64xbf16>, vector<2x64xf32> -> vector<2x64xf32>
    %10 = arith.addf %7, %9 : vector<2x64xf32>
    %11 = vector.extract_strided_slice %10 {offsets = [0, 0], sizes = [2, 16], strides = [1, 1]} : vector<2x64xf32> to vector<2x16xf32>
    %12 = arith.negf %11 : vector<2x16xf32>
    %13 = math.exp %12 : vector<2x16xf32>
    %cst_5 = arith.constant 1.000000e+00 : f32
    %14 = vector.broadcast %cst_5 : f32 to vector<2x16xf32>
    %15 = arith.addf %14, %13 : vector<2x16xf32>
    %16 = arith.divf %14, %15 : vector<2x16xf32>
    %17 = vector.extract_strided_slice %10 {offsets = [0, 16], sizes = [2, 16], strides = [1, 1]} : vector<2x64xf32> to vector<2x16xf32>
    %18 = arith.negf %17 : vector<2x16xf32>
    %19 = math.exp %18 : vector<2x16xf32>
    %cst_6 = arith.constant 1.000000e+00 : f32
    %20 = vector.broadcast %cst_6 : f32 to vector<2x16xf32>
    %21 = arith.addf %20, %19 : vector<2x16xf32>
    %22 = arith.divf %20, %21 : vector<2x16xf32>
    %23 = vector.extract_strided_slice %10 {offsets = [0, 32], sizes = [2, 16], strides = [1, 1]} : vector<2x64xf32> to vector<2x16xf32>
    %24 = math.tanh %23 : vector<2x16xf32>
    %25 = vector.extract_strided_slice %10 {offsets = [0, 48], sizes = [2, 16], strides = [1, 1]} : vector<2x64xf32> to vector<2x16xf32>
    %26 = arith.negf %25 : vector<2x16xf32>
    %27 = math.exp %26 : vector<2x16xf32>
    %cst_7 = arith.constant 1.000000e+00 : f32
    %28 = vector.broadcast %cst_7 : f32 to vector<2x16xf32>
    %29 = arith.addf %28, %27 : vector<2x16xf32>
    %30 = arith.divf %28, %29 : vector<2x16xf32>
    %31 = arith.mulf %22, %2 : vector<2x16xf32>
    %32 = arith.mulf %16, %24 : vector<2x16xf32>
    %33 = arith.addf %31, %32 : vector<2x16xf32>
    %34 = math.tanh %33 : vector<2x16xf32>
    %35 = arith.mulf %30, %34 : vector<2x16xf32>
    %36 = vector.shape_cast %35 : vector<2x16xf32> to vector<2x1x16xf32>
    %37 = arith.truncf %36 : vector<2x1x16xf32> to vector<2x1x16xbf16>
    %c0_8 = arith.constant 0 : index
    %38 = arith.index_cast %3 : i32 to index
    %c0_9 = arith.constant 0 : index
    %39 = vector.load %arg3[%c0_8, %38, %c0_9] : memref<2x8x16xbf16, #tpu.memory_space<vmem>>, vector<2x1x16xbf16>
    tpu.vector_store %arg3[%c0_8, %38, %c0_9], %37 {strides = array<i32>} : memref<2x8x16xbf16, #tpu.memory_space<vmem>>, vector<2x1x16xbf16>,
    %c1_i32 = arith.constant 1 : i32
    %c7_i32_10 = arith.constant 7 : i32
    %40 = arith.subi %c7_i32_10, %c1_i32 : i32
    %c0_11 = arith.constant 0 : index
    %41 = arith.index_cast %40 : i32 to index
    %c0_12 = arith.constant 0 : index
    %42 = vector.load %arg1[%c0_11, %41, %c0_12] : memref<2x8x64xbf16, #tpu.memory_space<vmem>>, vector<2x1x64xbf16>
    %43 = vector.shape_cast %42 : vector<2x1x64xbf16> to vector<2x64xbf16>
    %44 = arith.extf %43 : vector<2x64xbf16> to vector<2x64xf32>
    %45 = arith.truncf %35 : vector<2x16xf32> to vector<2x16xbf16>
    %cst_13 = arith.constant dense<0.000000e+00> : vector<2x64xf32>
    %46 = tpu.matmul %45, %0, %cst_13 {dimension_numbers = #tpu.dot_dimension_numbers<[1], [0], [0], [1], [0, 0, 1, 1], [], []>} : vector<2x16xbf16>, vector<16x64xbf16>, vector<2x64xf32> -> vector<2x64xf32>
    %47 = arith.addf %44, %46 : vector<2x64xf32>
    %48 = vector.extract_strided_slice %47 {offsets = [0, 0], sizes = [2, 16], strides = [1, 1]} : vector<2x64xf32> to vector<2x16xf32>
    %49 = arith.negf %48 : vector<2x16xf32>
    %50 = math.exp %49 : vector<2x16xf32>
    %cst_14 = arith.constant 1.000000e+00 : f32
    %51 = vector.broadcast %cst_14 : f32 to vector<2x16xf32>
    %52 = arith.addf %51, %50 : vector<2x16xf32>
    %53 = arith.divf %51, %52 : vector<2x16xf32>
    %54 = vector.extract_strided_slice %47 {offsets = [0, 16], sizes = [2, 16], strides = [1, 1]} : vector<2x64xf32> to vector<2x16xf32>
    %55 = arith.negf %54 : vector<2x16xf32>
    %56 = math.exp %55 : vector<2x16xf32>
    %cst_15 = arith.constant 1.000000e+00 : f32
    %57 = vector.broadcast %cst_15 : f32 to vector<2x16xf32>
    %58 = arith.addf %57, %56 : vector<2x16xf32>
    %59 = arith.divf %57, %58 : vector<2x16xf32>
    %60 = vector.extract_strided_slice %47 {offsets = [0, 32], sizes = [2, 16], strides = [1, 1]} : vector<2x64xf32> to vector<2x16xf32>
    %61 = math.tanh %60 : vector<2x16xf32>
    %62 = vector.extract_strided_slice %47 {offsets = [0, 48], sizes = [2, 16], strides = [1, 1]} : vector<2x64xf32> to vector<2x16xf32>
    %63 = arith.negf %62 : vector<2x16xf32>
    %64 = math.exp %63 : vector<2x16xf32>
    %cst_16 = arith.constant 1.000000e+00 : f32
    %65 = vector.broadcast %cst_16 : f32 to vector<2x16xf32>
    %66 = arith.addf %65, %64 : vector<2x16xf32>
    %67 = arith.divf %65, %66 : vector<2x16xf32>
    %68 = arith.mulf %59, %33 : vector<2x16xf32>
    %69 = arith.mulf %53, %61 : vector<2x16xf32>
    %70 = arith.addf %68, %69 : vector<2x16xf32>
    %71 = math.tanh %70 : vector<2x16xf32>
    %72 = arith.mulf %67, %71 : vector<2x16xf32>
    %73 = vector.shape_cast %72 : vector<2x16xf32> to vector<2x1x16xf32>
    %74 = arith.truncf %73 : vector<2x1x16xf32> to vector<2x1x16xbf16>
    %c0_17 = arith.constant 0 : index
    %75 = arith.index_cast %40 : i32 to index
    %c0_18 = arith.constant 0 : index
    %76 = vector.load %arg3[%c0_17, %75, %c0_18] : memref<2x8x16xbf16, #tpu.memory_space<vmem>>, vector<2x1x16xbf16>
    tpu.vector_store %arg3[%c0_17, %75, %c0_18], %74 {strides = array<i32>} : memref<2x8x16xbf16, #tpu.memory_space<vmem>>, vector<2x1x16xbf16>,
    %c2_i32 = arith.constant 2 : i32
    %c7_i32_19 = arith.constant 7 : i32
    %77 = arith.subi %c7_i32_19, %c2_i32 : i32
    %c0_20 = arith.constant 0 : index
    %78 = arith.index_cast %77 : i32 to index
    %c0_21 = arith.constant 0 : index
    %79 = vector.load %arg1[%c0_20, %78, %c0_21] : memref<2x8x64xbf16, #tpu.memory_space<vmem>>, vector<2x1x64xbf16>
    %80 = vector.shape_cast %79 : vector<2x1x64xbf16> to vector<2x64xbf16>
    %81 = arith.extf %80 : vector<2x64xbf16> to vector<2x64xf32>
    %82 = arith.truncf %72 : vector<2x16xf32> to vector<2x16xbf16>
    %cst_22 = arith.constant dense<0.000000e+00> : vector<2x64xf32>
    %83 = tpu.matmul %82, %0, %cst_22 {dimension_numbers = #tpu.dot_dimension_numbers<[1], [0], [0], [1], [0, 0, 1, 1], [], []>} : vector<2x16xbf16>, vector<16x64xbf16>, vector<2x64xf32> -> vector<2x64xf32>
    %84 = arith.addf %81, %83 : vector<2x64xf32>
    %85 = vector.extract_strided_slice %84 {offsets = [0, 0], sizes = [2, 16], strides = [1, 1]} : vector<2x64xf32> to vector<2x16xf32>
    %86 = arith.negf %85 : vector<2x16xf32>
    %87 = math.exp %86 : vector<2x16xf32>
    %cst_23 = arith.constant 1.000000e+00 : f32
    %88 = vector.broadcast %cst_23 : f32 to vector<2x16xf32>
    %89 = arith.addf %88, %87 : vector<2x16xf32>
    %90 = arith.divf %88, %89 : vector<2x16xf32>
    %91 = vector.extract_strided_slice %84 {offsets = [0, 16], sizes = [2, 16], strides = [1, 1]} : vector<2x64xf32> to vector<2x16xf32>
    %92 = arith.negf %91 : vector<2x16xf32>
    %93 = math.exp %92 : vector<2x16xf32>
    %cst_24 = arith.constant 1.000000e+00 : f32
    %94 = vector.broadcast %cst_24 : f32 to vector<2x16xf32>
    %95 = arith.addf %94, %93 : vector<2x16xf32>
    %96 = arith.divf %94, %95 : vector<2x16xf32>
    %97 = vector.extract_strided_slice %84 {offsets = [0, 32], sizes = [2, 16], strides = [1, 1]} : vector<2x64xf32> to vector<2x16xf32>
    %98 = math.tanh %97 : vector<2x16xf32>
    %99 = vector.extract_strided_slice %84 {offsets = [0, 48], sizes = [2, 16], strides = [1, 1]} : vector<2x64xf32> to vector<2x16xf32>
    %100 = arith.negf %99 : vector<2x16xf32>
    %101 = math.exp %100 : vector<2x16xf32>
    %cst_25 = arith.constant 1.000000e+00 : f32
    %102 = vector.broadcast %cst_25 : f32 to vector<2x16xf32>
    %103 = arith.addf %102, %101 : vector<2x16xf32>
    %104 = arith.divf %102, %103 : vector<2x16xf32>
    %105 = arith.mulf %96, %70 : vector<2x16xf32>
    %106 = arith.mulf %90, %98 : vector<2x16xf32>
    %107 = arith.addf %105, %106 : vector<2x16xf32>
    %108 = math.tanh %107 : vector<2x16xf32>
    %109 = arith.mulf %104, %108 : vector<2x16xf32>
    %110 = vector.shape_cast %109 : vector<2x16xf32> to vector<2x1x16xf32>
    %111 = arith.truncf %110 : vector<2x1x16xf32> to vector<2x1x16xbf16>
    %c0_26 = arith.constant 0 : index
    %112 = arith.index_cast %77 : i32 to index
    %c0_27 = arith.constant 0 : index
    %113 = vector.load %arg3[%c0_26, %112, %c0_27] : memref<2x8x16xbf16, #tpu.memory_space<vmem>>, vector<2x1x16xbf16>
    tpu.vector_store %arg3[%c0_26, %112, %c0_27], %111 {strides = array<i32>} : memref<2x8x16xbf16, #tpu.memory_space<vmem>>, vector<2x1x16xbf16>,
    %c3_i32 = arith.constant 3 : i32
    %c7_i32_28 = arith.constant 7 : i32
    %114 = arith.subi %c7_i32_28, %c3_i32 : i32
    %c0_29 = arith.constant 0 : index
    %115 = arith.index_cast %114 : i32 to index
    %c0_30 = arith.constant 0 : index
    %116 = vector.load %arg1[%c0_29, %115, %c0_30] : memref<2x8x64xbf16, #tpu.memory_space<vmem>>, vector<2x1x64xbf16>
    %117 = vector.shape_cast %116 : vector<2x1x64xbf16> to vector<2x64xbf16>
    %118 = arith.extf %117 : vector<2x64xbf16> to vector<2x64xf32>
    %119 = arith.truncf %109 : vector<2x16xf32> to vector<2x16xbf16>
    %cst_31 = arith.constant dense<0.000000e+00> : vector<2x64xf32>
    %120 = tpu.matmul %119, %0, %cst_31 {dimension_numbers = #tpu.dot_dimension_numbers<[1], [0], [0], [1], [0, 0, 1, 1], [], []>} : vector<2x16xbf16>, vector<16x64xbf16>, vector<2x64xf32> -> vector<2x64xf32>
    %121 = arith.addf %118, %120 : vector<2x64xf32>
    %122 = vector.extract_strided_slice %121 {offsets = [0, 0], sizes = [2, 16], strides = [1, 1]} : vector<2x64xf32> to vector<2x16xf32>
    %123 = arith.negf %122 : vector<2x16xf32>
    %124 = math.exp %123 : vector<2x16xf32>
    %cst_32 = arith.constant 1.000000e+00 : f32
    %125 = vector.broadcast %cst_32 : f32 to vector<2x16xf32>
    %126 = arith.addf %125, %124 : vector<2x16xf32>
    %127 = arith.divf %125, %126 : vector<2x16xf32>
    %128 = vector.extract_strided_slice %121 {offsets = [0, 16], sizes = [2, 16], strides = [1, 1]} : vector<2x64xf32> to vector<2x16xf32>
    %129 = arith.negf %128 : vector<2x16xf32>
    %130 = math.exp %129 : vector<2x16xf32>
    %cst_33 = arith.constant 1.000000e+00 : f32
    %131 = vector.broadcast %cst_33 : f32 to vector<2x16xf32>
    %132 = arith.addf %131, %130 : vector<2x16xf32>
    %133 = arith.divf %131, %132 : vector<2x16xf32>
    %134 = vector.extract_strided_slice %121 {offsets = [0, 32], sizes = [2, 16], strides = [1, 1]} : vector<2x64xf32> to vector<2x16xf32>
    %135 = math.tanh %134 : vector<2x16xf32>
    %136 = vector.extract_strided_slice %121 {offsets = [0, 48], sizes = [2, 16], strides = [1, 1]} : vector<2x64xf32> to vector<2x16xf32>
    %137 = arith.negf %136 : vector<2x16xf32>
    %138 = math.exp %137 : vector<2x16xf32>
    %cst_34 = arith.constant 1.000000e+00 : f32
    %139 = vector.broadcast %cst_34 : f32 to vector<2x16xf32>
    %140 = arith.addf %139, %138 : vector<2x16xf32>
    %141 = arith.divf %139, %140 : vector<2x16xf32>
    %142 = arith.mulf %133, %107 : vector<2x16xf32>
    %143 = arith.mulf %127, %135 : vector<2x16xf32>
    %144 = arith.addf %142, %143 : vector<2x16xf32>
    %145 = math.tanh %144 : vector<2x16xf32>
    %146 = arith.mulf %141, %145 : vector<2x16xf32>
    %147 = vector.shape_cast %146 : vector<2x16xf32> to vector<2x1x16xf32>
    %148 = arith.truncf %147 : vector<2x1x16xf32> to vector<2x1x16xbf16>
    %c0_35 = arith.constant 0 : index
    %149 = arith.index_cast %114 : i32 to index
    %c0_36 = arith.constant 0 : index
    %150 = vector.load %arg3[%c0_35, %149, %c0_36] : memref<2x8x16xbf16, #tpu.memory_space<vmem>>, vector<2x1x16xbf16>
    tpu.vector_store %arg3[%c0_35, %149, %c0_36], %148 {strides = array<i32>} : memref<2x8x16xbf16, #tpu.memory_space<vmem>>, vector<2x1x16xbf16>,
    %c4_i32 = arith.constant 4 : i32
    %c7_i32_37 = arith.constant 7 : i32
    %151 = arith.subi %c7_i32_37, %c4_i32 : i32
    %c0_38 = arith.constant 0 : index
    %152 = arith.index_cast %151 : i32 to index
    %c0_39 = arith.constant 0 : index
    %153 = vector.load %arg1[%c0_38, %152, %c0_39] : memref<2x8x64xbf16, #tpu.memory_space<vmem>>, vector<2x1x64xbf16>
    %154 = vector.shape_cast %153 : vector<2x1x64xbf16> to vector<2x64xbf16>
    %155 = arith.extf %154 : vector<2x64xbf16> to vector<2x64xf32>
    %156 = arith.truncf %146 : vector<2x16xf32> to vector<2x16xbf16>
    %cst_40 = arith.constant dense<0.000000e+00> : vector<2x64xf32>
    %157 = tpu.matmul %156, %0, %cst_40 {dimension_numbers = #tpu.dot_dimension_numbers<[1], [0], [0], [1], [0, 0, 1, 1], [], []>} : vector<2x16xbf16>, vector<16x64xbf16>, vector<2x64xf32> -> vector<2x64xf32>
    %158 = arith.addf %155, %157 : vector<2x64xf32>
    %159 = vector.extract_strided_slice %158 {offsets = [0, 0], sizes = [2, 16], strides = [1, 1]} : vector<2x64xf32> to vector<2x16xf32>
    %160 = arith.negf %159 : vector<2x16xf32>
    %161 = math.exp %160 : vector<2x16xf32>
    %cst_41 = arith.constant 1.000000e+00 : f32
    %162 = vector.broadcast %cst_41 : f32 to vector<2x16xf32>
    %163 = arith.addf %162, %161 : vector<2x16xf32>
    %164 = arith.divf %162, %163 : vector<2x16xf32>
    %165 = vector.extract_strided_slice %158 {offsets = [0, 16], sizes = [2, 16], strides = [1, 1]} : vector<2x64xf32> to vector<2x16xf32>
    %166 = arith.negf %165 : vector<2x16xf32>
    %167 = math.exp %166 : vector<2x16xf32>
    %cst_42 = arith.constant 1.000000e+00 : f32
    %168 = vector.broadcast %cst_42 : f32 to vector<2x16xf32>
    %169 = arith.addf %168, %167 : vector<2x16xf32>
    %170 = arith.divf %168, %169 : vector<2x16xf32>
    %171 = vector.extract_strided_slice %158 {offsets = [0, 32], sizes = [2, 16], strides = [1, 1]} : vector<2x64xf32> to vector<2x16xf32>
    %172 = math.tanh %171 : vector<2x16xf32>
    %173 = vector.extract_strided_slice %158 {offsets = [0, 48], sizes = [2, 16], strides = [1, 1]} : vector<2x64xf32> to vector<2x16xf32>
    %174 = arith.negf %173 : vector<2x16xf32>
    %175 = math.exp %174 : vector<2x16xf32>
    %cst_43 = arith.constant 1.000000e+00 : f32
    %176 = vector.broadcast %cst_43 : f32 to vector<2x16xf32>
    %177 = arith.addf %176, %175 : vector<2x16xf32>
    %178 = arith.divf %176, %177 : vector<2x16xf32>
    %179 = arith.mulf %170, %144 : vector<2x16xf32>
    %180 = arith.mulf %164, %172 : vector<2x16xf32>
    %181 = arith.addf %179, %180 : vector<2x16xf32>
    %182 = math.tanh %181 : vector<2x16xf32>
    %183 = arith.mulf %178, %182 : vector<2x16xf32>
    %184 = vector.shape_cast %183 : vector<2x16xf32> to vector<2x1x16xf32>
    %185 = arith.truncf %184 : vector<2x1x16xf32> to vector<2x1x16xbf16>
    %c0_44 = arith.constant 0 : index
    %186 = arith.index_cast %151 : i32 to index
    %c0_45 = arith.constant 0 : index
    %187 = vector.load %arg3[%c0_44, %186, %c0_45] : memref<2x8x16xbf16, #tpu.memory_space<vmem>>, vector<2x1x16xbf16>
    tpu.vector_store %arg3[%c0_44, %186, %c0_45], %185 {strides = array<i32>} : memref<2x8x16xbf16, #tpu.memory_space<vmem>>, vector<2x1x16xbf16>,
    %c5_i32 = arith.constant 5 : i32
    %c7_i32_46 = arith.constant 7 : i32
    %188 = arith.subi %c7_i32_46, %c5_i32 : i32
    %c0_47 = arith.constant 0 : index
    %189 = arith.index_cast %188 : i32 to index
    %c0_48 = arith.constant 0 : index
    %190 = vector.load %arg1[%c0_47, %189, %c0_48] : memref<2x8x64xbf16, #tpu.memory_space<vmem>>, vector<2x1x64xbf16>
    %191 = vector.shape_cast %190 : vector<2x1x64xbf16> to vector<2x64xbf16>
    %192 = arith.extf %191 : vector<2x64xbf16> to vector<2x64xf32>
    %193 = arith.truncf %183 : vector<2x16xf32> to vector<2x16xbf16>
    %cst_49 = arith.constant dense<0.000000e+00> : vector<2x64xf32>
    %194 = tpu.matmul %193, %0, %cst_49 {dimension_numbers = #tpu.dot_dimension_numbers<[1], [0], [0], [1], [0, 0, 1, 1], [], []>} : vector<2x16xbf16>, vector<16x64xbf16>, vector<2x64xf32> -> vector<2x64xf32>
    %195 = arith.addf %192, %194 : vector<2x64xf32>
    %196 = vector.extract_strided_slice %195 {offsets = [0, 0], sizes = [2, 16], strides = [1, 1]} : vector<2x64xf32> to vector<2x16xf32>
    %197 = arith.negf %196 : vector<2x16xf32>
    %198 = math.exp %197 : vector<2x16xf32>
    %cst_50 = arith.constant 1.000000e+00 : f32
    %199 = vector.broadcast %cst_50 : f32 to vector<2x16xf32>
    %200 = arith.addf %199, %198 : vector<2x16xf32>
    %201 = arith.divf %199, %200 : vector<2x16xf32>
    %202 = vector.extract_strided_slice %195 {offsets = [0, 16], sizes = [2, 16], strides = [1, 1]} : vector<2x64xf32> to vector<2x16xf32>
    %203 = arith.negf %202 : vector<2x16xf32>
    %204 = math.exp %203 : vector<2x16xf32>
    %cst_51 = arith.constant 1.000000e+00 : f32
    %205 = vector.broadcast %cst_51 : f32 to vector<2x16xf32>
    %206 = arith.addf %205, %204 : vector<2x16xf32>
    %207 = arith.divf %205, %206 : vector<2x16xf32>
    %208 = vector.extract_strided_slice %195 {offsets = [0, 32], sizes = [2, 16], strides = [1, 1]} : vector<2x64xf32> to vector<2x16xf32>
    %209 = math.tanh %208 : vector<2x16xf32>
    %210 = vector.extract_strided_slice %195 {offsets = [0, 48], sizes = [2, 16], strides = [1, 1]} : vector<2x64xf32> to vector<2x16xf32>
    %211 = arith.negf %210 : vector<2x16xf32>
    %212 = math.exp %211 : vector<2x16xf32>
    %cst_52 = arith.constant 1.000000e+00 : f32
    %213 = vector.broadcast %cst_52 : f32 to vector<2x16xf32>
    %214 = arith.addf %213, %212 : vector<2x16xf32>
    %215 = arith.divf %213, %214 : vector<2x16xf32>
    %216 = arith.mulf %207, %181 : vector<2x16xf32>
    %217 = arith.mulf %201, %209 : vector<2x16xf32>
    %218 = arith.addf %216, %217 : vector<2x16xf32>
    %219 = math.tanh %218 : vector<2x16xf32>
    %220 = arith.mulf %215, %219 : vector<2x16xf32>
    %221 = vector.shape_cast %220 : vector<2x16xf32> to vector<2x1x16xf32>
    %222 = arith.truncf %221 : vector<2x1x16xf32> to vector<2x1x16xbf16>
    %c0_53 = arith.constant 0 : index
    %223 = arith.index_cast %188 : i32 to index
    %c0_54 = arith.constant 0 : index
    %224 = vector.load %arg3[%c0_53, %223, %c0_54] : memref<2x8x16xbf16, #tpu.memory_space<vmem>>, vector<2x1x16xbf16>
    tpu.vector_store %arg3[%c0_53, %223, %c0_54], %222 {strides = array<i32>} : memref<2x8x16xbf16, #tpu.memory_space<vmem>>, vector<2x1x16xbf16>,
    %c6_i32 = arith.constant 6 : i32
    %c7_i32_55 = arith.constant 7 : i32
    %225 = arith.subi %c7_i32_55, %c6_i32 : i32
    %c0_56 = arith.constant 0 : index
    %226 = arith.index_cast %225 : i32 to index
    %c0_57 = arith.constant 0 : index
    %227 = vector.load %arg1[%c0_56, %226, %c0_57] : memref<2x8x64xbf16, #tpu.memory_space<vmem>>, vector<2x1x64xbf16>
    %228 = vector.shape_cast %227 : vector<2x1x64xbf16> to vector<2x64xbf16>
    %229 = arith.extf %228 : vector<2x64xbf16> to vector<2x64xf32>
    %230 = arith.truncf %220 : vector<2x16xf32> to vector<2x16xbf16>
    %cst_58 = arith.constant dense<0.000000e+00> : vector<2x64xf32>
    %231 = tpu.matmul %230, %0, %cst_58 {dimension_numbers = #tpu.dot_dimension_numbers<[1], [0], [0], [1], [0, 0, 1, 1], [], []>} : vector<2x16xbf16>, vector<16x64xbf16>, vector<2x64xf32> -> vector<2x64xf32>
    %232 = arith.addf %229, %231 : vector<2x64xf32>
    %233 = vector.extract_strided_slice %232 {offsets = [0, 0], sizes = [2, 16], strides = [1, 1]} : vector<2x64xf32> to vector<2x16xf32>
    %234 = arith.negf %233 : vector<2x16xf32>
    %235 = math.exp %234 : vector<2x16xf32>
    %cst_59 = arith.constant 1.000000e+00 : f32
    %236 = vector.broadcast %cst_59 : f32 to vector<2x16xf32>
    %237 = arith.addf %236, %235 : vector<2x16xf32>
    %238 = arith.divf %236, %237 : vector<2x16xf32>
    %239 = vector.extract_strided_slice %232 {offsets = [0, 16], sizes = [2, 16], strides = [1, 1]} : vector<2x64xf32> to vector<2x16xf32>
    %240 = arith.negf %239 : vector<2x16xf32>
    %241 = math.exp %240 : vector<2x16xf32>
    %cst_60 = arith.constant 1.000000e+00 : f32
    %242 = vector.broadcast %cst_60 : f32 to vector<2x16xf32>
    %243 = arith.addf %242, %241 : vector<2x16xf32>
    %244 = arith.divf %242, %243 : vector<2x16xf32>
    %245 = vector.extract_strided_slice %232 {offsets = [0, 32], sizes = [2, 16], strides = [1, 1]} : vector<2x64xf32> to vector<2x16xf32>
    %246 = math.tanh %245 : vector<2x16xf32>
    %247 = vector.extract_strided_slice %232 {offsets = [0, 48], sizes = [2, 16], strides = [1, 1]} : vector<2x64xf32> to vector<2x16xf32>
    %248 = arith.negf %247 : vector<2x16xf32>
    %249 = math.exp %248 : vector<2x16xf32>
    %cst_61 = arith.constant 1.000000e+00 : f32
    %250 = vector.broadcast %cst_61 : f32 to vector<2x16xf32>
    %251 = arith.addf %250, %249 : vector<2x16xf32>
    %252 = arith.divf %250, %251 : vector<2x16xf32>
    %253 = arith.mulf %244, %218 : vector<2x16xf32>
    %254 = arith.mulf %238, %246 : vector<2x16xf32>
    %255 = arith.addf %253, %254 : vector<2x16xf32>
    %256 = math.tanh %255 : vector<2x16xf32>
    %257 = arith.mulf %252, %256 : vector<2x16xf32>
    %258 = vector.shape_cast %257 : vector<2x16xf32> to vector<2x1x16xf32>
    %259 = arith.truncf %258 : vector<2x1x16xf32> to vector<2x1x16xbf16>
    %c0_62 = arith.constant 0 : index
    %260 = arith.index_cast %225 : i32 to index
    %c0_63 = arith.constant 0 : index
    %261 = vector.load %arg3[%c0_62, %260, %c0_63] : memref<2x8x16xbf16, #tpu.memory_space<vmem>>, vector<2x1x16xbf16>
    tpu.vector_store %arg3[%c0_62, %260, %c0_63], %259 {strides = array<i32>} : memref<2x8x16xbf16, #tpu.memory_space<vmem>>, vector<2x1x16xbf16>,
    %c7_i32_64 = arith.constant 7 : i32
    %c7_i32_65 = arith.constant 7 : i32
    %262 = arith.subi %c7_i32_65, %c7_i32_64 : i32
    %c0_66 = arith.constant 0 : index
    %263 = arith.index_cast %262 : i32 to index
    %c0_67 = arith.constant 0 : index
    %264 = vector.load %arg1[%c0_66, %263, %c0_67] : memref<2x8x64xbf16, #tpu.memory_space<vmem>>, vector<2x1x64xbf16>
    %265 = vector.shape_cast %264 : vector<2x1x64xbf16> to vector<2x64xbf16>
    %266 = arith.extf %265 : vector<2x64xbf16> to vector<2x64xf32>
    %267 = arith.truncf %257 : vector<2x16xf32> to vector<2x16xbf16>
    %cst_68 = arith.constant dense<0.000000e+00> : vector<2x64xf32>
    %268 = tpu.matmul %267, %0, %cst_68 {dimension_numbers = #tpu.dot_dimension_numbers<[1], [0], [0], [1], [0, 0, 1, 1], [], []>} : vector<2x16xbf16>, vector<16x64xbf16>, vector<2x64xf32> -> vector<2x64xf32>
    %269 = arith.addf %266, %268 : vector<2x64xf32>
    %270 = vector.extract_strided_slice %269 {offsets = [0, 0], sizes = [2, 16], strides = [1, 1]} : vector<2x64xf32> to vector<2x16xf32>
    %271 = arith.negf %270 : vector<2x16xf32>
    %272 = math.exp %271 : vector<2x16xf32>
    %cst_69 = arith.constant 1.000000e+00 : f32
    %273 = vector.broadcast %cst_69 : f32 to vector<2x16xf32>
    %274 = arith.addf %273, %272 : vector<2x16xf32>
    %275 = arith.divf %273, %274 : vector<2x16xf32>
    %276 = vector.extract_strided_slice %269 {offsets = [0, 16], sizes = [2, 16], strides = [1, 1]} : vector<2x64xf32> to vector<2x16xf32>
    %277 = arith.negf %276 : vector<2x16xf32>
    %278 = math.exp %277 : vector<2x16xf32>
    %cst_70 = arith.constant 1.000000e+00 : f32
    %279 = vector.broadcast %cst_70 : f32 to vector<2x16xf32>
    %280 = arith.addf %279, %278 : vector<2x16xf32>
    %281 = arith.divf %279, %280 : vector<2x16xf32>
    %282 = vector.extract_strided_slice %269 {offsets = [0, 32], sizes = [2, 16], strides = [1, 1]} : vector<2x64xf32> to vector<2x16xf32>
    %283 = math.tanh %282 : vector<2x16xf32>
    %284 = vector.extract_strided_slice %269 {offsets = [0, 48], sizes = [2, 16], strides = [1, 1]} : vector<2x64xf32> to vector<2x16xf32>
    %285 = arith.negf %284 : vector<2x16xf32>
    %286 = math.exp %285 : vector<2x16xf32>
    %cst_71 = arith.constant 1.000000e+00 : f32
    %287 = vector.broadcast %cst_71 : f32 to vector<2x16xf32>
    %288 = arith.addf %287, %286 : vector<2x16xf32>
    %289 = arith.divf %287, %288 : vector<2x16xf32>
    %290 = arith.mulf %281, %255 : vector<2x16xf32>
    %291 = arith.mulf %275, %283 : vector<2x16xf32>
    %292 = arith.addf %290, %291 : vector<2x16xf32>
    %293 = math.tanh %292 : vector<2x16xf32>
    %294 = arith.mulf %289, %293 : vector<2x16xf32>
    %295 = vector.shape_cast %294 : vector<2x16xf32> to vector<2x1x16xf32>
    %296 = arith.truncf %295 : vector<2x1x16xf32> to vector<2x1x16xbf16>
    %c0_72 = arith.constant 0 : index
    %297 = arith.index_cast %262 : i32 to index
    %c0_73 = arith.constant 0 : index
    %298 = vector.load %arg3[%c0_72, %297, %c0_73] : memref<2x8x16xbf16, #tpu.memory_space<vmem>>, vector<2x1x16xbf16>
    tpu.vector_store %arg3[%c0_72, %297, %c0_73], %296 {strides = array<i32>} : memref<2x8x16xbf16, #tpu.memory_space<vmem>>, vector<2x1x16xbf16>,
    %c8_i32 = arith.constant 8 : i32
    return
  }
  func.func @transform_0(%arg0: i32) -> (i32, i32, i32) {
    %c0_i32 = arith.constant 0 : i32
    %c0_i32_0 = arith.constant 0 : i32
    %c0_i32_1 = arith.constant 0 : i32
    %c0_i32_2 = arith.constant 0 : i32
    return %c0_i32, %c0_i32_0, %c0_i32_1 : i32, i32, i32
  }
  func.func @transform_1(%arg0: i32) -> (i32, i32) {
    %c0_i32 = arith.constant 0 : i32
    %c0_i32_0 = arith.constant 0 : i32
    %c0_i32_1 = arith.constant 0 : i32
    return %c0_i32, %c0_i32_0 : i32, i32
  }
  func.func @transform_2(%arg0: i32) -> (i32, i32, i32) {
    %c0_i32 = arith.constant 0 : i32
    %c0_i32_0 = arith.constant 0 : i32
    %c0_i32_1 = arith.constant 0 : i32
    %c0_i32_2 = arith.constant 0 : i32
    return %c0_i32, %c0_i32_0, %c0_i32_1 : i32, i32, i32
  }
}

module attributes {stable_mosaic.version = 11 : i64} {
  func.func @_lstm_dir_kernel(%arg0: i32, %arg1: memref<2x8x64xbf16, #tpu.memory_space<vmem>>, %arg2: memref<16x64xbf16, #tpu.memory_space<vmem>>, %arg3: memref<2x8x16xbf16, #tpu.memory_space<vmem>>) attributes {dimension_semantics = [#tpu.dimension_semantics<arbitrary>], iteration_bounds = array<i64: 1>, scalar_prefetch = 0 : i64, scratch_operands = 0 : i64, tpu.core_type = #tpu.core_type<tc>, window_params = [{pipeline_mode = #tpu.pipeline_mode<synchronous>, transform_indices = @transform_0, window_bounds = array<i64: 2, 8, 64>}, {pipeline_mode = #tpu.pipeline_mode<synchronous>, transform_indices = @transform_1, window_bounds = array<i64: 16, 64>}, {pipeline_mode = #tpu.pipeline_mode<synchronous>, transform_indices = @transform_2, window_bounds = array<i64: 2, 8, 16>}]} {
    %c0 = arith.constant 0 : index
    %c0_0 = arith.constant 0 : index
    %0 = vector.load %arg2[%c0, %c0_0] : memref<16x64xbf16, #tpu.memory_space<vmem>>, vector<16x64xbf16>
    %cst = arith.constant 0.000000e+00 : f32
    %1 = vector.broadcast %cst : f32 to vector<2x16xf32>
    %cst_1 = arith.constant 0.000000e+00 : f32
    %2 = vector.broadcast %cst_1 : f32 to vector<2x16xf32>
    %c0_i32 = arith.constant 0 : i32
    %c0_2 = arith.constant 0 : index
    %3 = arith.index_cast %c0_i32 : i32 to index
    %c0_3 = arith.constant 0 : index
    %4 = vector.load %arg1[%c0_2, %3, %c0_3] : memref<2x8x64xbf16, #tpu.memory_space<vmem>>, vector<2x1x64xbf16>
    %5 = vector.shape_cast %4 : vector<2x1x64xbf16> to vector<2x64xbf16>
    %6 = arith.extf %5 : vector<2x64xbf16> to vector<2x64xf32>
    %7 = arith.truncf %1 : vector<2x16xf32> to vector<2x16xbf16>
    %cst_4 = arith.constant dense<0.000000e+00> : vector<2x64xf32>
    %8 = tpu.matmul %7, %0, %cst_4 {dimension_numbers = #tpu.dot_dimension_numbers<[1], [0], [0], [1], [0, 0, 1, 1], [], []>} : vector<2x16xbf16>, vector<16x64xbf16>, vector<2x64xf32> -> vector<2x64xf32>
    %9 = arith.addf %6, %8 : vector<2x64xf32>
    %10 = vector.extract_strided_slice %9 {offsets = [0, 0], sizes = [2, 16], strides = [1, 1]} : vector<2x64xf32> to vector<2x16xf32>
    %11 = arith.negf %10 : vector<2x16xf32>
    %12 = math.exp %11 : vector<2x16xf32>
    %cst_5 = arith.constant 1.000000e+00 : f32
    %13 = vector.broadcast %cst_5 : f32 to vector<2x16xf32>
    %14 = arith.addf %13, %12 : vector<2x16xf32>
    %15 = arith.divf %13, %14 : vector<2x16xf32>
    %16 = vector.extract_strided_slice %9 {offsets = [0, 16], sizes = [2, 16], strides = [1, 1]} : vector<2x64xf32> to vector<2x16xf32>
    %17 = arith.negf %16 : vector<2x16xf32>
    %18 = math.exp %17 : vector<2x16xf32>
    %cst_6 = arith.constant 1.000000e+00 : f32
    %19 = vector.broadcast %cst_6 : f32 to vector<2x16xf32>
    %20 = arith.addf %19, %18 : vector<2x16xf32>
    %21 = arith.divf %19, %20 : vector<2x16xf32>
    %22 = vector.extract_strided_slice %9 {offsets = [0, 32], sizes = [2, 16], strides = [1, 1]} : vector<2x64xf32> to vector<2x16xf32>
    %23 = math.tanh %22 : vector<2x16xf32>
    %24 = vector.extract_strided_slice %9 {offsets = [0, 48], sizes = [2, 16], strides = [1, 1]} : vector<2x64xf32> to vector<2x16xf32>
    %25 = arith.negf %24 : vector<2x16xf32>
    %26 = math.exp %25 : vector<2x16xf32>
    %cst_7 = arith.constant 1.000000e+00 : f32
    %27 = vector.broadcast %cst_7 : f32 to vector<2x16xf32>
    %28 = arith.addf %27, %26 : vector<2x16xf32>
    %29 = arith.divf %27, %28 : vector<2x16xf32>
    %30 = arith.mulf %21, %2 : vector<2x16xf32>
    %31 = arith.mulf %15, %23 : vector<2x16xf32>
    %32 = arith.addf %30, %31 : vector<2x16xf32>
    %33 = math.tanh %32 : vector<2x16xf32>
    %34 = arith.mulf %29, %33 : vector<2x16xf32>
    %35 = vector.shape_cast %34 : vector<2x16xf32> to vector<2x1x16xf32>
    %36 = arith.truncf %35 : vector<2x1x16xf32> to vector<2x1x16xbf16>
    %c0_8 = arith.constant 0 : index
    %37 = arith.index_cast %c0_i32 : i32 to index
    %c0_9 = arith.constant 0 : index
    %38 = vector.load %arg3[%c0_8, %37, %c0_9] : memref<2x8x16xbf16, #tpu.memory_space<vmem>>, vector<2x1x16xbf16>
    tpu.vector_store %arg3[%c0_8, %37, %c0_9], %36 {strides = array<i32>} : memref<2x8x16xbf16, #tpu.memory_space<vmem>>, vector<2x1x16xbf16>,
    %c1_i32 = arith.constant 1 : i32
    %c0_10 = arith.constant 0 : index
    %39 = arith.index_cast %c1_i32 : i32 to index
    %c0_11 = arith.constant 0 : index
    %40 = vector.load %arg1[%c0_10, %39, %c0_11] : memref<2x8x64xbf16, #tpu.memory_space<vmem>>, vector<2x1x64xbf16>
    %41 = vector.shape_cast %40 : vector<2x1x64xbf16> to vector<2x64xbf16>
    %42 = arith.extf %41 : vector<2x64xbf16> to vector<2x64xf32>
    %43 = arith.truncf %34 : vector<2x16xf32> to vector<2x16xbf16>
    %cst_12 = arith.constant dense<0.000000e+00> : vector<2x64xf32>
    %44 = tpu.matmul %43, %0, %cst_12 {dimension_numbers = #tpu.dot_dimension_numbers<[1], [0], [0], [1], [0, 0, 1, 1], [], []>} : vector<2x16xbf16>, vector<16x64xbf16>, vector<2x64xf32> -> vector<2x64xf32>
    %45 = arith.addf %42, %44 : vector<2x64xf32>
    %46 = vector.extract_strided_slice %45 {offsets = [0, 0], sizes = [2, 16], strides = [1, 1]} : vector<2x64xf32> to vector<2x16xf32>
    %47 = arith.negf %46 : vector<2x16xf32>
    %48 = math.exp %47 : vector<2x16xf32>
    %cst_13 = arith.constant 1.000000e+00 : f32
    %49 = vector.broadcast %cst_13 : f32 to vector<2x16xf32>
    %50 = arith.addf %49, %48 : vector<2x16xf32>
    %51 = arith.divf %49, %50 : vector<2x16xf32>
    %52 = vector.extract_strided_slice %45 {offsets = [0, 16], sizes = [2, 16], strides = [1, 1]} : vector<2x64xf32> to vector<2x16xf32>
    %53 = arith.negf %52 : vector<2x16xf32>
    %54 = math.exp %53 : vector<2x16xf32>
    %cst_14 = arith.constant 1.000000e+00 : f32
    %55 = vector.broadcast %cst_14 : f32 to vector<2x16xf32>
    %56 = arith.addf %55, %54 : vector<2x16xf32>
    %57 = arith.divf %55, %56 : vector<2x16xf32>
    %58 = vector.extract_strided_slice %45 {offsets = [0, 32], sizes = [2, 16], strides = [1, 1]} : vector<2x64xf32> to vector<2x16xf32>
    %59 = math.tanh %58 : vector<2x16xf32>
    %60 = vector.extract_strided_slice %45 {offsets = [0, 48], sizes = [2, 16], strides = [1, 1]} : vector<2x64xf32> to vector<2x16xf32>
    %61 = arith.negf %60 : vector<2x16xf32>
    %62 = math.exp %61 : vector<2x16xf32>
    %cst_15 = arith.constant 1.000000e+00 : f32
    %63 = vector.broadcast %cst_15 : f32 to vector<2x16xf32>
    %64 = arith.addf %63, %62 : vector<2x16xf32>
    %65 = arith.divf %63, %64 : vector<2x16xf32>
    %66 = arith.mulf %57, %32 : vector<2x16xf32>
    %67 = arith.mulf %51, %59 : vector<2x16xf32>
    %68 = arith.addf %66, %67 : vector<2x16xf32>
    %69 = math.tanh %68 : vector<2x16xf32>
    %70 = arith.mulf %65, %69 : vector<2x16xf32>
    %71 = vector.shape_cast %70 : vector<2x16xf32> to vector<2x1x16xf32>
    %72 = arith.truncf %71 : vector<2x1x16xf32> to vector<2x1x16xbf16>
    %c0_16 = arith.constant 0 : index
    %73 = arith.index_cast %c1_i32 : i32 to index
    %c0_17 = arith.constant 0 : index
    %74 = vector.load %arg3[%c0_16, %73, %c0_17] : memref<2x8x16xbf16, #tpu.memory_space<vmem>>, vector<2x1x16xbf16>
    tpu.vector_store %arg3[%c0_16, %73, %c0_17], %72 {strides = array<i32>} : memref<2x8x16xbf16, #tpu.memory_space<vmem>>, vector<2x1x16xbf16>,
    %c2_i32 = arith.constant 2 : i32
    %c0_18 = arith.constant 0 : index
    %75 = arith.index_cast %c2_i32 : i32 to index
    %c0_19 = arith.constant 0 : index
    %76 = vector.load %arg1[%c0_18, %75, %c0_19] : memref<2x8x64xbf16, #tpu.memory_space<vmem>>, vector<2x1x64xbf16>
    %77 = vector.shape_cast %76 : vector<2x1x64xbf16> to vector<2x64xbf16>
    %78 = arith.extf %77 : vector<2x64xbf16> to vector<2x64xf32>
    %79 = arith.truncf %70 : vector<2x16xf32> to vector<2x16xbf16>
    %cst_20 = arith.constant dense<0.000000e+00> : vector<2x64xf32>
    %80 = tpu.matmul %79, %0, %cst_20 {dimension_numbers = #tpu.dot_dimension_numbers<[1], [0], [0], [1], [0, 0, 1, 1], [], []>} : vector<2x16xbf16>, vector<16x64xbf16>, vector<2x64xf32> -> vector<2x64xf32>
    %81 = arith.addf %78, %80 : vector<2x64xf32>
    %82 = vector.extract_strided_slice %81 {offsets = [0, 0], sizes = [2, 16], strides = [1, 1]} : vector<2x64xf32> to vector<2x16xf32>
    %83 = arith.negf %82 : vector<2x16xf32>
    %84 = math.exp %83 : vector<2x16xf32>
    %cst_21 = arith.constant 1.000000e+00 : f32
    %85 = vector.broadcast %cst_21 : f32 to vector<2x16xf32>
    %86 = arith.addf %85, %84 : vector<2x16xf32>
    %87 = arith.divf %85, %86 : vector<2x16xf32>
    %88 = vector.extract_strided_slice %81 {offsets = [0, 16], sizes = [2, 16], strides = [1, 1]} : vector<2x64xf32> to vector<2x16xf32>
    %89 = arith.negf %88 : vector<2x16xf32>
    %90 = math.exp %89 : vector<2x16xf32>
    %cst_22 = arith.constant 1.000000e+00 : f32
    %91 = vector.broadcast %cst_22 : f32 to vector<2x16xf32>
    %92 = arith.addf %91, %90 : vector<2x16xf32>
    %93 = arith.divf %91, %92 : vector<2x16xf32>
    %94 = vector.extract_strided_slice %81 {offsets = [0, 32], sizes = [2, 16], strides = [1, 1]} : vector<2x64xf32> to vector<2x16xf32>
    %95 = math.tanh %94 : vector<2x16xf32>
    %96 = vector.extract_strided_slice %81 {offsets = [0, 48], sizes = [2, 16], strides = [1, 1]} : vector<2x64xf32> to vector<2x16xf32>
    %97 = arith.negf %96 : vector<2x16xf32>
    %98 = math.exp %97 : vector<2x16xf32>
    %cst_23 = arith.constant 1.000000e+00 : f32
    %99 = vector.broadcast %cst_23 : f32 to vector<2x16xf32>
    %100 = arith.addf %99, %98 : vector<2x16xf32>
    %101 = arith.divf %99, %100 : vector<2x16xf32>
    %102 = arith.mulf %93, %68 : vector<2x16xf32>
    %103 = arith.mulf %87, %95 : vector<2x16xf32>
    %104 = arith.addf %102, %103 : vector<2x16xf32>
    %105 = math.tanh %104 : vector<2x16xf32>
    %106 = arith.mulf %101, %105 : vector<2x16xf32>
    %107 = vector.shape_cast %106 : vector<2x16xf32> to vector<2x1x16xf32>
    %108 = arith.truncf %107 : vector<2x1x16xf32> to vector<2x1x16xbf16>
    %c0_24 = arith.constant 0 : index
    %109 = arith.index_cast %c2_i32 : i32 to index
    %c0_25 = arith.constant 0 : index
    %110 = vector.load %arg3[%c0_24, %109, %c0_25] : memref<2x8x16xbf16, #tpu.memory_space<vmem>>, vector<2x1x16xbf16>
    tpu.vector_store %arg3[%c0_24, %109, %c0_25], %108 {strides = array<i32>} : memref<2x8x16xbf16, #tpu.memory_space<vmem>>, vector<2x1x16xbf16>,
    %c3_i32 = arith.constant 3 : i32
    %c0_26 = arith.constant 0 : index
    %111 = arith.index_cast %c3_i32 : i32 to index
    %c0_27 = arith.constant 0 : index
    %112 = vector.load %arg1[%c0_26, %111, %c0_27] : memref<2x8x64xbf16, #tpu.memory_space<vmem>>, vector<2x1x64xbf16>
    %113 = vector.shape_cast %112 : vector<2x1x64xbf16> to vector<2x64xbf16>
    %114 = arith.extf %113 : vector<2x64xbf16> to vector<2x64xf32>
    %115 = arith.truncf %106 : vector<2x16xf32> to vector<2x16xbf16>
    %cst_28 = arith.constant dense<0.000000e+00> : vector<2x64xf32>
    %116 = tpu.matmul %115, %0, %cst_28 {dimension_numbers = #tpu.dot_dimension_numbers<[1], [0], [0], [1], [0, 0, 1, 1], [], []>} : vector<2x16xbf16>, vector<16x64xbf16>, vector<2x64xf32> -> vector<2x64xf32>
    %117 = arith.addf %114, %116 : vector<2x64xf32>
    %118 = vector.extract_strided_slice %117 {offsets = [0, 0], sizes = [2, 16], strides = [1, 1]} : vector<2x64xf32> to vector<2x16xf32>
    %119 = arith.negf %118 : vector<2x16xf32>
    %120 = math.exp %119 : vector<2x16xf32>
    %cst_29 = arith.constant 1.000000e+00 : f32
    %121 = vector.broadcast %cst_29 : f32 to vector<2x16xf32>
    %122 = arith.addf %121, %120 : vector<2x16xf32>
    %123 = arith.divf %121, %122 : vector<2x16xf32>
    %124 = vector.extract_strided_slice %117 {offsets = [0, 16], sizes = [2, 16], strides = [1, 1]} : vector<2x64xf32> to vector<2x16xf32>
    %125 = arith.negf %124 : vector<2x16xf32>
    %126 = math.exp %125 : vector<2x16xf32>
    %cst_30 = arith.constant 1.000000e+00 : f32
    %127 = vector.broadcast %cst_30 : f32 to vector<2x16xf32>
    %128 = arith.addf %127, %126 : vector<2x16xf32>
    %129 = arith.divf %127, %128 : vector<2x16xf32>
    %130 = vector.extract_strided_slice %117 {offsets = [0, 32], sizes = [2, 16], strides = [1, 1]} : vector<2x64xf32> to vector<2x16xf32>
    %131 = math.tanh %130 : vector<2x16xf32>
    %132 = vector.extract_strided_slice %117 {offsets = [0, 48], sizes = [2, 16], strides = [1, 1]} : vector<2x64xf32> to vector<2x16xf32>
    %133 = arith.negf %132 : vector<2x16xf32>
    %134 = math.exp %133 : vector<2x16xf32>
    %cst_31 = arith.constant 1.000000e+00 : f32
    %135 = vector.broadcast %cst_31 : f32 to vector<2x16xf32>
    %136 = arith.addf %135, %134 : vector<2x16xf32>
    %137 = arith.divf %135, %136 : vector<2x16xf32>
    %138 = arith.mulf %129, %104 : vector<2x16xf32>
    %139 = arith.mulf %123, %131 : vector<2x16xf32>
    %140 = arith.addf %138, %139 : vector<2x16xf32>
    %141 = math.tanh %140 : vector<2x16xf32>
    %142 = arith.mulf %137, %141 : vector<2x16xf32>
    %143 = vector.shape_cast %142 : vector<2x16xf32> to vector<2x1x16xf32>
    %144 = arith.truncf %143 : vector<2x1x16xf32> to vector<2x1x16xbf16>
    %c0_32 = arith.constant 0 : index
    %145 = arith.index_cast %c3_i32 : i32 to index
    %c0_33 = arith.constant 0 : index
    %146 = vector.load %arg3[%c0_32, %145, %c0_33] : memref<2x8x16xbf16, #tpu.memory_space<vmem>>, vector<2x1x16xbf16>
    tpu.vector_store %arg3[%c0_32, %145, %c0_33], %144 {strides = array<i32>} : memref<2x8x16xbf16, #tpu.memory_space<vmem>>, vector<2x1x16xbf16>,
    %c4_i32 = arith.constant 4 : i32
    %c0_34 = arith.constant 0 : index
    %147 = arith.index_cast %c4_i32 : i32 to index
    %c0_35 = arith.constant 0 : index
    %148 = vector.load %arg1[%c0_34, %147, %c0_35] : memref<2x8x64xbf16, #tpu.memory_space<vmem>>, vector<2x1x64xbf16>
    %149 = vector.shape_cast %148 : vector<2x1x64xbf16> to vector<2x64xbf16>
    %150 = arith.extf %149 : vector<2x64xbf16> to vector<2x64xf32>
    %151 = arith.truncf %142 : vector<2x16xf32> to vector<2x16xbf16>
    %cst_36 = arith.constant dense<0.000000e+00> : vector<2x64xf32>
    %152 = tpu.matmul %151, %0, %cst_36 {dimension_numbers = #tpu.dot_dimension_numbers<[1], [0], [0], [1], [0, 0, 1, 1], [], []>} : vector<2x16xbf16>, vector<16x64xbf16>, vector<2x64xf32> -> vector<2x64xf32>
    %153 = arith.addf %150, %152 : vector<2x64xf32>
    %154 = vector.extract_strided_slice %153 {offsets = [0, 0], sizes = [2, 16], strides = [1, 1]} : vector<2x64xf32> to vector<2x16xf32>
    %155 = arith.negf %154 : vector<2x16xf32>
    %156 = math.exp %155 : vector<2x16xf32>
    %cst_37 = arith.constant 1.000000e+00 : f32
    %157 = vector.broadcast %cst_37 : f32 to vector<2x16xf32>
    %158 = arith.addf %157, %156 : vector<2x16xf32>
    %159 = arith.divf %157, %158 : vector<2x16xf32>
    %160 = vector.extract_strided_slice %153 {offsets = [0, 16], sizes = [2, 16], strides = [1, 1]} : vector<2x64xf32> to vector<2x16xf32>
    %161 = arith.negf %160 : vector<2x16xf32>
    %162 = math.exp %161 : vector<2x16xf32>
    %cst_38 = arith.constant 1.000000e+00 : f32
    %163 = vector.broadcast %cst_38 : f32 to vector<2x16xf32>
    %164 = arith.addf %163, %162 : vector<2x16xf32>
    %165 = arith.divf %163, %164 : vector<2x16xf32>
    %166 = vector.extract_strided_slice %153 {offsets = [0, 32], sizes = [2, 16], strides = [1, 1]} : vector<2x64xf32> to vector<2x16xf32>
    %167 = math.tanh %166 : vector<2x16xf32>
    %168 = vector.extract_strided_slice %153 {offsets = [0, 48], sizes = [2, 16], strides = [1, 1]} : vector<2x64xf32> to vector<2x16xf32>
    %169 = arith.negf %168 : vector<2x16xf32>
    %170 = math.exp %169 : vector<2x16xf32>
    %cst_39 = arith.constant 1.000000e+00 : f32
    %171 = vector.broadcast %cst_39 : f32 to vector<2x16xf32>
    %172 = arith.addf %171, %170 : vector<2x16xf32>
    %173 = arith.divf %171, %172 : vector<2x16xf32>
    %174 = arith.mulf %165, %140 : vector<2x16xf32>
    %175 = arith.mulf %159, %167 : vector<2x16xf32>
    %176 = arith.addf %174, %175 : vector<2x16xf32>
    %177 = math.tanh %176 : vector<2x16xf32>
    %178 = arith.mulf %173, %177 : vector<2x16xf32>
    %179 = vector.shape_cast %178 : vector<2x16xf32> to vector<2x1x16xf32>
    %180 = arith.truncf %179 : vector<2x1x16xf32> to vector<2x1x16xbf16>
    %c0_40 = arith.constant 0 : index
    %181 = arith.index_cast %c4_i32 : i32 to index
    %c0_41 = arith.constant 0 : index
    %182 = vector.load %arg3[%c0_40, %181, %c0_41] : memref<2x8x16xbf16, #tpu.memory_space<vmem>>, vector<2x1x16xbf16>
    tpu.vector_store %arg3[%c0_40, %181, %c0_41], %180 {strides = array<i32>} : memref<2x8x16xbf16, #tpu.memory_space<vmem>>, vector<2x1x16xbf16>,
    %c5_i32 = arith.constant 5 : i32
    %c0_42 = arith.constant 0 : index
    %183 = arith.index_cast %c5_i32 : i32 to index
    %c0_43 = arith.constant 0 : index
    %184 = vector.load %arg1[%c0_42, %183, %c0_43] : memref<2x8x64xbf16, #tpu.memory_space<vmem>>, vector<2x1x64xbf16>
    %185 = vector.shape_cast %184 : vector<2x1x64xbf16> to vector<2x64xbf16>
    %186 = arith.extf %185 : vector<2x64xbf16> to vector<2x64xf32>
    %187 = arith.truncf %178 : vector<2x16xf32> to vector<2x16xbf16>
    %cst_44 = arith.constant dense<0.000000e+00> : vector<2x64xf32>
    %188 = tpu.matmul %187, %0, %cst_44 {dimension_numbers = #tpu.dot_dimension_numbers<[1], [0], [0], [1], [0, 0, 1, 1], [], []>} : vector<2x16xbf16>, vector<16x64xbf16>, vector<2x64xf32> -> vector<2x64xf32>
    %189 = arith.addf %186, %188 : vector<2x64xf32>
    %190 = vector.extract_strided_slice %189 {offsets = [0, 0], sizes = [2, 16], strides = [1, 1]} : vector<2x64xf32> to vector<2x16xf32>
    %191 = arith.negf %190 : vector<2x16xf32>
    %192 = math.exp %191 : vector<2x16xf32>
    %cst_45 = arith.constant 1.000000e+00 : f32
    %193 = vector.broadcast %cst_45 : f32 to vector<2x16xf32>
    %194 = arith.addf %193, %192 : vector<2x16xf32>
    %195 = arith.divf %193, %194 : vector<2x16xf32>
    %196 = vector.extract_strided_slice %189 {offsets = [0, 16], sizes = [2, 16], strides = [1, 1]} : vector<2x64xf32> to vector<2x16xf32>
    %197 = arith.negf %196 : vector<2x16xf32>
    %198 = math.exp %197 : vector<2x16xf32>
    %cst_46 = arith.constant 1.000000e+00 : f32
    %199 = vector.broadcast %cst_46 : f32 to vector<2x16xf32>
    %200 = arith.addf %199, %198 : vector<2x16xf32>
    %201 = arith.divf %199, %200 : vector<2x16xf32>
    %202 = vector.extract_strided_slice %189 {offsets = [0, 32], sizes = [2, 16], strides = [1, 1]} : vector<2x64xf32> to vector<2x16xf32>
    %203 = math.tanh %202 : vector<2x16xf32>
    %204 = vector.extract_strided_slice %189 {offsets = [0, 48], sizes = [2, 16], strides = [1, 1]} : vector<2x64xf32> to vector<2x16xf32>
    %205 = arith.negf %204 : vector<2x16xf32>
    %206 = math.exp %205 : vector<2x16xf32>
    %cst_47 = arith.constant 1.000000e+00 : f32
    %207 = vector.broadcast %cst_47 : f32 to vector<2x16xf32>
    %208 = arith.addf %207, %206 : vector<2x16xf32>
    %209 = arith.divf %207, %208 : vector<2x16xf32>
    %210 = arith.mulf %201, %176 : vector<2x16xf32>
    %211 = arith.mulf %195, %203 : vector<2x16xf32>
    %212 = arith.addf %210, %211 : vector<2x16xf32>
    %213 = math.tanh %212 : vector<2x16xf32>
    %214 = arith.mulf %209, %213 : vector<2x16xf32>
    %215 = vector.shape_cast %214 : vector<2x16xf32> to vector<2x1x16xf32>
    %216 = arith.truncf %215 : vector<2x1x16xf32> to vector<2x1x16xbf16>
    %c0_48 = arith.constant 0 : index
    %217 = arith.index_cast %c5_i32 : i32 to index
    %c0_49 = arith.constant 0 : index
    %218 = vector.load %arg3[%c0_48, %217, %c0_49] : memref<2x8x16xbf16, #tpu.memory_space<vmem>>, vector<2x1x16xbf16>
    tpu.vector_store %arg3[%c0_48, %217, %c0_49], %216 {strides = array<i32>} : memref<2x8x16xbf16, #tpu.memory_space<vmem>>, vector<2x1x16xbf16>,
    %c6_i32 = arith.constant 6 : i32
    %c0_50 = arith.constant 0 : index
    %219 = arith.index_cast %c6_i32 : i32 to index
    %c0_51 = arith.constant 0 : index
    %220 = vector.load %arg1[%c0_50, %219, %c0_51] : memref<2x8x64xbf16, #tpu.memory_space<vmem>>, vector<2x1x64xbf16>
    %221 = vector.shape_cast %220 : vector<2x1x64xbf16> to vector<2x64xbf16>
    %222 = arith.extf %221 : vector<2x64xbf16> to vector<2x64xf32>
    %223 = arith.truncf %214 : vector<2x16xf32> to vector<2x16xbf16>
    %cst_52 = arith.constant dense<0.000000e+00> : vector<2x64xf32>
    %224 = tpu.matmul %223, %0, %cst_52 {dimension_numbers = #tpu.dot_dimension_numbers<[1], [0], [0], [1], [0, 0, 1, 1], [], []>} : vector<2x16xbf16>, vector<16x64xbf16>, vector<2x64xf32> -> vector<2x64xf32>
    %225 = arith.addf %222, %224 : vector<2x64xf32>
    %226 = vector.extract_strided_slice %225 {offsets = [0, 0], sizes = [2, 16], strides = [1, 1]} : vector<2x64xf32> to vector<2x16xf32>
    %227 = arith.negf %226 : vector<2x16xf32>
    %228 = math.exp %227 : vector<2x16xf32>
    %cst_53 = arith.constant 1.000000e+00 : f32
    %229 = vector.broadcast %cst_53 : f32 to vector<2x16xf32>
    %230 = arith.addf %229, %228 : vector<2x16xf32>
    %231 = arith.divf %229, %230 : vector<2x16xf32>
    %232 = vector.extract_strided_slice %225 {offsets = [0, 16], sizes = [2, 16], strides = [1, 1]} : vector<2x64xf32> to vector<2x16xf32>
    %233 = arith.negf %232 : vector<2x16xf32>
    %234 = math.exp %233 : vector<2x16xf32>
    %cst_54 = arith.constant 1.000000e+00 : f32
    %235 = vector.broadcast %cst_54 : f32 to vector<2x16xf32>
    %236 = arith.addf %235, %234 : vector<2x16xf32>
    %237 = arith.divf %235, %236 : vector<2x16xf32>
    %238 = vector.extract_strided_slice %225 {offsets = [0, 32], sizes = [2, 16], strides = [1, 1]} : vector<2x64xf32> to vector<2x16xf32>
    %239 = math.tanh %238 : vector<2x16xf32>
    %240 = vector.extract_strided_slice %225 {offsets = [0, 48], sizes = [2, 16], strides = [1, 1]} : vector<2x64xf32> to vector<2x16xf32>
    %241 = arith.negf %240 : vector<2x16xf32>
    %242 = math.exp %241 : vector<2x16xf32>
    %cst_55 = arith.constant 1.000000e+00 : f32
    %243 = vector.broadcast %cst_55 : f32 to vector<2x16xf32>
    %244 = arith.addf %243, %242 : vector<2x16xf32>
    %245 = arith.divf %243, %244 : vector<2x16xf32>
    %246 = arith.mulf %237, %212 : vector<2x16xf32>
    %247 = arith.mulf %231, %239 : vector<2x16xf32>
    %248 = arith.addf %246, %247 : vector<2x16xf32>
    %249 = math.tanh %248 : vector<2x16xf32>
    %250 = arith.mulf %245, %249 : vector<2x16xf32>
    %251 = vector.shape_cast %250 : vector<2x16xf32> to vector<2x1x16xf32>
    %252 = arith.truncf %251 : vector<2x1x16xf32> to vector<2x1x16xbf16>
    %c0_56 = arith.constant 0 : index
    %253 = arith.index_cast %c6_i32 : i32 to index
    %c0_57 = arith.constant 0 : index
    %254 = vector.load %arg3[%c0_56, %253, %c0_57] : memref<2x8x16xbf16, #tpu.memory_space<vmem>>, vector<2x1x16xbf16>
    tpu.vector_store %arg3[%c0_56, %253, %c0_57], %252 {strides = array<i32>} : memref<2x8x16xbf16, #tpu.memory_space<vmem>>, vector<2x1x16xbf16>,
    %c7_i32 = arith.constant 7 : i32
    %c0_58 = arith.constant 0 : index
    %255 = arith.index_cast %c7_i32 : i32 to index
    %c0_59 = arith.constant 0 : index
    %256 = vector.load %arg1[%c0_58, %255, %c0_59] : memref<2x8x64xbf16, #tpu.memory_space<vmem>>, vector<2x1x64xbf16>
    %257 = vector.shape_cast %256 : vector<2x1x64xbf16> to vector<2x64xbf16>
    %258 = arith.extf %257 : vector<2x64xbf16> to vector<2x64xf32>
    %259 = arith.truncf %250 : vector<2x16xf32> to vector<2x16xbf16>
    %cst_60 = arith.constant dense<0.000000e+00> : vector<2x64xf32>
    %260 = tpu.matmul %259, %0, %cst_60 {dimension_numbers = #tpu.dot_dimension_numbers<[1], [0], [0], [1], [0, 0, 1, 1], [], []>} : vector<2x16xbf16>, vector<16x64xbf16>, vector<2x64xf32> -> vector<2x64xf32>
    %261 = arith.addf %258, %260 : vector<2x64xf32>
    %262 = vector.extract_strided_slice %261 {offsets = [0, 0], sizes = [2, 16], strides = [1, 1]} : vector<2x64xf32> to vector<2x16xf32>
    %263 = arith.negf %262 : vector<2x16xf32>
    %264 = math.exp %263 : vector<2x16xf32>
    %cst_61 = arith.constant 1.000000e+00 : f32
    %265 = vector.broadcast %cst_61 : f32 to vector<2x16xf32>
    %266 = arith.addf %265, %264 : vector<2x16xf32>
    %267 = arith.divf %265, %266 : vector<2x16xf32>
    %268 = vector.extract_strided_slice %261 {offsets = [0, 16], sizes = [2, 16], strides = [1, 1]} : vector<2x64xf32> to vector<2x16xf32>
    %269 = arith.negf %268 : vector<2x16xf32>
    %270 = math.exp %269 : vector<2x16xf32>
    %cst_62 = arith.constant 1.000000e+00 : f32
    %271 = vector.broadcast %cst_62 : f32 to vector<2x16xf32>
    %272 = arith.addf %271, %270 : vector<2x16xf32>
    %273 = arith.divf %271, %272 : vector<2x16xf32>
    %274 = vector.extract_strided_slice %261 {offsets = [0, 32], sizes = [2, 16], strides = [1, 1]} : vector<2x64xf32> to vector<2x16xf32>
    %275 = math.tanh %274 : vector<2x16xf32>
    %276 = vector.extract_strided_slice %261 {offsets = [0, 48], sizes = [2, 16], strides = [1, 1]} : vector<2x64xf32> to vector<2x16xf32>
    %277 = arith.negf %276 : vector<2x16xf32>
    %278 = math.exp %277 : vector<2x16xf32>
    %cst_63 = arith.constant 1.000000e+00 : f32
    %279 = vector.broadcast %cst_63 : f32 to vector<2x16xf32>
    %280 = arith.addf %279, %278 : vector<2x16xf32>
    %281 = arith.divf %279, %280 : vector<2x16xf32>
    %282 = arith.mulf %273, %248 : vector<2x16xf32>
    %283 = arith.mulf %267, %275 : vector<2x16xf32>
    %284 = arith.addf %282, %283 : vector<2x16xf32>
    %285 = math.tanh %284 : vector<2x16xf32>
    %286 = arith.mulf %281, %285 : vector<2x16xf32>
    %287 = vector.shape_cast %286 : vector<2x16xf32> to vector<2x1x16xf32>
    %288 = arith.truncf %287 : vector<2x1x16xf32> to vector<2x1x16xbf16>
    %c0_64 = arith.constant 0 : index
    %289 = arith.index_cast %c7_i32 : i32 to index
    %c0_65 = arith.constant 0 : index
    %290 = vector.load %arg3[%c0_64, %289, %c0_65] : memref<2x8x16xbf16, #tpu.memory_space<vmem>>, vector<2x1x16xbf16>
    tpu.vector_store %arg3[%c0_64, %289, %c0_65], %288 {strides = array<i32>} : memref<2x8x16xbf16, #tpu.memory_space<vmem>>, vector<2x1x16xbf16>,
    %c8_i32 = arith.constant 8 : i32
    return
  }
  func.func @transform_0(%arg0: i32) -> (i32, i32, i32) {
    %c0_i32 = arith.constant 0 : i32
    %c0_i32_0 = arith.constant 0 : i32
    %c0_i32_1 = arith.constant 0 : i32
    %c0_i32_2 = arith.constant 0 : i32
    return %c0_i32, %c0_i32_0, %c0_i32_1 : i32, i32, i32
  }
  func.func @transform_1(%arg0: i32) -> (i32, i32) {
    %c0_i32 = arith.constant 0 : i32
    %c0_i32_0 = arith.constant 0 : i32
    %c0_i32_1 = arith.constant 0 : i32
    return %c0_i32, %c0_i32_0 : i32, i32
  }
  func.func @transform_2(%arg0: i32) -> (i32, i32, i32) {
    %c0_i32 = arith.constant 0 : i32
    %c0_i32_0 = arith.constant 0 : i32
    %c0_i32_1 = arith.constant 0 : i32
    %c0_i32_2 = arith.constant 0 : i32
    return %c0_i32, %c0_i32_0, %c0_i32_1 : i32, i32, i32
  }
}

module attributes {stable_mosaic.version = 11 : i64} {
  func.func @_matmul_k1_kernel(%arg0: i32, %arg1: i32, %arg2: memref<16x32xbf16, #tpu.memory_space<vmem>>, %arg3: memref<32x128xbf16, #tpu.memory_space<vmem>>, %arg4: memref<1x128xf32, #tpu.memory_space<vmem>>, %arg5: memref<16x128xf32, #tpu.memory_space<vmem>>) attributes {dimension_semantics = [#tpu.dimension_semantics<parallel>, #tpu.dimension_semantics<parallel>], iteration_bounds = array<i64: 1, 1>, scalar_prefetch = 0 : i64, scratch_operands = 0 : i64, tpu.core_type = #tpu.core_type<tc>, window_params = [{transform_indices = @transform_0, window_bounds = array<i64: 16, 32>}, {transform_indices = @transform_1, window_bounds = array<i64: 32, 128>}, {transform_indices = @transform_2, window_bounds = array<i64: 1, 128>}, {transform_indices = @transform_3, window_bounds = array<i64: 16, 128>}]} {
    %c0 = arith.constant 0 : index
    %c0_0 = arith.constant 0 : index
    %0 = vector.load %arg2[%c0, %c0_0] : memref<16x32xbf16, #tpu.memory_space<vmem>>, vector<16x32xbf16>
    %c0_1 = arith.constant 0 : index
    %c0_2 = arith.constant 0 : index
    %1 = vector.load %arg3[%c0_1, %c0_2] : memref<32x128xbf16, #tpu.memory_space<vmem>>, vector<32x128xbf16>
    %cst = arith.constant dense<0.000000e+00> : vector<16x128xf32>
    %2 = tpu.matmul %0, %1, %cst {dimension_numbers = #tpu.dot_dimension_numbers<[1], [0], [0], [1], [0, 0, 1, 1], [], []>} : vector<16x32xbf16>, vector<32x128xbf16>, vector<16x128xf32> -> vector<16x128xf32>
    %c0_3 = arith.constant 0 : index
    %c0_4 = arith.constant 0 : index
    %3 = vector.load %arg4[%c0_3, %c0_4] : memref<1x128xf32, #tpu.memory_space<vmem>>, vector<1x128xf32>
    %4 = vector.broadcast %3 : vector<1x128xf32> to vector<16x128xf32>
    %5 = arith.addf %2, %4 : vector<16x128xf32>
    %c0_5 = arith.constant 0 : index
    %c0_6 = arith.constant 0 : index
    %6 = vector.load %arg5[%c0_5, %c0_6] : memref<16x128xf32, #tpu.memory_space<vmem>>, vector<16x128xf32>
    tpu.vector_store %arg5[%c0_5, %c0_6], %5 {strides = array<i32>} : memref<16x128xf32, #tpu.memory_space<vmem>>, vector<16x128xf32>,
    return
  }
  func.func @transform_0(%arg0: i32, %arg1: i32) -> (i32, i32) {
    %c0_i32 = arith.constant 0 : i32
    %c0_i32_0 = arith.constant 0 : i32
    return %arg0, %c0_i32 : i32, i32
  }
  func.func @transform_1(%arg0: i32, %arg1: i32) -> (i32, i32) {
    %c0_i32 = arith.constant 0 : i32
    %c0_i32_0 = arith.constant 0 : i32
    return %c0_i32, %arg1 : i32, i32
  }
  func.func @transform_2(%arg0: i32, %arg1: i32) -> (i32, i32) {
    %c0_i32 = arith.constant 0 : i32
    %c0_i32_0 = arith.constant 0 : i32
    return %c0_i32, %arg1 : i32, i32
  }
  func.func @transform_3(%arg0: i32, %arg1: i32) -> (i32, i32) {
    %c0_i32 = arith.constant 0 : i32
    return %arg0, %arg1 : i32, i32
  }
}

</mosaic_0001>

<bundles_post_ra>
// kernel: ner_forward.12
= control target key start
LH: loop header
LB: loop body
LE: loop exit
PB: predicated region body
PF: predicated region fallthrough
CT: control target
= control target key end

     0   :  { %vm42_vm0 = vcmask 261120   ;;  %vm62_vm1 = vcmask 781312   ;;  %s124_s1 = inlined_call_operand.vmem [shape: bf16[32,96], index: 1, kind: input, shape index: {}]   ;;  %s125_s2 = inlined_call_operand.vmem [shape: f32[1,96], index: 2, kind: input, shape index: {}]   ;;  %s126_s0 = inlined_call_operand.vmem [shape: bf16[16,32], index: 0, kind: input, shape index: {}]   ;;  %s127_s3 = inlined_call_operand.vmem [shape: bf16[16,96], index: 3, kind: output, shape index: {}]  }
   0x1   :  { %v84_v0 = vld [vmem:[%s124_s1 + $0x8] sm:$0xff]  ;;  %v83_v1 = vld [vmem:[%s124_s1] sm:$0xff] }
   0x2   :  { %52 = vmatpush.bf16.msra.mxu0 %v84_v0  ;;  %v82_v2 = vld [vmem:[%s126_s0] sm:$0xff] }
   0x3   :  { %v85_v3 = vld [vmem:[%s125_s2] ss:$0 sm:$0xff] }
   0x6   :  { %53 = vmatpush.bf16.msra.mxu0 %v83_v1 }
   0x9   :  { %81 = vmatmul.msk.bf16.vlgmr.msra.gmra.mxu0 %vm42_vm0, %v82_v2 }
  0x86   :  { %v55_v4 = vpop.f32.mrf.mxu0 }
  0x87   :  { %v56_v5 = vadd.f32 %v85_v3, %v55_v4 }
  0x89   :  { %v60_v6 = vpack.c.bf16 %v56_v5, %v56_v5 }
  0x8b   :  { %63 = vst.msk [vmem:[%s127_s3] sm:$0xf] %vm62_vm1, %v60_v6 }
  0x8e   :  { %v57_v7 = vpop.f32.mrf.mxu0 }
  0x8f   :  { %v58_v8 = vadd.f32 %v85_v3, %v57_v7 }
  0x91   :  { %v61_v9 = vpack.c.bf16 %v58_v8, %v58_v8 }
  0x93   :  { %64 = vst.msk [vmem:[%s127_s3 + $0x4] sm:$0xf] %vm62_vm1, %v61_v9 }

// kernel: ner_forward.14
= control target key start
LH: loop header
LB: loop body
LE: loop exit
PB: predicated region body
PF: predicated region fallthrough
CT: control target
= control target key end

     0   :  { %vm51_vm0 = vcmask 261120   ;;  %v177_v15 = vmov 32.0   ;;  %vm140_vm6 = vcmask 257024   ;;  %s245_s1 = inlined_call_operand.vmem [shape: bf16[32,32], index: 1, kind: input, shape index: {}]   ;;  %s246_s2 = inlined_call_operand.vmem [shape: f32[1,32], index: 2, kind: input, shape index: {}]   ;;  %s247_s0 = inlined_call_operand.vmem [shape: bf16[16,32], index: 0, kind: input, shape index: {}]   ;;  %s248_s3 = inlined_call_operand.vmem [shape: bf16[16,32], index: 3, kind: input, shape index: {}]   ;;  %s249_s4 = inlined_call_operand.vmem [shape: f32[1,32], index: 4, kind: input, shape index: {}]   ;;  %s250_s5 = inlined_call_operand.vmem [shape: f32[1,32], index: 5, kind: input, shape index: {}]   ;;  %s251_s6 = inlined_call_operand.vmem [shape: bf16[16,32], index: 6, kind: output, shape index: {}]  }
   0x1   :  { %v162_v0 = vld [vmem:[%s245_s1 + $0x8] sm:$0xff]  ;;  %v161_v1 = vld [vmem:[%s245_s1] sm:$0xff]  ;;  %171 = vrcp.f32 %v177_v15 }
   0x2   :  { %61 = vmatpush.bf16.msra.mxu0 %v162_v0  ;;  %v160_v2 = vld [vmem:[%s247_s0] sm:$0xff] }
   0x3   :  { %v164_v3 = vld [vmem:[%s248_s3] sm:$0xff]  }
   0x4   :  { %v168_v4 = vld [vmem:[%s246_s2] ss:$0 sm:$0xff]  ;;  %v165_v5 = vunpack.c.l.bf16 %v164_v3  ;;  %v166_v10 = vunpack.c.h.bf16 %v164_v3 }
   0x5   :  { %v169_v46 = vld [vmem:[%s249_s4] ss:$0 sm:$0xff] }
   0x6   :  { %62 = vmatpush.bf16.msra.mxu0 %v161_v1  ;;  %v170_v49 = vld [vmem:[%s250_s5] ss:$0 sm:$0xff] }
   0x7   :  { %v172_v16 = vpop.eup %171 }
   0x8   :  { %v84_v17 = vmul.f32 32.0, %v172_v16  ;;  %vm88_vm1 = vweird.f32 %v172_v16 }
   0x9   :  { %159 = vmatmul.msk.bf16.vlgmr.msra.gmra.mxu0 %vm51_vm0, %v160_v2 }
   0xa   :  { %v85_v18 = vsub.f32 1.0, %v84_v17 }
   0xc   :  { %v86_v19 = vmul.f32 %v172_v16, %v85_v18 }
   0xe   :  { %v87_v20 = vadd.f32 %v172_v16, %v86_v19 }
  0x10   :  { %v89_v21 = vsel %vm88_vm1, %v172_v16, %v87_v20 }
  0x86   :  { %v64_v6 = vpop.f32.mrf.mxu0 }
  0x87   :  { %v65_v7 = vadd.f32 %v168_v4, %v64_v6 }
  0x89   :  { %v75_v8 = vadd.f32 %v165_v5, %v65_v7 }
  0x8b   :  { %v77_v9 = vsel %vm51_vm0, %v75_v8, 0.0 }
  0x8c   :  { %78 = vadd.xlane.f32.xlu0 %v77_v9 }
  0x8e   :  { %v66_v11 = vpop.f32.mrf.mxu0 }
  0x8f   :  { %v67_v12 = vadd.f32 %v168_v4, %v66_v11 }
  0x91   :  { %v76_v13 = vadd.f32 %v166_v10, %v67_v12 }
  0x93   :  { %v80_v14 = vsel %vm51_vm0, %v76_v13, 0.0 }
  0x94   :  { %81 = vadd.xlane.f32.xlu0 %v80_v14 }
  0xff   :  { %v79_v22 = vpop.xlane.xlu0 %78 }
 0x100   :  { %v90_v23 = vmul.f32 %v89_v21, %v79_v22 }
 0x102   :  { %v92_v24 = vsub.f32 %v75_v8, %v90_v23 }
 0x104   :  { %v94_v25 = vmul.f32 %v92_v24, %v92_v24 }
 0x106   :  { %v96_v26 = vsel %vm51_vm0, %v94_v25, 0.0 }
 0x107   :  { %97 = vadd.xlane.f32.xlu1 %v96_v26  ;;  %v82_v27 = vpop.xlane.xlu0 %81 }
 0x108   :  { %v91_v28 = vmul.f32 %v89_v21, %v82_v27 }
 0x10a   :  { %v93_v29 = vsub.f32 %v76_v13, %v91_v28 }
 0x10c   :  { %v95_v30 = vmul.f32 %v93_v29, %v93_v29 }
 0x10e   :  { %v99_v31 = vsel %vm51_vm0, %v95_v30, 0.0 }
 0x10f   :  { %100 = vadd.xlane.f32.xlu1 %v99_v31 }
 0x17a   :  { %v98_v32 = vpop.xlane.xlu1 %97 }
 0x17b   :  { %v102_v33 = vmul.f32 %v98_v32, %v89_v21 }
 0x17d   :  { %v104_v34 = vadd.f32 1e-12, %v102_v33 }
 0x17f   :  { %173 = vrsqrt.f32 %v104_v34  ;;  %vm112_vm3 = vweird.f32 %v104_v34 }
 0x182   :  { %v101_v35 = vpop.xlane.xlu1 %100 }
 0x183   :  { %v103_v36 = vmul.f32 %v101_v35, %v89_v21 }
 0x185   :  { %v174_v37 = vpop.eup %173  ;;  %v105_v38 = vadd.f32 1e-12, %v103_v36 }
 0x186   :  { %v107_v39 = vmul.f32 %v174_v37, %v104_v34  ;;  %vm113_vm2 = vweird.f32 %v174_v37 }
 0x187   :  { %175 = vrsqrt.f32 %v105_v38  ;;  %vm114_vm4 = vmor %vm112_vm3, %vm113_vm2  ;;  %vm122_vm7 = vweird.f32 %v105_v38 }
 0x188   :  { %v108_v40 = vmul.f32 %v174_v37, %v107_v39 }
 0x18a   :  { %v109_v41 = vmul.f32 0.5, %v108_v40 }
 0x18c   :  { %v110_v42 = vsub.f32 1.5, %v109_v41 }
 0x18d   :  { %v176_v43 = vpop.eup %175 }
 0x18e   :  { %v111_v44 = vmul.f32 %v174_v37, %v110_v42  ;;  %v117_v45 = vmul.f32 %v176_v43, %v105_v38  ;;  %vm123_vm5 = vweird.f32 %v176_v43 }
 0x18f   :  { %vm124_vm8 = vmor %vm122_vm7, %vm123_vm5 }
 0x190   :  { %v115_v47 = vsel %vm114_vm4, %v174_v37, %v111_v44  ;;  %v118_v48 = vmul.f32 %v176_v43, %v117_v45 }
 0x191   :  { %v126_v50 = vmul.f32 %v115_v47, %v92_v24 }
 0x192   :  { %v119_v51 = vmul.f32 0.5, %v118_v48 }
 0x193   :  { %v131_v52 = vmul.f32 %v169_v46, %v126_v50 }
 0x194   :  { %v120_v53 = vsub.f32 1.5, %v119_v51 }
 0x195   :  { %v136_v54 = vadd.f32 %v170_v49, %v131_v52 }
 0x196   :  { %v121_v55 = vmul.f32 %v176_v43, %v120_v53 }
 0x197   :  { %v138_v56 = vpack.c.bf16 %v136_v54, %v136_v54 }
 0x198   :  { %v125_v57 = vsel %vm124_vm8, %v176_v43, %v121_v55 }
 0x199   :  { %141 = vst.msk [vmem:[%s251_s6] sm:$0xf] %vm140_vm6, %v138_v56  ;;  %v127_v58 = vmul.f32 %v125_v57, %v93_v29 }
 0x19b   :  { %v132_v59 = vmul.f32 %v169_v46, %v127_v58 }
 0x19d   :  { %v137_v60 = vadd.f32 %v170_v49, %v132_v59 }
 0x19f   :  { %v139_v61 = vpack.c.bf16 %v137_v60, %v137_v60 }
 0x1a1   :  { %142 = vst.msk [vmem:[%s251_s6 + $0x4] sm:$0xf] %vm140_vm6, %v139_v61 }

// kernel: ner_forward.11
= control target key start
LH: loop header
LB: loop body
LE: loop exit
PB: predicated region body
PF: predicated region fallthrough
CT: control target
= control target key end

     0   :  { %s350_s15 = smov 0   ;;  %s382_s0 = inlined_call_operand.vmem [shape: f32[2,8,32], index: 0, kind: input, shape index: {}]   ;;  %s383_s1 = inlined_call_operand.vmem [shape: f32[8,32], index: 1, kind: input, shape index: {}]   ;;  %s384_s2 = inlined_call_operand.vmem [shape: f32[1,32], index: 2, kind: input, shape index: {}]   ;;  %s385_s3 = inlined_call_operand.vmem [shape: f32[1,32], index: 3, kind: input, shape index: {}]   ;;  %s386_s4 = inlined_call_operand.vmem [shape: bf16[2,8,32], index: 4, kind: output, shape index: {}]  }
   0x1 LB: > { %s292_s16 = sadd.s32 4294967295, %s322_s15   ;;  %p296_p0 = scmp.ge.s32.totalorder %s322_s15, 1  ;;  %s322_s15 = sphi %s350_s15, %s14_s15  }
   0x2   : > { %p161_p1 = scmp.lt.s32.totalorder %s322_s15, 3 }
   0x4   : > { %p162_p2 = pnand %p296_p0, %p161_p1 }
   0x5   : > { %p185_p3 = scmp.lt.s32.totalorder (!%p162_p2), %s292_s16, 1 }
   0x6   : > { %165 = sbr.rel (%p162_p2) target bundleno = 288 (0x120), region = 36 }
   0xb   : > { %s388_s16 = smov (!%p185_p3, %s292_s16), 1  ;;  %v194_v0 = vld [vmem:[%s383_s1] sm:$0xff]  ;;  %vm196_vm0 = vcmask 261120   ;;  %v324_v4 = vmov 32.0   ;;  %vm237_vm5 = vcmask 257024  }
   0xc   : > { %s297_s17 = sshll.u32 %s388_s16, 3  ;;  %312 = vrcp.f32 %v324_v4  ;;  %v310_v25 = vld [vmem:[%s384_s2] ss:$0 sm:$0xff]  ;;  %s298_s27 = sshll.u32 %s388_s16, 2 }
   0xd   : > { %s188_s22 = scalar_lea.vmem %s382_s0, %s297_s17  ;;  %v311_v27 = vld [vmem:[%s385_s3] ss:$0 sm:$0xff]  ;;  %s192_s30 = scalar_lea.vmem %s386_s4, %s298_s27 }
   0xe   : > { %v193_v1 = vld [vmem:[%s188_s22] sm:$0xff] }
   0xf   : > { %v195_v2 = vadd.f32 %v194_v0, %v193_v1 }
  0x11   : > { %v197_v3 = vsel %vm196_vm0, %v195_v2, 0.0 }
  0x12   : > { %198 = vadd.xlane.f32.xlu0 %v197_v3  ;;  %v313_v5 = vpop.eup %312 }
  0x13   : > { %v201_v6 = vmul.f32 32.0, %v313_v5  ;;  %vm205_vm1 = vweird.f32 %v313_v5 }
  0x15   : > { %v202_v7 = vsub.f32 1.0, %v201_v6 }
  0x17   : > { %v203_v8 = vmul.f32 %v313_v5, %v202_v7 }
  0x19   : > { %v204_v9 = vadd.f32 %v313_v5, %v203_v8 }
  0x1b   : > { %v206_v10 = vsel %vm205_vm1, %v313_v5, %v204_v9 }
  0x85   : > { %v199_v11 = vpop.xlane.xlu0 %198 }
  0x86   : > { %v207_v12 = vmul.f32 %v206_v10, %v199_v11 }
  0x88   : > { %v208_v13 = vsub.f32 %v195_v2, %v207_v12 }
  0x8a   : > { %v209_v14 = vmul.f32 %v208_v13, %v208_v13 }
  0x8c   : > { %v210_v15 = vsel %vm196_vm0, %v209_v14, 0.0 }
  0x8d   : > { %211 = vadd.xlane.f32.xlu0 %v210_v15 }
 0x100   : > { %v212_v16 = vpop.xlane.xlu0 %211 }
 0x101   : > { %v213_v17 = vmul.f32 %v212_v16, %v206_v10 }
 0x103   : > { %v214_v18 = vadd.f32 1e-12, %v213_v17 }
 0x105   : > { %314 = vrsqrt.f32 %v214_v18  ;;  %vm221_vm3 = vweird.f32 %v214_v18 }
 0x10b   : > { %v315_v19 = vpop.eup %314 }
 0x10c   : > { %v216_v20 = vmul.f32 %v315_v19, %v214_v18  ;;  %vm222_vm2 = vweird.f32 %v315_v19 }
 0x10d   : > { %vm223_vm4 = vmor %vm221_vm3, %vm222_vm2 }
 0x10e   : > { %v217_v21 = vmul.f32 %v315_v19, %v216_v20 }
 0x110   : > { %v218_v22 = vmul.f32 0.5, %v217_v21 }
 0x112   : > { %v219_v23 = vsub.f32 1.5, %v218_v22 }
 0x114   : > { %v220_v24 = vmul.f32 %v315_v19, %v219_v23 }
 0x116   : > { %v224_v26 = vsel %vm223_vm4, %v315_v19, %v220_v24 }
 0x117   : > { %v225_v28 = vmul.f32 %v224_v26, %v208_v13 }
 0x119   : > { %v230_v29 = vmul.f32 %v310_v25, %v225_v28 }
 0x11b   : > { %v235_v30 = vadd.f32 %v311_v27, %v230_v29 }
 0x11d   : > { %v236_v31 = vpack.c.bf16 %v235_v30, %v235_v30 }
 0x11f   : > { %238 = vst.msk [vmem:[%s192_s30] sm:$0xf] %vm237_vm5, %v236_v31 }
 0x120 PF: > { %s14_s15 = sadd.s32 1, %s322_s15  }
 0x121   : > { %p11_p4 = scmp.ge.s32.totalorder %s14_s15, 4  }
 0x123   :  { %13 = sbr.rel (!%p11_p4) target bundleno = 1 (0x1), region = 66 }

// kernel: ner_forward.13
= control target key start
LH: loop header
LB: loop body
LE: loop exit
PB: predicated region body
PF: predicated region fallthrough
CT: control target
= control target key end

     0   :  { %s378_s6 = smov 0   ;;  %s413_s0 = inlined_call_operand.vmem [shape: bf16[2,8,96], index: 0, kind: input, shape index: {}]   ;;  %s414_s1 = inlined_call_operand.vmem [shape: bf16[2,8,32], index: 1, kind: output, shape index: {}]  }
   0x1 LB: > { %s319_s7 = sadd.s32 4294967295, %s360_s6   ;;  %p323_p0 = scmp.ge.s32.totalorder %s360_s6, 1  ;;  %s360_s6 = sphi %s378_s6, %s11_s6  }
   0x2   : > { %p86_p1 = scmp.lt.s32.totalorder %s360_s6, 3 }
   0x4   : > { %p87_p2 = pnand %p323_p0, %p86_p1 }
   0x5   : > { %p104_p3 = scmp.lt.s32.totalorder (!%p87_p2), %s319_s7, 1  ;;  %s362_s12 = smov (!%p87_p2), 96  }
   0x6   : > { %90 = sbr.rel (%p87_p2) target bundleno = 769 (0x301), region = 24  ;;  %s363_s13 = smov (!%p87_p2), 80  }
   0x7   : > { %s364_s14 = smov (!%p87_p2), 112   ;;  %s365_s15 = smov (!%p87_p2), 48  }
   0x8   : > { %s366_s16 = smov (!%p87_p2), 64   ;;  %s367_s17 = smov (!%p87_p2), 16  }
   0xb   : > { %s416_s7 = smov (!%p104_p3, %s319_s7), 1  ;;  %vm119_vm0 = vcmask 130048   ;;  %vm140_vm1 = vcmask 64512   ;;  %vm171_vm2 = vcmask 1043456   ;;  %vm264_vm11 = vcmask 257024  }
   0xc   : > { %s324_s8 = sshll.u32 %s416_s7, 2 }
   0xd   : > { %s107_s11 = scalar_lea.vmem %s413_s0, %s324_s8  ;;  %s111_s20 = scalar_lea.vmem %s414_s1, %s324_s8 }
   0xe   : > { %v113_v0 = vld [vmem:[%s107_s11] sm:$0xf] }
   0xf   : > { %v115_v1 = vunpack.c.l.b16 %v113_v0 }
  0x11   : > { %v116_v2 = vpack.c.b16 %v115_v1, %v115_v1 }
  0x13   : > { %117 = vrot.lane.b32.xlu1 %v116_v2, %s362_s12  ;;  %190 = vrot.lane.b32.xlu0 %v116_v2, %s363_s13 }
  0x1b   : > { %188 = vrot.lane.b32.xlu0 %v116_v2, %s364_s14 }
  0x23   : > { %237 = vrot.lane.b32.xlu0 %v116_v2, %s365_s15 }
  0x2b   : > { %166 = vrot.lane.b32.xlu0 %v116_v2, %s366_s16 }
  0x85   : > { %v118_v3 = vpop.permute.xlu1 %117  ;;  %v191_v4 = vpop.permute.xlu0 %190 }
  0x86   : > { %v124_v5 = vsel %vm119_vm0, %v118_v3, 0  ;;  %v196_v6 = vsel %vm119_vm0, %v191_v4, 0 }
  0x87   : > { %133 = vmatpush.bf16.xpose.msra.mxu0 %v124_v5  ;;  %205 = vmatpush.bf16.xpose.msra.mxu2 %v196_v6 }
  0x8d   : > { %v189_v7 = vpop.permute.xlu0 %188 }
  0x8e   : > { %326 = vmatmul.msk.bf16.vlgmr.msra.gmra.mxu0 %vm119_vm0, %v113_v0  ;;  %328 = vmatmul.msk.bf16.vlgmr.msra.gmra.mxu2 %vm119_vm0, %v189_v7 }
  0x95   : > { %v238_v26 = vpop.permute.xlu0 %237 }
  0x96   : > { %v243_v27 = vsel %vm171_vm2, %v238_v26, 0 }
  0x97   : > { %252 = vmatpush.bf16.msra.mxu3 %v243_v27 }
  0x9d   : > { %v167_v28 = vpop.permute.xlu0 %166 }
  0x9e   : > { %v173_v29 = vsel %vm171_vm2, %v167_v28, 0 }
  0x9f   : > { %182 = vmatpush.bf16.msra.mxu1 %v173_v29 }
 0x10b   : > { %v135_v8 = vpop.f32.mrf.mxu0 }
 0x10c   : > { %v139_v9 = vmul.f32 0.25, %v135_v8 }
 0x10e   : > { %v141_v10 = vsel %vm140_vm1, %v139_v9, -inf }
 0x10f   : > { %142 = vmax.xlane.f32.xlu2 %v141_v10 }
 0x111   : > { %v207_v11 = vpop.f32.mrf.mxu2 }
 0x112   : > { %v211_v12 = vmul.f32 0.25, %v207_v11 }
 0x113   : > { %v137_v13 = vpop.f32.mrf.mxu0 }
 0x114   : > { %v212_v14 = vsel %vm140_vm1, %v211_v12, -inf }
 0x115   : > { %213 = vmax.xlane.f32.xlu1 %v212_v14 }
 0x119   : > { %v209_v15 = vpop.f32.mrf.mxu2 }
 0x182   : > { %v143_v16 = vpop.xlane.xlu2 %142 }
 0x183   : > { %v144_v19 = vsub.f32 %v139_v9, %v143_v16 }
 0x185   : > { %v145_v21 = vmul.f32 1.442695, %v144_v19 }
 0x188   : > { %v214_v17 = vpop.xlane.xlu1 %213 }
 0x189   : > { %v215_v18 = vsub.f32 %v211_v12, %v214_v17 }
 0x18b   : > { %v216_v20 = vmul.f32 1.442695, %v215_v18 }
 0x18d   : > { %346 = vpow2.f32 %v216_v20 }
 0x18e   : > { %348 = vpow2.f32 %v145_v21 }
 0x193   : > { %v347_v22 = vpop.eup %346 }
 0x194   : > { %v218_v23 = vsel %vm140_vm1, %v347_v22, 0.0  ;;  %v349_v24 = vpop.eup %348 }
 0x195   : > { %219 = vadd.xlane.f32.xlu2 %v218_v23  ;;  %v147_v25 = vsel %vm140_vm1, %v349_v24, 0.0 }
 0x19d   : > { %148 = vadd.xlane.f32.xlu2 %v147_v25 }
 0x208   : > { %v220_v30 = vpop.xlane.xlu2 %219 }
 0x209   : > { %350 = vrcp.f32 %v220_v30  ;;  %v232_v35 = vand.u32 2147483648, %v220_v30  ;;  %v230_v37 = vand.u32 2147483647, %v220_v30  ;;  %vm226_vm4 = vweird.f32 %v220_v30 }
 0x20b   : > { %v233_v40 = vor.u32 1.1754944e-38, %v232_v35  ;;  %vm231_vm6 = vcmp.eq.f32.partialorder %v230_v37, 8.507059e+37 }
 0x20f   : > { %v351_v31 = vpop.eup %350 }
 0x210   : > { %v222_v32 = vmul.f32 %v351_v31, %v220_v30  ;;  %v149_v33 = vpop.xlane.xlu2 %148  ;;  %vm227_vm3 = vweird.f32 %v351_v31 }
 0x211   : > { %352 = vrcp.f32 %v149_v33  ;;  %vm228_vm5 = vmor %vm226_vm4, %vm227_vm3  ;;  %v161_v46 = vand.u32 2147483648, %v149_v33  ;;  %v159_v49 = vand.u32 2147483647, %v149_v33  ;;  %vm155_vm8 = vweird.f32 %v149_v33 }
 0x212   : > { %v223_v34 = vsub.f32 1.0, %v222_v32 }
 0x213   : > { %v162_v51 = vor.u32 1.1754944e-38, %v161_v46  ;;  %vm160_vm10 = vcmp.eq.f32.partialorder %v159_v49, 8.507059e+37 }
 0x214   : > { %v224_v36 = vmul.f32 %v351_v31, %v223_v34 }
 0x216   : > { %v225_v38 = vadd.f32 %v351_v31, %v224_v36 }
 0x217   : > { %v353_v39 = vpop.eup %352 }
 0x218   : > { %v151_v41 = vmul.f32 %v353_v39, %v149_v33  ;;  %v229_v42 = vsel %vm228_vm5, %v351_v31, %v225_v38  ;;  %vm156_vm7 = vweird.f32 %v353_v39 }
 0x219   : > { %v234_v43 = vsel %vm231_vm6, %v233_v40, %v229_v42  ;;  %vm157_vm9 = vmor %vm155_vm8, %vm156_vm7 }
 0x21a   : > { %v152_v44 = vsub.f32 1.0, %v151_v41  ;;  %v235_v45 = vmul.f32 %v347_v22, %v234_v43 }
 0x21c   : > { %v153_v47 = vmul.f32 %v353_v39, %v152_v44  ;;  %v236_v48 = vpack.c.bf16 %v235_v45, %v235_v45 }
 0x21e   : > { %329 = vmatmul.msk.bf16.vlgmr.msra.gmra.mxu3 %vm140_vm1, %v236_v48  ;;  %v154_v50 = vadd.f32 %v353_v39, %v153_v47 }
 0x220   : > { %v158_v52 = vsel %vm157_vm9, %v353_v39, %v154_v50 }
 0x221   : > { %v163_v53 = vsel %vm160_vm10, %v162_v51, %v158_v52 }
 0x222   : > { %v164_v54 = vmul.f32 %v349_v24, %v163_v53 }
 0x224   : > { %v165_v55 = vpack.c.bf16 %v164_v54, %v164_v54 }
 0x226   : > { %327 = vmatmul.msk.bf16.vlgmr.msra.gmra.mxu1 %vm140_vm1, %v165_v55 }
 0x2a1   : > { %v254_v56 = vpop.f32.mrf.mxu3 }
 0x2a2   : > { %259 = vrot.lane.b32.xlu2 %v254_v56, %s367_s17 }
 0x2a3   : > { %v184_v57 = vpop.f32.mrf.mxu1 }
 0x2a9   : > { %v256_v58 = vpop.f32.mrf.mxu3 }
 0x2ab   : > { %v186_v59 = vpop.f32.mrf.mxu1 }
 0x2fc   : > { %v260_v60 = vpop.permute.xlu2 %259 }
 0x2fd   : > { %v262_v61 = vsel %vm119_vm0, %v184_v57, %v260_v60 }
 0x2fe   : > { %v263_v62 = vpack.c.bf16 %v262_v61, %v262_v61 }
 0x300   : > { %265 = vst.msk [vmem:[%s111_s20] sm:$0xf] %vm264_vm11, %v263_v62 }
 0x301 PF: > { %s11_s6 = sadd.s32 1, %s360_s6  }
 0x302   : > { %p8_p4 = scmp.ge.s32.totalorder %s11_s6, 4  }
 0x304   :  { %10 = sbr.rel (!%p8_p4) target bundleno = 1 (0x1), region = 54 }

// kernel: ner_forward.15
= control target key start
LH: loop header
LB: loop body
LE: loop exit
PB: predicated region body
PF: predicated region fallthrough
CT: control target
= control target key end

     0   :  { %vm42_vm0 = vcmask 261120   ;;  %vm80_vm1 = vcmask 519168   ;;  %s146_s1 = inlined_call_operand.vmem [shape: bf16[32,64], index: 1, kind: input, shape index: {}]   ;;  %s147_s2 = inlined_call_operand.vmem [shape: f32[1,64], index: 2, kind: input, shape index: {}]   ;;  %s148_s0 = inlined_call_operand.vmem [shape: bf16[16,32], index: 0, kind: input, shape index: {}]   ;;  %s149_s3 = inlined_call_operand.vmem [shape: bf16[16,64], index: 3, kind: output, shape index: {}]  }
   0x1   :  { %v102_v0 = vld [vmem:[%s146_s1 + $0x8] sm:$0xff]  ;;  %v101_v1 = vld [vmem:[%s146_s1] sm:$0xff] }
   0x2   :  { %52 = vmatpush.bf16.msra.mxu0 %v102_v0  ;;  %v100_v2 = vld [vmem:[%s148_s0] sm:$0xff] }
   0x3   :  { %v103_v3 = vld [vmem:[%s147_s2] ss:$0 sm:$0xff] }
   0x6   :  { %53 = vmatpush.bf16.msra.mxu0 %v101_v1 }
   0x9   :  { %99 = vmatmul.msk.bf16.vlgmr.msra.gmra.mxu0 %vm42_vm0, %v100_v2 }
  0x86   :  { %v55_v4 = vpop.f32.mrf.mxu0 }
  0x87   :  { %v56_v5 = vadd.f32 %v103_v3, %v55_v4 }
  0x89   :  { %v60_v6 = vmul.f32 %v56_v5, %v56_v5 }
  0x8b   :  { %v62_v7 = vmul.f32 %v60_v6, %v56_v5 }
  0x8d   :  { %v64_v8 = vmul.f32 0.044715, %v62_v7 }
  0x8e   :  { %v57_v9 = vpop.f32.mrf.mxu0 }
  0x8f   :  { %v66_v10 = vadd.f32 %v64_v8, %v56_v5  ;;  %v58_v11 = vadd.f32 %v103_v3, %v57_v9 }
  0x91   :  { %v68_v12 = vmul.f32 0.7978846, %v66_v10  ;;  %v61_v13 = vmul.f32 %v58_v11, %v58_v11 }
  0x93   :  { %104 = vtanh.f32 %v68_v12  ;;  %v63_v14 = vmul.f32 %v61_v13, %v58_v11 }
  0x95   :  { %v65_v15 = vmul.f32 0.044715, %v63_v14 }
  0x97   :  { %v67_v16 = vadd.f32 %v65_v15, %v58_v11 }
  0x99   :  { %v105_v17 = vpop.eup %104  ;;  %v69_v18 = vmul.f32 0.7978846, %v67_v16 }
  0x9a   :  { %v72_v19 = vadd.f32 1.0, %v105_v17 }
  0x9b   :  { %106 = vtanh.f32 %v69_v18 }
  0x9c   :  { %v74_v20 = vmul.f32 0.5, %v72_v19 }
  0x9e   :  { %v76_v21 = vmul.f32 %v74_v20, %v56_v5 }
  0xa0   :  { %v78_v22 = vpack.c.bf16 %v76_v21, %v76_v21 }
  0xa1   :  { %v107_v23 = vpop.eup %106 }
  0xa2   :  { %81 = vst.msk [vmem:[%s149_s3] sm:$0xf] %vm80_vm1, %v78_v22  ;;  %v73_v24 = vadd.f32 1.0, %v107_v23 }
  0xa4   :  { %v75_v25 = vmul.f32 0.5, %v73_v24 }
  0xa6   :  { %v77_v26 = vmul.f32 %v75_v25, %v58_v11 }
  0xa8   :  { %v79_v27 = vpack.c.bf16 %v77_v26, %v77_v26 }
  0xaa   :  { %82 = vst.msk [vmem:[%s149_s3 + $0x4] sm:$0xf] %vm80_vm1, %v79_v27 }

// kernel: ner_forward.16
= control target key start
LH: loop header
LB: loop body
LE: loop exit
PB: predicated region body
PF: predicated region fallthrough
CT: control target
= control target key end

     0   :  { %vm67_vm0 = vcmask 523264   ;;  %vm93_vm1 = vcmask 261120   ;;  %v204_v17 = vmov 32.0   ;;  %vm157_vm7 = vcmask 257024   ;;  %s277_s1 = inlined_call_operand.vmem [shape: bf16[64,32], index: 1, kind: input, shape index: {}]   ;;  %s278_s2 = inlined_call_operand.vmem [shape: f32[1,32], index: 2, kind: input, shape index: {}]   ;;  %s279_s0 = inlined_call_operand.vmem [shape: bf16[16,64], index: 0, kind: input, shape index: {}]   ;;  %s280_s3 = inlined_call_operand.vmem [shape: bf16[16,32], index: 3, kind: input, shape index: {}]   ;;  %s281_s4 = inlined_call_operand.vmem [shape: f32[1,32], index: 4, kind: input, shape index: {}]   ;;  %s282_s5 = inlined_call_operand.vmem [shape: f32[1,32], index: 5, kind: input, shape index: {}]   ;;  %s283_s6 = inlined_call_operand.vmem [shape: bf16[16,32], index: 6, kind: output, shape index: {}]  }
   0x1   :  { %v189_v0 = vld [vmem:[%s277_s1 + $0x18] sm:$0xff]  ;;  %v188_v1 = vld [vmem:[%s277_s1 + $0x10] sm:$0xff]  ;;  %v187_v2 = vld [vmem:[%s277_s1 + $0x8] sm:$0xff]  ;;  %198 = vrcp.f32 %v204_v17 }
   0x2   :  { %75 = vmatpush.bf16.msra.mxu0 %v189_v0  ;;  %v186_v3 = vld [vmem:[%s277_s1] sm:$0xff] }
   0x3   :  { %v185_v4 = vld [vmem:[%s279_s0] sm:$0xff] }
   0x4   :  { %v191_v5 = vld [vmem:[%s280_s3] sm:$0xff]  }
   0x5   :  { %v195_v6 = vld [vmem:[%s278_s2] ss:$0 sm:$0xff]  ;;  %v192_v7 = vunpack.c.l.bf16 %v191_v5  ;;  %v193_v12 = vunpack.c.h.bf16 %v191_v5 }
   0x6   :  { %76 = vmatpush.bf16.msra.mxu0 %v188_v1  ;;  %v196_v48 = vld [vmem:[%s281_s4] ss:$0 sm:$0xff] }
   0x7   :  { %v199_v18 = vpop.eup %198  ;;  %v197_v51 = vld [vmem:[%s282_s5] ss:$0 sm:$0xff] }
   0x8   :  { %v101_v19 = vmul.f32 32.0, %v199_v18  ;;  %vm105_vm2 = vweird.f32 %v199_v18 }
   0xa   :  { %77 = vmatpush.bf16.msra.mxu0 %v187_v2  ;;  %v102_v20 = vsub.f32 1.0, %v101_v19 }
   0xc   :  { %v103_v21 = vmul.f32 %v199_v18, %v102_v20 }
   0xe   :  { %78 = vmatpush.bf16.msra.mxu0 %v186_v3  ;;  %v104_v22 = vadd.f32 %v199_v18, %v103_v21 }
  0x10   :  { %v106_v23 = vsel %vm105_vm2, %v199_v18, %v104_v22 }
  0x11   :  { %184 = vmatmul.msk.bf16.vlgmr.msra.gmra.mxu0 %vm67_vm0, %v185_v4 }
  0x8e   :  { %v80_v8 = vpop.f32.mrf.mxu0 }
  0x8f   :  { %v81_v9 = vadd.f32 %v195_v6, %v80_v8 }
  0x91   :  { %v91_v10 = vadd.f32 %v192_v7, %v81_v9 }
  0x93   :  { %v94_v11 = vsel %vm93_vm1, %v91_v10, 0.0 }
  0x94   :  { %95 = vadd.xlane.f32.xlu0 %v94_v11 }
  0x96   :  { %v82_v13 = vpop.f32.mrf.mxu0 }
  0x97   :  { %v83_v14 = vadd.f32 %v195_v6, %v82_v13 }
  0x99   :  { %v92_v15 = vadd.f32 %v193_v12, %v83_v14 }
  0x9b   :  { %v97_v16 = vsel %vm93_vm1, %v92_v15, 0.0 }
  0x9c   :  { %98 = vadd.xlane.f32.xlu0 %v97_v16 }
 0x107   :  { %v96_v24 = vpop.xlane.xlu0 %95 }
 0x108   :  { %v107_v25 = vmul.f32 %v106_v23, %v96_v24 }
 0x10a   :  { %v109_v26 = vsub.f32 %v91_v10, %v107_v25 }
 0x10c   :  { %v111_v27 = vmul.f32 %v109_v26, %v109_v26 }
 0x10e   :  { %v113_v28 = vsel %vm93_vm1, %v111_v27, 0.0 }
 0x10f   :  { %114 = vadd.xlane.f32.xlu1 %v113_v28  ;;  %v99_v29 = vpop.xlane.xlu0 %98 }
 0x110   :  { %v108_v30 = vmul.f32 %v106_v23, %v99_v29 }
 0x112   :  { %v110_v31 = vsub.f32 %v92_v15, %v108_v30 }
 0x114   :  { %v112_v32 = vmul.f32 %v110_v31, %v110_v31 }
 0x116   :  { %v116_v33 = vsel %vm93_vm1, %v112_v32, 0.0 }
 0x117   :  { %117 = vadd.xlane.f32.xlu1 %v116_v33 }
 0x182   :  { %v115_v34 = vpop.xlane.xlu1 %114 }
 0x183   :  { %v119_v35 = vmul.f32 %v115_v34, %v106_v23 }
 0x185   :  { %v121_v36 = vadd.f32 1e-12, %v119_v35 }
 0x187   :  { %200 = vrsqrt.f32 %v121_v36  ;;  %vm129_vm4 = vweird.f32 %v121_v36 }
 0x18a   :  { %v118_v37 = vpop.xlane.xlu1 %117 }
 0x18b   :  { %v120_v38 = vmul.f32 %v118_v37, %v106_v23 }
 0x18d   :  { %v201_v39 = vpop.eup %200  ;;  %v122_v40 = vadd.f32 1e-12, %v120_v38 }
 0x18e   :  { %v124_v41 = vmul.f32 %v201_v39, %v121_v36  ;;  %vm130_vm3 = vweird.f32 %v201_v39 }
 0x18f   :  { %202 = vrsqrt.f32 %v122_v40  ;;  %vm131_vm5 = vmor %vm129_vm4, %vm130_vm3  ;;  %vm139_vm8 = vweird.f32 %v122_v40 }
 0x190   :  { %v125_v42 = vmul.f32 %v201_v39, %v124_v41 }
 0x192   :  { %v126_v43 = vmul.f32 0.5, %v125_v42 }
 0x194   :  { %v127_v44 = vsub.f32 1.5, %v126_v43 }
 0x195   :  { %v203_v45 = vpop.eup %202 }
 0x196   :  { %v128_v46 = vmul.f32 %v201_v39, %v127_v44  ;;  %v134_v47 = vmul.f32 %v203_v45, %v122_v40  ;;  %vm140_vm6 = vweird.f32 %v203_v45 }
 0x197   :  { %vm141_vm9 = vmor %vm139_vm8, %vm140_vm6 }
 0x198   :  { %v132_v49 = vsel %vm131_vm5, %v201_v39, %v128_v46  ;;  %v135_v50 = vmul.f32 %v203_v45, %v134_v47 }
 0x199   :  { %v143_v52 = vmul.f32 %v132_v49, %v109_v26 }
 0x19a   :  { %v136_v53 = vmul.f32 0.5, %v135_v50 }
 0x19b   :  { %v148_v54 = vmul.f32 %v196_v48, %v143_v52 }
 0x19c   :  { %v137_v55 = vsub.f32 1.5, %v136_v53 }
 0x19d   :  { %v153_v56 = vadd.f32 %v197_v51, %v148_v54 }
 0x19e   :  { %v138_v57 = vmul.f32 %v203_v45, %v137_v55 }
 0x19f   :  { %v155_v58 = vpack.c.bf16 %v153_v56, %v153_v56 }
 0x1a0   :  { %v142_v59 = vsel %vm141_vm9, %v203_v45, %v138_v57 }
 0x1a1   :  { %158 = vst.msk [vmem:[%s283_s6] sm:$0xf] %vm157_vm7, %v155_v58  ;;  %v144_v60 = vmul.f32 %v142_v59, %v110_v31 }
 0x1a3   :  { %v149_v61 = vmul.f32 %v196_v48, %v144_v60 }
 0x1a5   :  { %v154_v62 = vadd.f32 %v197_v51, %v149_v61 }
 0x1a7   :  { %v156_v63 = vpack.c.bf16 %v154_v62, %v154_v62 }
 0x1a9   :  { %159 = vst.msk [vmem:[%s283_s6 + $0x4] sm:$0xf] %vm157_vm7, %v156_v63 }

// kernel: ner_forward.17
= control target key start
LH: loop header
LB: loop body
LE: loop exit
PB: predicated region body
PF: predicated region fallthrough
CT: control target
= control target key end

     0   :  { %vm42_vm0 = vcmask 261120   ;;  %vm62_vm1 = vcmask 519168   ;;  %s124_s1 = inlined_call_operand.vmem [shape: bf16[32,64], index: 1, kind: input, shape index: {}]   ;;  %s125_s2 = inlined_call_operand.vmem [shape: f32[1,64], index: 2, kind: input, shape index: {}]   ;;  %s126_s0 = inlined_call_operand.vmem [shape: bf16[16,32], index: 0, kind: input, shape index: {}]   ;;  %s127_s3 = inlined_call_operand.vmem [shape: bf16[16,64], index: 3, kind: output, shape index: {}]  }
   0x1   :  { %v84_v0 = vld [vmem:[%s124_s1 + $0x8] sm:$0xff]  ;;  %v83_v1 = vld [vmem:[%s124_s1] sm:$0xff] }
   0x2   :  { %52 = vmatpush.bf16.msra.mxu0 %v84_v0  ;;  %v82_v2 = vld [vmem:[%s126_s0] sm:$0xff] }
   0x3   :  { %v85_v3 = vld [vmem:[%s125_s2] ss:$0 sm:$0xff] }
   0x6   :  { %53 = vmatpush.bf16.msra.mxu0 %v83_v1 }
   0x9   :  { %81 = vmatmul.msk.bf16.vlgmr.msra.gmra.mxu0 %vm42_vm0, %v82_v2 }
  0x86   :  { %v55_v4 = vpop.f32.mrf.mxu0 }
  0x87   :  { %v56_v5 = vadd.f32 %v85_v3, %v55_v4 }
  0x89   :  { %v60_v6 = vpack.c.bf16 %v56_v5, %v56_v5 }
  0x8b   :  { %63 = vst.msk [vmem:[%s127_s3] sm:$0xf] %vm62_vm1, %v60_v6 }
  0x8e   :  { %v57_v7 = vpop.f32.mrf.mxu0 }
  0x8f   :  { %v58_v8 = vadd.f32 %v85_v3, %v57_v7 }
  0x91   :  { %v61_v9 = vpack.c.bf16 %v58_v8, %v58_v8 }
  0x93   :  { %64 = vst.msk [vmem:[%s127_s3 + $0x4] sm:$0xf] %vm62_vm1, %v61_v9 }

// kernel: ner_forward.21
= control target key start
LH: loop header
LB: loop body
LE: loop exit
PB: predicated region body
PF: predicated region fallthrough
CT: control target
= control target key end

     0   :  { %vm42_vm0 = vcmask 261120   ;;  %s121_s1 = inlined_call_operand.vmem [shape: bf16[32,128], index: 1, kind: input, shape index: {}]   ;;  %s122_s2 = inlined_call_operand.vmem [shape: f32[1,128], index: 2, kind: input, shape index: {}]   ;;  %s123_s0 = inlined_call_operand.vmem [shape: bf16[16,32], index: 0, kind: input, shape index: {}]   ;;  %s124_s3 = inlined_call_operand.vmem [shape: f32[16,128], index: 3, kind: output, shape index: {}]  }
   0x1   :  { %v81_v0 = vld [vmem:[%s121_s1 + $0x8] sm:$0xff]  ;;  %v80_v1 = vld [vmem:[%s121_s1] sm:$0xff] }
   0x2   :  { %52 = vmatpush.bf16.msra.mxu0 %v81_v0  ;;  %v79_v2 = vld [vmem:[%s123_s0] sm:$0xff] }
   0x3   :  { %v82_v3 = vld [vmem:[%s122_s2] ss:$0 sm:$0xff] }
   0x6   :  { %53 = vmatpush.bf16.msra.mxu0 %v80_v1 }
   0x9   :  { %78 = vmatmul.msk.bf16.vlgmr.msra.gmra.mxu0 %vm42_vm0, %v79_v2 }
  0x86   :  { %v55_v4 = vpop.f32.mrf.mxu0 }
  0x87   :  { %v56_v5 = vadd.f32 %v82_v3, %v55_v4 }
  0x89   :  { %60 = vst [vmem:[%s124_s3] sm:$0xff] %v56_v5 }
  0x8e   :  { %v57_v6 = vpop.f32.mrf.mxu0 }
  0x8f   :  { %v58_v7 = vadd.f32 %v82_v3, %v57_v6 }
  0x91   :  { %61 = vst [vmem:[%s124_s3 + $0x8] sm:$0xff] %v58_v7 }

// kernel: ner_forward.20
= control target key start
LH: loop header
LB: loop body
LE: loop exit
PB: predicated region body
PF: predicated region fallthrough
CT: control target
= control target key end

     0   :  { %v1238_v1 = vmov 0   ;;  %s1240_s15 = smov 16   ;;  %s1241_s16 = smov 32   ;;  %vm149_vm8 = vcmask 1041409   ;;  %vm24_vm9 = vcmask 130048   ;;  %s1655_s1 = inlined_call_operand.vmem [shape: bf16[16,64], index: 1, kind: input, shape index: {}]   ;;  %s1656_s0 = inlined_call_operand.vmem [shape: bf16[2,8,64], index: 0, kind: input, shape index: {}]   ;;  %s1657_s2 = inlined_call_operand.vmem [shape: bf16[2,8,16], index: 2, kind: output, shape index: {}]  }
   0x1   :  { %v1104_v0 = vld [vmem:[%s1655_s1] sm:$0xff]  ;;  %s1239_s1 = smov 96   ;;  %s1242_s17 = smov 80  }
   0x2   :  { %35 = vmatpush.bf16.msra.mxu0 %v1104_v0  ;;  %164 = vmatpush.bf16.msra.mxu1 %v1104_v0  ;;  %v14_v2 = vld [vmem:[%s1656_s0] sm:$0x8]  ;;  %v15_v6 = vld [vmem:[%s1656_s0 + $0x4] sm:$0x8] }
   0x3   :  { %297 = vmatpush.bf16.msra.mxu2 %v1104_v0  ;;  %431 = vmatpush.bf16.msra.mxu3 %v1104_v0  ;;  %v16_v3 = vunpack.c.l.bf16 %v14_v2  ;;  %v17_v8 = vunpack.c.l.bf16 %v15_v6  ;;  %v142_v2 = vld [vmem:[%s1656_s0 + $0x4] sm:$0x8] }
   0x5   :  { %36 = vmatmul.bf16.vlgmr.msra.gmra.mxu0 %v1238_v1  ;;  %v141_v1 = vld [vmem:[%s1656_s0] sm:$0x8] }
   0x6   :  { %564 = vmatpush.bf16.msrb.mxu0 %v1104_v0  ;;  %698 = vmatpush.bf16.msrb.mxu1 %v1104_v0 }
   0x7   :  { %831 = vmatpush.bf16.msrb.mxu2 %v1104_v0  ;;  %963 = vmatpush.bf16.msrb.mxu3 %v1104_v0 }
  0x82   :  { %v37_v4 = vpop.f32.mrf.mxu0 }
  0x83   :  { %v42_v5 = vrot.slane %v37_v4, 1  ;;  %v43_v9 = vrot.slane %v37_v4, 2  ;;  %v144_v4 = vunpack.c.l.bf16 %v142_v2 }
  0x85   :  { %v46_v7 = vadd.f32 %v42_v5, %v16_v3  ;;  %v47_v11 = vadd.f32 %v43_v9, %v17_v8  ;;  %v143_v3 = vunpack.c.l.bf16 %v141_v1 }
  0x87   :  { %1110 = vtanh.f32 %v46_v7  ;;  %v1081_v14 = vmul.f32 -1.442695, %v46_v7  ;;  %v1082_v15 = vmul.f32 -1.442695, %v47_v11 }
  0x88   :  { %1112 = vtanh.f32 %v47_v11 }
  0x89   :  { %1114 = vpow2.f32 %v1081_v14 }
  0x8a   :  { %v39_v10 = vpop.f32.mrf.mxu0  ;;  %1116 = vpow2.f32 %v1082_v15 }
  0x8d   :  { %v1111_v12 = vpop.eup %1110 }
  0x8e   :  { %92 = vrot.lane.b32.xlu0 %v1111_v12, %s1239_s1  ;;  %v1113_v13 = vpop.eup %1112 }
  0x8f   :  { %v1115_v16 = vpop.eup %1114 }
  0x90   :  { %v54_v17 = vadd.f32 1.0, %v1115_v16  ;;  %v1117_v18 = vpop.eup %1116 }
  0x91   :  { %v55_v19 = vadd.f32 1.0, %v1117_v18 }
  0x92   :  { %1118 = vrcp.f32 %v54_v17  ;;  %v67_v28 = vand.u32 2147483648, %v54_v17  ;;  %vm61_vm1 = vweird.f32 %v54_v17  ;;  %v65_v29 = vand.u32 2147483647, %v54_v17 }
  0x93   :  { %1120 = vrcp.f32 %v55_v19  ;;  %v82_v37 = vand.u32 2147483648, %v55_v19  ;;  %vm76_vm5 = vweird.f32 %v55_v19  ;;  %v80_v38 = vand.u32 2147483647, %v55_v19 }
  0x94   :  { %v68_v32 = vor.u32 1.1754944e-38, %v67_v28  ;;  %vm66_vm3 = vcmp.eq.f32.partialorder %v65_v29, 8.507059e+37 }
  0x95   :  { %v83_v40 = vor.u32 1.1754944e-38, %v82_v37  ;;  %vm81_vm7 = vcmp.eq.f32.partialorder %v80_v38, 8.507059e+37 }
  0x96   :  { %94 = vrot.lane.b32.xlu0 %v1113_v13, %s1239_s1 }
  0x98   :  { %v1119_v20 = vpop.eup %1118 }
  0x99   :  { %v57_v21 = vmul.f32 %v1119_v20, %v54_v17  ;;  %v1121_v23 = vpop.eup %1120  ;;  %vm62_vm0 = vweird.f32 %v1119_v20 }
  0x9a   :  { %v72_v25 = vmul.f32 %v1121_v23, %v55_v19  ;;  %vm63_vm2 = vmor %vm61_vm1, %vm62_vm0  ;;  %vm77_vm4 = vweird.f32 %v1121_v23 }
  0x9b   :  { %v58_v22 = vsub.f32 1.0, %v57_v21  ;;  %vm78_vm6 = vmor %vm76_vm5, %vm77_vm4 }
  0x9c   :  { %v73_v27 = vsub.f32 1.0, %v72_v25 }
  0x9d   :  { %v59_v24 = vmul.f32 %v1119_v20, %v58_v22 }
  0x9e   :  { %v74_v31 = vmul.f32 %v1121_v23, %v73_v27 }
  0x9f   :  { %v60_v26 = vadd.f32 %v1119_v20, %v59_v24 }
  0xa0   :  { %v75_v36 = vadd.f32 %v1121_v23, %v74_v31 }
  0xa1   :  { %v64_v30 = vsel %vm63_vm2, %v1119_v20, %v60_v26 }
  0xa2   :  { %v69_v34 = vsel %vm66_vm3, %v68_v32, %v64_v30  ;;  %v79_v39 = vsel %vm78_vm6, %v1121_v23, %v75_v36 }
  0xa3   :  { %v84_v41 = vsel %vm81_vm7, %v83_v40, %v79_v39  ;;  %v88_v44 = vmul.f32 0.0, %v69_v34 }
  0xa4   :  { %v89_v47 = vmul.f32 0.0, %v84_v41 }
 0x100   :  { %v93_v33 = vpop.permute.xlu0 %92 }
 0x101   :  { %v98_v35 = vmul.f32 %v93_v33, %v69_v34 }
 0x103   :  { %102 = vrot.lane.b32.xlu1 %v98_v35, %s1240_s15 }
 0x108   :  { %v95_v42 = vpop.permute.xlu0 %94 }
 0x109   :  { %v99_v43 = vmul.f32 %v95_v42, %v84_v41 }
 0x10b   :  { %104 = vrot.lane.b32.xlu1 %v99_v43, %s1240_s15 }
 0x175   :  { %v103_v45 = vpop.permute.xlu1 %102 }
 0x176   :  { %v1271_v46 = vadd.f32 %v103_v45, %v88_v44 }
 0x178   :  { %1122 = vtanh.f32 %v1271_v46 }
 0x17d   :  { %v105_v48 = vpop.permute.xlu1 %104 }
 0x17e   :  { %v1123_v49 = vpop.eup %1122  ;;  %v1274_v50 = vadd.f32 %v105_v48, %v89_v47 }
 0x17f   :  { %114 = vrot.lane.b32.xlu2 %v1123_v49, %s1241_s16  ;;  %v219_v49 = vrot.slane %v1271_v46, 1 }
 0x180   :  { %1124 = vtanh.f32 %v1274_v50  ;;  %v220_v43 = vrot.slane %v1274_v50, 1 }
 0x186   :  { %v1125_v51 = vpop.eup %1124 }
 0x187   :  { %116 = vrot.lane.b32.xlu2 %v1125_v51, %s1241_s16 }
 0x1d9   :  { %v115_v52 = vpop.permute.xlu2 %114 }
 0x1da   :  { %v120_v53 = vmul.f32 %v115_v52, %v69_v34 }
 0x1dc   :  { %v1279_v54 = vpack.c.bf16 %v120_v53, %v120_v53 }
 0x1de   :  { %v145_v57 = vunpack.c.l.b16 %v1279_v54 }
 0x1e0   :  { %v147_v60 = vrot.slane %v145_v57, 7 }
 0x1e1   :  { %v117_v55 = vpop.permute.xlu2 %116 }
 0x1e2   :  { %v121_v56 = vmul.f32 %v117_v55, %v84_v41 }
 0x1e4   :  { %v1282_v58 = vpack.c.bf16 %v121_v56, %v121_v56 }
 0x1e6   :  { %v146_v59 = vunpack.c.l.b16 %v1282_v58 }
 0x1e8   :  { %v148_v61 = vrot.slane %v146_v59, 6 }
 0x1ea   :  { %v150_v62 = vsel %vm149_vm8, %v148_v61, %v147_v60 }
 0x1eb   :  { %v151_v63 = vpack.c.b16 %v150_v62, %v150_v62 }
 0x1ed   :  { %152 = vrot.lane.b32.xlu0 %v151_v63, %s1242_s17 }
 0x25f   :  { %v153_v0 = vpop.permute.xlu0 %152 }
 0x260   :  { %1083 = vmatmul.msk.bf16.vlgmr.msra.gmra.mxu1 %vm24_vm9, %v153_v0 }
 0x2dd   :  { %v166_v5 = vpop.f32.mrf.mxu1 }
 0x2de   :  { %v171_v6 = vrot.slane %v166_v5, 2  ;;  %v172_v7 = vrot.slane %v166_v5, 3  ;;  %v276_v5 = vld [vmem:[%s1656_s0 + $0x4] sm:$0x4] }
 0x2e0   :  { %v175_v8 = vadd.f32 %v171_v6, %v143_v3  ;;  %v176_v9 = vadd.f32 %v172_v7, %v144_v4  ;;  %v275_v4 = vld [vmem:[%s1656_s0] sm:$0x4]  ;;  %v278_v7 = vunpack.c.l.bf16 %v276_v5 }
 0x2e1   :  { %v277_v6 = vunpack.c.l.bf16 %v275_v4 }
 0x2e2   :  { %1126 = vtanh.f32 %v175_v8  ;;  %v1085_v13 = vmul.f32 -1.442695, %v176_v9  ;;  %v1084_v17 = vmul.f32 -1.442695, %v175_v8 }
 0x2e3   :  { %1128 = vtanh.f32 %v176_v9 }
 0x2e4   :  { %1130 = vpow2.f32 %v1085_v13 }
 0x2e5   :  { %v168_v10 = vpop.f32.mrf.mxu1 }
 0x2e8   :  { %v1127_v11 = vpop.eup %1126 }
 0x2e9   :  { %v1129_v12 = vpop.eup %1128  ;;  %227 = vrot.lane.b32.xlu1 %v1127_v11, %s1239_s1 }
 0x2ea   :  { %229 = vrot.lane.b32.xlu2 %v1129_v12, %s1239_s1  ;;  %v1131_v14 = vpop.eup %1130 }
 0x2eb   :  { %v184_v15 = vadd.f32 1.0, %v1131_v14 }
 0x2ed   :  { %1132 = vrcp.f32 %v184_v15  ;;  %v211_v24 = vand.u32 2147483648, %v184_v15  ;;  %vm205_vm11 = vweird.f32 %v184_v15  ;;  %v209_v25 = vand.u32 2147483647, %v184_v15 }
 0x2ee   :  { %1134 = vpow2.f32 %v1084_v17 }
 0x2ef   :  { %v212_v27 = vor.u32 1.1754944e-38, %v211_v24  ;;  %vm210_vm13 = vcmp.eq.f32.partialorder %v209_v25, 8.507059e+37 }
 0x2f3   :  { %v1133_v16 = vpop.eup %1132 }
 0x2f4   :  { %v201_v18 = vmul.f32 %v1133_v16, %v184_v15  ;;  %v1135_v20 = vpop.eup %1134  ;;  %vm206_vm10 = vweird.f32 %v1133_v16 }
 0x2f5   :  { %v183_v22 = vadd.f32 1.0, %v1135_v20  ;;  %vm207_vm12 = vmor %vm205_vm11, %vm206_vm10 }
 0x2f6   :  { %v202_v19 = vsub.f32 1.0, %v201_v18 }
 0x2f7   :  { %1136 = vrcp.f32 %v183_v22  ;;  %v196_v36 = vand.u32 2147483648, %v183_v22  ;;  %vm190_vm15 = vweird.f32 %v183_v22  ;;  %v194_v37 = vand.u32 2147483647, %v183_v22 }
 0x2f8   :  { %v203_v21 = vmul.f32 %v1133_v16, %v202_v19 }
 0x2f9   :  { %v197_v39 = vor.u32 1.1754944e-38, %v196_v36  ;;  %vm195_vm1 = vcmp.eq.f32.partialorder %v194_v37, 8.507059e+37 }
 0x2fa   :  { %v204_v23 = vadd.f32 %v1133_v16, %v203_v21 }
 0x2fc   :  { %v208_v26 = vsel %vm207_vm12, %v1133_v16, %v204_v23 }
 0x2fd   :  { %v213_v29 = vsel %vm210_vm13, %v212_v27, %v208_v26  ;;  %v1137_v30 = vpop.eup %1136 }
 0x2fe   :  { %v186_v32 = vmul.f32 %v1137_v30, %v183_v22  ;;  %vm191_vm14 = vweird.f32 %v1137_v30  ;;  %v224_v44 = vmul.f32 %v220_v43, %v213_v29 }
 0x2ff   :  { %vm192_vm0 = vmor %vm190_vm15, %vm191_vm14 }
 0x300   :  { %v187_v33 = vsub.f32 1.0, %v186_v32 }
 0x302   :  { %v188_v34 = vmul.f32 %v1137_v30, %v187_v33 }
 0x304   :  { %v189_v35 = vadd.f32 %v1137_v30, %v188_v34 }
 0x306   :  { %v193_v38 = vsel %vm192_vm0, %v1137_v30, %v189_v35 }
 0x307   :  { %v198_v41 = vsel %vm195_vm1, %v197_v39, %v193_v38 }
 0x308   :  { %v223_v51 = vmul.f32 %v219_v49, %v198_v41 }
 0x344   :  { %v230_v28 = vpop.permute.xlu2 %229 }
 0x345   :  { %v234_v31 = vmul.f32 %v230_v28, %v213_v29 }
 0x347   :  { %239 = vrot.lane.b32.xlu1 %v234_v31, %s1240_s15 }
 0x35b   :  { %v228_v40 = vpop.permute.xlu1 %227 }
 0x35c   :  { %v233_v42 = vmul.f32 %v228_v40, %v198_v41 }
 0x35e   :  { %237 = vrot.lane.b32.xlu0 %v233_v42, %s1240_s15 }
 0x3b9   :  { %v240_v45 = vpop.permute.xlu1 %239 }
 0x3ba   :  { %v1299_v47 = vadd.f32 %v240_v45, %v224_v44 }
 0x3bc   :  { %1138 = vtanh.f32 %v1299_v47  ;;  %v353_v49 = vrot.slane %v1299_v47, 1 }
 0x3c2   :  { %v1139_v48 = vpop.eup %1138 }
 0x3c3   :  { %251 = vrot.lane.b32.xlu0 %v1139_v48, %s1241_s16 }
 0x3d0   :  { %v238_v52 = vpop.permute.xlu0 %237 }
 0x3d1   :  { %v1304_v53 = vadd.f32 %v238_v52, %v223_v51 }
 0x3d3   :  { %1140 = vtanh.f32 %v1304_v53  ;;  %v352_v48 = vrot.slane %v1304_v53, 1 }
 0x3d9   :  { %v1141_v55 = vpop.eup %1140 }
 0x3da   :  { %249 = vrot.lane.b32.xlu2 %v1141_v55, %s1241_s16 }
 0x434   :  { %v250_v50 = vpop.permute.xlu2 %249 }
 0x435   :  { %v252_v56 = vpop.permute.xlu0 %251  ;;  %v255_v57 = vmul.f32 %v250_v50, %v198_v41 }
 0x436   :  { %v256_v59 = vmul.f32 %v252_v56, %v213_v29 }
 0x437   :  { %v1308_v60 = vpack.c.bf16 %v255_v57, %v255_v57 }
 0x438   :  { %v1310_v61 = vpack.c.bf16 %v256_v59, %v256_v59 }
 0x439   :  { %v279_v62 = vunpack.c.l.b16 %v1308_v60 }
 0x43a   :  { %v280_v46 = vunpack.c.l.b16 %v1310_v61 }
 0x43b   :  { %v281_v63 = vrot.slane %v279_v62, 6 }
 0x43c   :  { %v282_v0 = vrot.slane %v280_v46, 5 }
 0x43e   :  { %v283_v1 = vsel %vm149_vm8, %v282_v0, %v281_v63 }
 0x43f   :  { %v284_v2 = vpack.c.b16 %v283_v1, %v283_v1 }
 0x441   :  { %285 = vrot.lane.b32.xlu1 %v284_v2, %s1242_s17 }
 0x4b3   :  { %v286_v3 = vpop.permute.xlu1 %285 }
 0x4b4   :  { %1086 = vmatmul.msk.bf16.vlgmr.msra.gmra.mxu2 %vm24_vm9, %v286_v3 }
 0x537   :  { %v299_v8 = vpop.f32.mrf.mxu2 }
 0x538   :  { %v304_v9 = vrot.slane %v299_v8, 3  ;;  %v305_v10 = vrot.slane %v299_v8, 4 }
 0x53a   :  { %v308_v11 = vadd.f32 %v304_v9, %v277_v6  ;;  %v309_v12 = vadd.f32 %v305_v10, %v278_v7  ;;  %v409_v9 = vld [vmem:[%s1656_s0] sm:$0x4]  ;;  %v410_v10 = vld [vmem:[%s1656_s0 + $0x4] sm:$0x4] }
 0x53c   :  { %1142 = vtanh.f32 %v308_v11  ;;  %v1087_v16 = vmul.f32 -1.442695, %v308_v11  ;;  %v1088_v20 = vmul.f32 -1.442695, %v309_v12  ;;  %v411_v11 = vunpack.c.l.bf16 %v409_v9 }
 0x53d   :  { %1144 = vtanh.f32 %v309_v12  ;;  %v412_v12 = vunpack.c.l.bf16 %v410_v10 }
 0x53e   :  { %1146 = vpow2.f32 %v1087_v16 }
 0x53f   :  { %v301_v13 = vpop.f32.mrf.mxu2 }
 0x542   :  { %v1143_v14 = vpop.eup %1142 }
 0x543   :  { %v1145_v15 = vpop.eup %1144  ;;  %360 = vrot.lane.b32.xlu2 %v1143_v14, %s1239_s1 }
 0x544   :  { %362 = vrot.lane.b32.xlu0 %v1145_v15, %s1239_s1  ;;  %v1147_v17 = vpop.eup %1146 }
 0x545   :  { %v316_v18 = vadd.f32 1.0, %v1147_v17 }
 0x547   :  { %1148 = vrcp.f32 %v316_v18  ;;  %v329_v27 = vand.u32 2147483648, %v316_v18  ;;  %vm323_vm3 = vweird.f32 %v316_v18  ;;  %v327_v28 = vand.u32 2147483647, %v316_v18 }
 0x548   :  { %1150 = vpow2.f32 %v1088_v20 }
 0x549   :  { %v330_v30 = vor.u32 1.1754944e-38, %v329_v27  ;;  %vm328_vm5 = vcmp.eq.f32.partialorder %v327_v28, 8.507059e+37 }
 0x54d   :  { %v1149_v19 = vpop.eup %1148 }
 0x54e   :  { %v319_v21 = vmul.f32 %v1149_v19, %v316_v18  ;;  %v1151_v24 = vpop.eup %1150  ;;  %vm324_vm2 = vweird.f32 %v1149_v19 }
 0x54f   :  { %v317_v25 = vadd.f32 1.0, %v1151_v24  ;;  %vm325_vm4 = vmor %vm323_vm3, %vm324_vm2 }
 0x550   :  { %v320_v22 = vsub.f32 1.0, %v319_v21 }
 0x551   :  { %1152 = vrcp.f32 %v317_v25  ;;  %v344_v39 = vand.u32 2147483648, %v317_v25  ;;  %vm338_vm7 = vweird.f32 %v317_v25  ;;  %v342_v40 = vand.u32 2147483647, %v317_v25 }
 0x552   :  { %v321_v23 = vmul.f32 %v1149_v19, %v320_v22 }
 0x553   :  { %v345_v42 = vor.u32 1.1754944e-38, %v344_v39  ;;  %vm343_vm11 = vcmp.eq.f32.partialorder %v342_v40, 8.507059e+37 }
 0x554   :  { %v322_v26 = vadd.f32 %v1149_v19, %v321_v23 }
 0x556   :  { %v326_v29 = vsel %vm325_vm4, %v1149_v19, %v322_v26 }
 0x557   :  { %v331_v32 = vsel %vm328_vm5, %v330_v30, %v326_v29  ;;  %v1153_v34 = vpop.eup %1152 }
 0x558   :  { %v334_v35 = vmul.f32 %v1153_v34, %v317_v25  ;;  %vm339_vm6 = vweird.f32 %v1153_v34  ;;  %v356_v51 = vmul.f32 %v352_v48, %v331_v32 }
 0x559   :  { %vm340_vm10 = vmor %vm338_vm7, %vm339_vm6 }
 0x55a   :  { %v335_v36 = vsub.f32 1.0, %v334_v35 }
 0x55c   :  { %v336_v37 = vmul.f32 %v1153_v34, %v335_v36 }
 0x55e   :  { %v337_v38 = vadd.f32 %v1153_v34, %v336_v37 }
 0x560   :  { %v341_v41 = vsel %vm340_vm10, %v1153_v34, %v337_v38 }
 0x561   :  { %v346_v44 = vsel %vm343_vm11, %v345_v42, %v341_v41 }
 0x562   :  { %v357_v52 = vmul.f32 %v353_v49, %v346_v44 }
 0x59d   :  { %v361_v31 = vpop.permute.xlu2 %360 }
 0x59e   :  { %v366_v33 = vmul.f32 %v361_v31, %v331_v32 }
 0x5a0   :  { %370 = vrot.lane.b32.xlu1 %v366_v33, %s1240_s15 }
 0x5b6   :  { %v363_v43 = vpop.permute.xlu0 %362 }
 0x5b7   :  { %v367_v45 = vmul.f32 %v363_v43, %v346_v44 }
 0x5b9   :  { %372 = vrot.lane.b32.xlu2 %v367_v45, %s1240_s15 }
 0x612   :  { %v371_v55 = vpop.permute.xlu1 %370 }
 0x613   :  { %v373_v50 = vpop.permute.xlu2 %372  ;;  %v1329_v56 = vadd.f32 %v371_v55, %v356_v51 }
 0x614   :  { %v1331_v57 = vadd.f32 %v373_v50, %v357_v52 }
 0x615   :  { %1154 = vtanh.f32 %v1329_v56  ;;  %v486_v50 = vrot.slane %v1329_v56, 1 }
 0x616   :  { %1156 = vtanh.f32 %v1331_v57 }
 0x61b   :  { %v1155_v59 = vpop.eup %1154 }
 0x61c   :  { %v1157_v62 = vpop.eup %1156  ;;  %382 = vrot.lane.b32.xlu0 %v1155_v59, %s1241_s16 }
 0x61d   :  { %384 = vrot.lane.b32.xlu1 %v1157_v62, %s1241_s16 }
 0x68e   :  { %v383_v53 = vpop.permute.xlu0 %382 }
 0x68f   :  { %v385_v47 = vpop.permute.xlu1 %384  ;;  %v388_v46 = vmul.f32 %v383_v53, %v331_v32 }
 0x690   :  { %v389_v63 = vmul.f32 %v385_v47, %v346_v44 }
 0x691   :  { %v1337_v0 = vpack.c.bf16 %v388_v46, %v388_v46  ;;  %v487_v46 = vrot.slane %v1331_v57, 1 }
 0x692   :  { %v1339_v1 = vpack.c.bf16 %v389_v63, %v389_v63 }
 0x693   :  { %v413_v2 = vunpack.c.l.b16 %v1337_v0 }
 0x694   :  { %v414_v3 = vunpack.c.l.b16 %v1339_v1 }
 0x695   :  { %v415_v4 = vrot.slane %v413_v2, 5 }
 0x696   :  { %v416_v5 = vrot.slane %v414_v3, 4 }
 0x698   :  { %v417_v6 = vsel %vm149_vm8, %v416_v5, %v415_v4 }
 0x699   :  { %v418_v7 = vpack.c.b16 %v417_v6, %v417_v6 }
 0x69b   :  { %419 = vrot.lane.b32.xlu2 %v418_v7, %s1242_s17 }
 0x6f5   :  { %v420_v8 = vpop.permute.xlu2 %419 }
 0x6f6   :  { %1089 = vmatmul.msk.bf16.vlgmr.msra.gmra.mxu3 %vm24_vm9, %v420_v8 }
 0x779   :  { %v433_v13 = vpop.f32.mrf.mxu3 }
 0x77a   :  { %v438_v14 = vrot.slane %v433_v13, 4  ;;  %v439_v15 = vrot.slane %v433_v13, 5 }
 0x77c   :  { %v442_v16 = vadd.f32 %v438_v14, %v411_v11  ;;  %v443_v17 = vadd.f32 %v439_v15, %v412_v12 }
 0x77e   :  { %1158 = vtanh.f32 %v442_v16  ;;  %v1090_v21 = vmul.f32 -1.442695, %v442_v16  ;;  %v1091_v22 = vmul.f32 -1.442695, %v443_v17  ;;  %v542_v16 = vld [vmem:[%s1656_s0] sm:$0x2] }
 0x77f   :  { %1160 = vtanh.f32 %v443_v17  ;;  %v543_v17 = vld [vmem:[%s1656_s0 + $0x4] sm:$0x2] }
 0x780   :  { %1162 = vpow2.f32 %v1090_v21 }
 0x781   :  { %v435_v18 = vpop.f32.mrf.mxu3  ;;  %1164 = vpow2.f32 %v1091_v22 }
 0x782   :  { %v544_v18 = vunpack.c.l.bf16 %v542_v16 }
 0x784   :  { %v1159_v19 = vpop.eup %1158 }
 0x785   :  { %v1161_v20 = vpop.eup %1160  ;;  %494 = vrot.lane.b32.xlu0 %v1159_v19, %s1239_s1  ;;  %v545_v19 = vunpack.c.l.bf16 %v543_v17 }
 0x786   :  { %496 = vrot.lane.b32.xlu1 %v1161_v20, %s1239_s1  ;;  %v1163_v23 = vpop.eup %1162 }
 0x787   :  { %v1165_v24 = vpop.eup %1164  ;;  %v450_v25 = vadd.f32 1.0, %v1163_v23 }
 0x788   :  { %v451_v26 = vadd.f32 1.0, %v1165_v24 }
 0x789   :  { %1166 = vrcp.f32 %v450_v25  ;;  %v463_v37 = vand.u32 2147483648, %v450_v25  ;;  %vm457_vm14 = vweird.f32 %v450_v25  ;;  %v461_v39 = vand.u32 2147483647, %v450_v25 }
 0x78a   :  { %1168 = vrcp.f32 %v451_v26  ;;  %v478_v38 = vand.u32 2147483648, %v451_v26  ;;  %vm472_vm15 = vweird.f32 %v451_v26  ;;  %v476_v40 = vand.u32 2147483647, %v451_v26 }
 0x78b   :  { %v464_v43 = vor.u32 1.1754944e-38, %v463_v37  ;;  %vm462_vm2 = vcmp.eq.f32.partialorder %v461_v39, 8.507059e+37 }
 0x78c   :  { %v479_v44 = vor.u32 1.1754944e-38, %v478_v38  ;;  %vm477_vm3 = vcmp.eq.f32.partialorder %v476_v40, 8.507059e+37 }
 0x78f   :  { %v1167_v27 = vpop.eup %1166 }
 0x790   :  { %v1169_v28 = vpop.eup %1168  ;;  %v453_v29 = vmul.f32 %v1167_v27, %v450_v25  ;;  %vm458_vm12 = vweird.f32 %v1167_v27 }
 0x791   :  { %v468_v30 = vmul.f32 %v1169_v28, %v451_v26  ;;  %vm473_vm13 = vweird.f32 %v1169_v28  ;;  %vm459_vm0 = vmor %vm457_vm14, %vm458_vm12 }
 0x792   :  { %v454_v31 = vsub.f32 1.0, %v453_v29  ;;  %vm474_vm1 = vmor %vm472_vm15, %vm473_vm13 }
 0x793   :  { %v469_v32 = vsub.f32 1.0, %v468_v30 }
 0x794   :  { %v455_v33 = vmul.f32 %v1167_v27, %v454_v31 }
 0x795   :  { %v470_v34 = vmul.f32 %v1169_v28, %v469_v32 }
 0x796   :  { %v456_v35 = vadd.f32 %v1167_v27, %v455_v33 }
 0x797   :  { %v471_v36 = vadd.f32 %v1169_v28, %v470_v34 }
 0x798   :  { %v460_v41 = vsel %vm459_vm0, %v1167_v27, %v456_v35 }
 0x799   :  { %v475_v42 = vsel %vm474_vm1, %v1169_v28, %v471_v36  ;;  %v465_v48 = vsel %vm462_vm2, %v464_v43, %v460_v41 }
 0x79a   :  { %v480_v51 = vsel %vm477_vm3, %v479_v44, %v475_v42  ;;  %v490_v59 = vmul.f32 %v486_v50, %v465_v48 }
 0x79b   :  { %v491_v63 = vmul.f32 %v487_v46, %v480_v51 }
 0x7f7   :  { %v495_v45 = vpop.permute.xlu0 %494 }
 0x7f8   :  { %v497_v49 = vpop.permute.xlu1 %496  ;;  %v500_v52 = vmul.f32 %v495_v45, %v465_v48 }
 0x7f9   :  { %v501_v55 = vmul.f32 %v497_v49, %v480_v51 }
 0x7fa   :  { %504 = vrot.lane.b32.xlu2 %v500_v52, %s1240_s15 }
 0x7fb   :  { %506 = vrot.lane.b32.xlu0 %v501_v55, %s1240_s15 }
 0x854   :  { %v505_v62 = vpop.permute.xlu2 %504 }
 0x855   :  { %v1357_v53 = vadd.f32 %v505_v62, %v490_v59 }
 0x857   :  { %1170 = vtanh.f32 %v1357_v53 }
 0x85d   :  { %v1171_v47 = vpop.eup %1170 }
 0x85e   :  { %516 = vrot.lane.b32.xlu1 %v1171_v47, %s1241_s16 }
 0x86d   :  { %v507_v2 = vpop.permute.xlu0 %506 }
 0x86e   :  { %v1362_v3 = vadd.f32 %v507_v2, %v491_v63 }
 0x870   :  { %1172 = vtanh.f32 %v1362_v3 }
 0x876   :  { %v1173_v4 = vpop.eup %1172 }
 0x877   :  { %518 = vrot.lane.b32.xlu2 %v1173_v4, %s1241_s16  ;;  %v620_v4 = vrot.slane %v1362_v3, 1 }
 0x8d0   :  { %v517_v56 = vpop.permute.xlu1 %516 }
 0x8d1   :  { %v519_v5 = vpop.permute.xlu2 %518  ;;  %v522_v6 = vmul.f32 %v517_v56, %v465_v48 }
 0x8d2   :  { %v523_v7 = vmul.f32 %v519_v5, %v480_v51 }
 0x8d3   :  { %v1366_v8 = vpack.c.bf16 %v522_v6, %v522_v6 }
 0x8d4   :  { %v1368_v9 = vpack.c.bf16 %v523_v7, %v523_v7 }
 0x8d5   :  { %v546_v10 = vunpack.c.l.b16 %v1366_v8 }
 0x8d6   :  { %v547_v57 = vunpack.c.l.b16 %v1368_v9 }
 0x8d7   :  { %v548_v11 = vrot.slane %v546_v10, 4  ;;  %v619_v10 = vrot.slane %v1357_v53, 1 }
 0x8d8   :  { %v549_v12 = vrot.slane %v547_v57, 3 }
 0x8da   :  { %v550_v13 = vsel %vm149_vm8, %v549_v12, %v548_v11 }
 0x8db   :  { %v551_v14 = vpack.c.b16 %v550_v13, %v550_v13 }
 0x8dd   :  { %552 = vrot.lane.b32.xlu0 %v551_v14, %s1242_s17 }
 0x94f   :  { %v553_v15 = vpop.permute.xlu0 %552 }
 0x950   :  { %1092 = vmatmul.msk.bf16.vlgmr.msrb.gmra.mxu0 %vm24_vm9, %v553_v15 }
 0x9cd   :  { %v566_v20 = vpop.f32.mrf.mxu0 }
 0x9ce   :  { %v571_v21 = vrot.slane %v566_v20, 5  ;;  %v572_v22 = vrot.slane %v566_v20, 6 }
 0x9d0   :  { %v575_v23 = vadd.f32 %v571_v21, %v544_v18  ;;  %v576_v24 = vadd.f32 %v572_v22, %v545_v19 }
 0x9d2   :  { %1174 = vtanh.f32 %v575_v23  ;;  %v1094_v28 = vmul.f32 -1.442695, %v576_v24  ;;  %v1093_v32 = vmul.f32 -1.442695, %v575_v23 }
 0x9d3   :  { %1176 = vtanh.f32 %v576_v24 }
 0x9d4   :  { %1178 = vpow2.f32 %v1094_v28 }
 0x9d5   :  { %v568_v25 = vpop.f32.mrf.mxu0 }
 0x9d6   :  { %v676_v25 = vld [vmem:[%s1656_s0] sm:$0x2] }
 0x9d8   :  { %v1175_v26 = vpop.eup %1174 }
 0x9d9   :  { %v1177_v27 = vpop.eup %1176  ;;  %627 = vrot.lane.b32.xlu1 %v1175_v26, %s1239_s1  ;;  %v677_v26 = vld [vmem:[%s1656_s0 + $0x4] sm:$0x2] }
 0x9da   :  { %629 = vrot.lane.b32.xlu2 %v1177_v27, %s1239_s1  ;;  %v1179_v29 = vpop.eup %1178  ;;  %v678_v27 = vunpack.c.l.bf16 %v676_v25  ;;  %v679_v28 = vunpack.c.l.bf16 %v677_v26 }
 0x9db   :  { %v584_v30 = vadd.f32 1.0, %v1179_v29 }
 0x9dd   :  { %1180 = vrcp.f32 %v584_v30  ;;  %v611_v39 = vand.u32 2147483648, %v584_v30  ;;  %vm605_vm5 = vweird.f32 %v584_v30  ;;  %v609_v40 = vand.u32 2147483647, %v584_v30 }
 0x9de   :  { %1182 = vpow2.f32 %v1093_v32 }
 0x9df   :  { %v612_v42 = vor.u32 1.1754944e-38, %v611_v39  ;;  %vm610_vm7 = vcmp.eq.f32.partialorder %v609_v40, 8.507059e+37 }
 0x9e3   :  { %v1181_v31 = vpop.eup %1180 }
 0x9e4   :  { %v601_v33 = vmul.f32 %v1181_v31, %v584_v30  ;;  %v1183_v35 = vpop.eup %1182  ;;  %vm606_vm4 = vweird.f32 %v1181_v31 }
 0x9e5   :  { %v583_v37 = vadd.f32 1.0, %v1183_v35  ;;  %vm607_vm6 = vmor %vm605_vm5, %vm606_vm4 }
 0x9e6   :  { %v602_v34 = vsub.f32 1.0, %v601_v33 }
 0x9e7   :  { %1184 = vrcp.f32 %v583_v37  ;;  %v596_v50 = vand.u32 2147483648, %v583_v37  ;;  %vm590_vm11 = vweird.f32 %v583_v37  ;;  %v594_v59 = vand.u32 2147483647, %v583_v37 }
 0x9e8   :  { %v603_v36 = vmul.f32 %v1181_v31, %v602_v34 }
 0x9e9   :  { %v597_v47 = vor.u32 1.1754944e-38, %v596_v50  ;;  %vm595_vm13 = vcmp.eq.f32.partialorder %v594_v59, 8.507059e+37 }
 0x9ea   :  { %v604_v38 = vadd.f32 %v1181_v31, %v603_v36 }
 0x9ec   :  { %v608_v41 = vsel %vm607_vm6, %v1181_v31, %v604_v38 }
 0x9ed   :  { %v613_v44 = vsel %vm610_vm7, %v612_v42, %v608_v41  ;;  %v1185_v45 = vpop.eup %1184 }
 0x9ee   :  { %v586_v49 = vmul.f32 %v1185_v45, %v583_v37  ;;  %vm591_vm10 = vweird.f32 %v1185_v45  ;;  %v624_v56 = vmul.f32 %v620_v4, %v613_v44 }
 0x9ef   :  { %vm592_vm12 = vmor %vm590_vm11, %vm591_vm10 }
 0x9f0   :  { %v587_v51 = vsub.f32 1.0, %v586_v49 }
 0x9f2   :  { %v588_v52 = vmul.f32 %v1185_v45, %v587_v51 }
 0x9f4   :  { %v589_v55 = vadd.f32 %v1185_v45, %v588_v52 }
 0x9f6   :  { %v593_v62 = vsel %vm592_vm12, %v1185_v45, %v589_v55 }
 0x9f7   :  { %v598_v63 = vsel %vm595_vm13, %v597_v47, %v593_v62 }
 0x9f8   :  { %v623_v57 = vmul.f32 %v619_v10, %v598_v63 }
 0xa34   :  { %v630_v43 = vpop.permute.xlu2 %629 }
 0xa35   :  { %v634_v48 = vmul.f32 %v630_v43, %v613_v44 }
 0xa37   :  { %639 = vrot.lane.b32.xlu1 %v634_v48, %s1240_s15 }
 0xa4b   :  { %v628_v46 = vpop.permute.xlu1 %627 }
 0xa4c   :  { %v633_v2 = vmul.f32 %v628_v46, %v598_v63 }
 0xa4e   :  { %637 = vrot.lane.b32.xlu0 %v633_v2, %s1240_s15 }
 0xaa9   :  { %v640_v5 = vpop.permute.xlu1 %639 }
 0xaaa   :  { %v1386_v6 = vadd.f32 %v640_v5, %v624_v56 }
 0xaac   :  { %1186 = vtanh.f32 %v1386_v6 }
 0xab2   :  { %v1187_v7 = vpop.eup %1186 }
 0xab3   :  { %651 = vrot.lane.b32.xlu0 %v1187_v7, %s1241_s16 }
 0xac0   :  { %v638_v11 = vpop.permute.xlu0 %637 }
 0xac1   :  { %v1391_v12 = vadd.f32 %v638_v11, %v623_v57 }
 0xac3   :  { %1188 = vtanh.f32 %v1391_v12 }
 0xac9   :  { %v1189_v13 = vpop.eup %1188 }
 0xaca   :  { %649 = vrot.lane.b32.xlu2 %v1189_v13, %s1241_s16 }
 0xb24   :  { %v650_v3 = vpop.permute.xlu2 %649 }
 0xb25   :  { %v652_v14 = vpop.permute.xlu0 %651  ;;  %v655_v15 = vmul.f32 %v650_v3, %v598_v63 }
 0xb26   :  { %v656_v16 = vmul.f32 %v652_v14, %v613_v44  ;;  %v753_v14 = vrot.slane %v1391_v12, 1 }
 0xb27   :  { %v1395_v17 = vpack.c.bf16 %v655_v15, %v655_v15  ;;  %v754_v15 = vrot.slane %v1386_v6, 1 }
 0xb28   :  { %v1397_v18 = vpack.c.bf16 %v656_v16, %v656_v16 }
 0xb29   :  { %v680_v19 = vunpack.c.l.b16 %v1395_v17 }
 0xb2a   :  { %v681_v53 = vunpack.c.l.b16 %v1397_v18 }
 0xb2b   :  { %v682_v20 = vrot.slane %v680_v19, 3 }
 0xb2c   :  { %v683_v21 = vrot.slane %v681_v53, 2 }
 0xb2e   :  { %v684_v22 = vsel %vm149_vm8, %v683_v21, %v682_v20 }
 0xb2f   :  { %v685_v23 = vpack.c.b16 %v684_v22, %v684_v22 }
 0xb31   :  { %686 = vrot.lane.b32.xlu1 %v685_v23, %s1242_s17 }
 0xba3   :  { %v687_v24 = vpop.permute.xlu1 %686 }
 0xba4   :  { %1095 = vmatmul.msk.bf16.vlgmr.msrb.gmra.mxu1 %vm24_vm9, %v687_v24 }
 0xc21   :  { %v700_v29 = vpop.f32.mrf.mxu1 }
 0xc22   :  { %v705_v30 = vrot.slane %v700_v29, 6  ;;  %v706_v31 = vrot.slane %v700_v29, 7 }
 0xc24   :  { %v709_v32 = vadd.f32 %v705_v30, %v678_v27  ;;  %v710_v33 = vadd.f32 %v706_v31, %v679_v28 }
 0xc26   :  { %1190 = vtanh.f32 %v709_v32  ;;  %v1096_v37 = vmul.f32 -1.442695, %v709_v32  ;;  %v1097_v41 = vmul.f32 -1.442695, %v710_v33 }
 0xc27   :  { %1192 = vtanh.f32 %v710_v33 }
 0xc28   :  { %1194 = vpow2.f32 %v1096_v37  ;;  %v809_v37 = vld [vmem:[%s1656_s0] sm:$0x1] }
 0xc29   :  { %v702_v34 = vpop.f32.mrf.mxu1 }
 0xc2c   :  { %v1191_v35 = vpop.eup %1190 }
 0xc2d   :  { %v1193_v36 = vpop.eup %1192  ;;  %761 = vrot.lane.b32.xlu2 %v1191_v35, %s1239_s1 }
 0xc2e   :  { %763 = vrot.lane.b32.xlu0 %v1193_v36, %s1239_s1  ;;  %v1195_v38 = vpop.eup %1194  ;;  %v810_v36 = vld [vmem:[%s1656_s0 + $0x4] sm:$0x1] }
 0xc2f   :  { %v717_v39 = vadd.f32 1.0, %v1195_v38  ;;  %v812_v38 = vunpack.c.l.bf16 %v810_v36 }
 0xc31   :  { %1196 = vrcp.f32 %v717_v39  ;;  %v730_v51 = vand.u32 2147483648, %v717_v39  ;;  %vm724_vm15 = vweird.f32 %v717_v39  ;;  %v728_v52 = vand.u32 2147483647, %v717_v39 }
 0xc32   :  { %1198 = vpow2.f32 %v1097_v41 }
 0xc33   :  { %v731_v50 = vor.u32 1.1754944e-38, %v730_v51  ;;  %vm729_vm1 = vcmp.eq.f32.partialorder %v728_v52, 8.507059e+37 }
 0xc37   :  { %v1197_v40 = vpop.eup %1196 }
 0xc38   :  { %v720_v42 = vmul.f32 %v1197_v40, %v717_v39  ;;  %v1199_v45 = vpop.eup %1198  ;;  %vm725_vm14 = vweird.f32 %v1197_v40  ;;  %v811_v39 = vunpack.c.l.bf16 %v809_v37 }
 0xc39   :  { %v718_v48 = vadd.f32 1.0, %v1199_v45  ;;  %vm726_vm0 = vmor %vm724_vm15, %vm725_vm14 }
 0xc3a   :  { %v721_v43 = vsub.f32 1.0, %v720_v42 }
 0xc3b   :  { %1200 = vrcp.f32 %v718_v48  ;;  %v745_v5 = vand.u32 2147483648, %v718_v48  ;;  %vm739_vm3 = vweird.f32 %v718_v48  ;;  %v743_v7 = vand.u32 2147483647, %v718_v48 }
 0xc3c   :  { %v722_v44 = vmul.f32 %v1197_v40, %v721_v43 }
 0xc3d   :  { %v746_v57 = vor.u32 1.1754944e-38, %v745_v5  ;;  %vm744_vm5 = vcmp.eq.f32.partialorder %v743_v7, 8.507059e+37 }
 0xc3e   :  { %v723_v49 = vadd.f32 %v1197_v40, %v722_v44 }
 0xc40   :  { %v727_v55 = vsel %vm726_vm0, %v1197_v40, %v723_v49 }
 0xc41   :  { %v732_v62 = vsel %vm729_vm1, %v731_v50, %v727_v55  ;;  %v1201_v46 = vpop.eup %1200 }
 0xc42   :  { %v735_v63 = vmul.f32 %v1201_v46, %v718_v48  ;;  %vm740_vm2 = vweird.f32 %v1201_v46  ;;  %v757_v16 = vmul.f32 %v753_v14, %v732_v62 }
 0xc43   :  { %vm741_vm4 = vmor %vm739_vm3, %vm740_vm2 }
 0xc44   :  { %v736_v2 = vsub.f32 1.0, %v735_v63 }
 0xc46   :  { %v737_v4 = vmul.f32 %v1201_v46, %v736_v2 }
 0xc48   :  { %v738_v56 = vadd.f32 %v1201_v46, %v737_v4 }
 0xc4a   :  { %v742_v10 = vsel %vm741_vm4, %v1201_v46, %v738_v56 }
 0xc4b   :  { %v747_v13 = vsel %vm744_vm5, %v746_v57, %v742_v10 }
 0xc4c   :  { %v758_v19 = vmul.f32 %v754_v15, %v747_v13 }
 0xc87   :  { %v762_v59 = vpop.permute.xlu2 %761 }
 0xc88   :  { %v767_v47 = vmul.f32 %v762_v59, %v732_v62 }
 0xc8a   :  { %771 = vrot.lane.b32.xlu1 %v767_v47, %s1240_s15 }
 0xca0   :  { %v764_v11 = vpop.permute.xlu0 %763 }
 0xca1   :  { %v768_v3 = vmul.f32 %v764_v11, %v747_v13 }
 0xca3   :  { %773 = vrot.lane.b32.xlu2 %v768_v3, %s1240_s15 }
 0xcfc   :  { %v772_v53 = vpop.permute.xlu1 %771 }
 0xcfd   :  { %v774_v20 = vpop.permute.xlu2 %773  ;;  %v1416_v21 = vadd.f32 %v772_v53, %v757_v16 }
 0xcfe   :  { %v1418_v22 = vadd.f32 %v774_v20, %v758_v19 }
 0xcff   :  { %1202 = vtanh.f32 %v1416_v21 }
 0xd00   :  { %1204 = vtanh.f32 %v1418_v22 }
 0xd05   :  { %v1203_v23 = vpop.eup %1202 }
 0xd06   :  { %v1205_v24 = vpop.eup %1204  ;;  %783 = vrot.lane.b32.xlu0 %v1203_v23, %s1241_s16 }
 0xd07   :  { %785 = vrot.lane.b32.xlu1 %v1205_v24, %s1241_s16 }
 0xd78   :  { %v784_v12 = vpop.permute.xlu0 %783 }
 0xd79   :  { %v786_v6 = vpop.permute.xlu1 %785  ;;  %v789_v25 = vmul.f32 %v784_v12, %v732_v62 }
 0xd7a   :  { %v790_v26 = vmul.f32 %v786_v6, %v747_v13 }
 0xd7b   :  { %v1424_v27 = vpack.c.bf16 %v789_v25, %v789_v25  ;;  %v885_v25 = vrot.slane %v1416_v21, 1 }
 0xd7c   :  { %v1426_v28 = vpack.c.bf16 %v790_v26, %v790_v26 }
 0xd7d   :  { %v813_v29 = vunpack.c.l.b16 %v1424_v27 }
 0xd7e   :  { %v814_v30 = vunpack.c.l.b16 %v1426_v28 }
 0xd7f   :  { %v815_v31 = vrot.slane %v813_v29, 2 }
 0xd80   :  { %v816_v32 = vrot.slane %v814_v30, 1 }
 0xd82   :  { %v817_v33 = vsel %vm149_vm8, %v816_v32, %v815_v31  ;;  %v886_v32 = vrot.slane %v1418_v22, 1 }
 0xd83   :  { %v818_v34 = vpack.c.b16 %v817_v33, %v817_v33 }
 0xd85   :  { %819 = vrot.lane.b32.xlu2 %v818_v34, %s1242_s17 }
 0xddf   :  { %v820_v35 = vpop.permute.xlu2 %819 }
 0xde0   :  { %1098 = vmatmul.msk.bf16.vlgmr.msrb.gmra.mxu2 %vm24_vm9, %v820_v35 }
 0xe63   :  { %v833_v40 = vpop.f32.mrf.mxu2 }
 0xe64   :  { %v838_v41 = vrot.slane %v833_v40, 7  ;;  %v842_v42 = vadd.f32 %v833_v40, %v812_v38 }
 0xe66   :  { %v841_v43 = vadd.f32 %v838_v41, %v811_v39  ;;  %1206 = vtanh.f32 %v842_v42  ;;  %v1100_v49 = vmul.f32 -1.442695, %v842_v42 }
 0xe68   :  { %1208 = vtanh.f32 %v841_v43  ;;  %v1099_v51 = vmul.f32 -1.442695, %v841_v43 }
 0xe69   :  { %1210 = vpow2.f32 %v1100_v49  ;;  %v942_v49 = vld [vmem:[%s1656_s0] sm:$0x1] }
 0xe6a   :  { %1212 = vpow2.f32 %v1099_v51  ;;  %v943_v51 = vld [vmem:[%s1656_s0 + $0x4] sm:$0x1] }
 0xe6b   :  { %v835_v44 = vpop.f32.mrf.mxu2 }
 0xe6c   :  { %v1207_v45 = vpop.eup %1206 }
 0xe6d   :  { %895 = vrot.lane.b32.xlu1 %v1207_v45, %s1239_s1 }
 0xe6e   :  { %v1209_v48 = vpop.eup %1208 }
 0xe6f   :  { %893 = vrot.lane.b32.xlu0 %v1209_v48, %s1239_s1  ;;  %v1211_v52 = vpop.eup %1210 }
 0xe70   :  { %v1213_v55 = vpop.eup %1212  ;;  %v850_v50 = vadd.f32 1.0, %v1211_v52  ;;  %v944_v52 = vunpack.c.l.bf16 %v942_v49 }
 0xe71   :  { %v849_v59 = vadd.f32 1.0, %v1213_v55  ;;  %v945_v55 = vunpack.c.l.bf16 %v943_v51 }
 0xe72   :  { %1214 = vrcp.f32 %v850_v50  ;;  %v877_v10 = vand.u32 2147483648, %v850_v50  ;;  %vm871_vm7 = vweird.f32 %v850_v50  ;;  %v875_v57 = vand.u32 2147483647, %v850_v50 }
 0xe73   :  { %1216 = vrcp.f32 %v849_v59  ;;  %v862_v3 = vand.u32 2147483648, %v849_v59  ;;  %vm856_vm12 = vweird.f32 %v849_v59  ;;  %v860_v15 = vand.u32 2147483647, %v849_v59 }
 0xe74   :  { %v878_v14 = vor.u32 1.1754944e-38, %v877_v10  ;;  %vm876_vm13 = vcmp.eq.f32.partialorder %v875_v57, 8.507059e+37 }
 0xe75   :  { %v863_v23 = vor.u32 1.1754944e-38, %v862_v3  ;;  %vm861_vm15 = vcmp.eq.f32.partialorder %v860_v15, 8.507059e+37 }
 0xe78   :  { %v1215_v62 = vpop.eup %1214 }
 0xe79   :  { %v1217_v47 = vpop.eup %1216  ;;  %v867_v46 = vmul.f32 %v1215_v62, %v850_v50  ;;  %vm872_vm6 = vweird.f32 %v1215_v62 }
 0xe7a   :  { %v852_v63 = vmul.f32 %v1217_v47, %v849_v59  ;;  %vm873_vm10 = vmor %vm871_vm7, %vm872_vm6  ;;  %vm857_vm11 = vweird.f32 %v1217_v47  ;;  %vm132_vm6 = vcmask 125955   ;;  %vm133_vm7 = vsmask.f32 7950 }
 0xe7b   :  { %v868_v2 = vsub.f32 1.0, %v867_v46  ;;  %vm858_vm14 = vmor %vm856_vm12, %vm857_vm11  ;;  %vm400_vm11 = vcmask 124930   ;;  %vm401_vm12 = vsmask.f32 7946 }
 0xe7c   :  { %v853_v4 = vsub.f32 1.0, %v852_v63 }
 0xe7d   :  { %v869_v56 = vmul.f32 %v1215_v62, %v868_v2 }
 0xe7e   :  { %v854_v5 = vmul.f32 %v1217_v47, %v853_v4 }
 0xe7f   :  { %v870_v7 = vadd.f32 %v1215_v62, %v869_v56 }
 0xe80   :  { %v855_v11 = vadd.f32 %v1217_v47, %v854_v5 }
 0xe81   :  { %v874_v13 = vsel %vm873_vm10, %v1215_v62, %v870_v7  ;;  %vm1488_vm10 = vmand %vm132_vm6, %vm133_vm7 }
 0xe82   :  { %v879_v19 = vsel %vm876_vm13, %v878_v14, %v874_v13  ;;  %v859_v53 = vsel %vm858_vm14, %v1217_v47, %v855_v11  ;;  %vm1502_vm13 = vmand %vm400_vm11, %vm401_vm12  ;;  %vm933_vm14 = vcmask 122880  }
 0xe83   :  { %v864_v12 = vsel %vm861_vm15, %v863_v23, %v859_v53  ;;  %v890_v33 = vmul.f32 %v886_v32, %v879_v19  ;;  %vm934_vm15 = vsmask.f32 7938 }
 0xe84   :  { %v889_v26 = vmul.f32 %v885_v25, %v864_v12 }
 0xedf   :  { %v896_v16 = vpop.permute.xlu1 %895 }
 0xee0   :  { %v900_v20 = vmul.f32 %v896_v16, %v879_v19 }
 0xee1   :  { %v894_v24 = vpop.permute.xlu0 %893 }
 0xee2   :  { %905 = vrot.lane.b32.xlu0 %v900_v20, %s1240_s15  ;;  %v899_v6 = vmul.f32 %v894_v24, %v864_v12 }
 0xee4   :  { %903 = vrot.lane.b32.xlu2 %v899_v6, %s1240_s15 }
 0xf3e   :  { %v904_v29 = vpop.permute.xlu2 %903 }
 0xf3f   :  { %v1444_v30 = vadd.f32 %v904_v29, %v889_v26 }
 0xf41   :  { %1218 = vtanh.f32 %v1444_v30  ;;  %v1017_v49 = vrot.slane %v1444_v30, 1  ;;  %v936_v30 = vld [vmem:[%s1657_s2] sm:$0x1] }
 0xf47   :  { %v1219_v31 = vpop.eup %1218 }
 0xf48   :  { %915 = vrot.lane.b32.xlu1 %v1219_v31, %s1241_s16 }
 0xf54   :  { %v906_v34 = vpop.permute.xlu0 %905 }
 0xf55   :  { %v1449_v35 = vadd.f32 %v906_v34, %v890_v33 }
 0xf57   :  { %1220 = vtanh.f32 %v1449_v35 }
 0xf5d   :  { %v1221_v36 = vpop.eup %1220 }
 0xf5e   :  { %917 = vrot.lane.b32.xlu2 %v1221_v36, %s1241_s16 }
 0xfb8   :  { %v918_v21 = vpop.permute.xlu2 %917 }
 0xfb9   :  { %v922_v37 = vmul.f32 %v918_v21, %v879_v19 }
 0xfba   :  { %v916_v38 = vpop.permute.xlu1 %915 }
 0xfbb   :  { %v921_v39 = vmul.f32 %v916_v38, %v864_v12  ;;  %v1453_v40 = vpack.c.bf16 %v922_v37, %v922_v37 }
 0xfbd   :  { %v1455_v41 = vpack.c.bf16 %v921_v39, %v921_v39  ;;  %v947_v22 = vunpack.c.l.b16 %v1453_v40 }
 0xfbf   :  { %v946_v42 = vunpack.c.l.b16 %v1455_v41 }
 0xfc1   :  { %v948_v43 = vrot.slane %v946_v42, 1 }
 0xfc3   :  { %v949_v44 = vsel %vm149_vm8, %v947_v22, %v948_v43 }
 0xfc4   :  { %v950_v45 = vpack.c.b16 %v949_v44, %v949_v44  ;;  %v406_v44 = vld [vmem:[%s1657_s2 + $0x4] sm:$0x4] }
 0xfc6   :  { %951 = vrot.lane.b32.xlu0 %v950_v45, %s1242_s17 }
0x1038   :  { %v952_v48 = vpop.permute.xlu0 %951 }
0x1039   :  { %1101 = vmatmul.msk.bf16.vlgmr.msrb.gmra.mxu3 %vm24_vm9, %v952_v48 }
0x10bc   :  { %v965_v50 = vpop.f32.mrf.mxu3 }
0x10bd   :  { %v970_v59 = vrot.slane %v965_v50, 1  ;;  %v973_v62 = vadd.f32 %v965_v50, %v944_v52 }
0x10bf   :  { %v974_v47 = vadd.f32 %v970_v59, %v945_v55  ;;  %1222 = vtanh.f32 %v973_v62  ;;  %v1102_v7 = vmul.f32 -1.442695, %v973_v62 }
0x10c1   :  { %1224 = vtanh.f32 %v974_v47  ;;  %v1103_v4 = vmul.f32 -1.442695, %v974_v47 }
0x10c3   :  { %1226 = vpow2.f32 %v1103_v4  ;;  %v670_v4 = vld [vmem:[%s1657_s2] sm:$0x2] }
0x10c4   :  { %v967_v46 = vpop.f32.mrf.mxu3 }
0x10c5   :  { %v1223_v63 = vpop.eup %1222 }
0x10c6   :  { %1025 = vrot.lane.b32.xlu1 %v1223_v63, %s1239_s1 }
0x10c7   :  { %v1225_v2 = vpop.eup %1224 }
0x10c8   :  { %1027 = vrot.lane.b32.xlu2 %v1225_v2, %s1239_s1 }
0x10c9   :  { %v1227_v56 = vpop.eup %1226 }
0x10ca   :  { %v982_v5 = vadd.f32 1.0, %v1227_v56 }
0x10cc   :  { %1228 = vrcp.f32 %v982_v5  ;;  %v1009_v16 = vand.u32 2147483648, %v982_v5  ;;  %vm1003_vm9 = vweird.f32 %v982_v5  ;;  %v1007_v19 = vand.u32 2147483647, %v982_v5 }
0x10cd   :  { %1230 = vpow2.f32 %v1102_v7 }
0x10ce   :  { %v1010_v20 = vor.u32 1.1754944e-38, %v1009_v16  ;;  %vm1008_vm1 = vcmp.eq.f32.partialorder %v1007_v19, 8.507059e+37 }
0x10d2   :  { %v1229_v10 = vpop.eup %1228 }
0x10d3   :  { %v999_v57 = vmul.f32 %v1229_v10, %v982_v5  ;;  %v1231_v13 = vpop.eup %1230  ;;  %vm1004_vm8 = vweird.f32 %v1229_v10 }
0x10d4   :  { %v981_v3 = vadd.f32 1.0, %v1231_v13  ;;  %vm1005_vm0 = vmor %vm1003_vm9, %vm1004_vm8  ;;  %vm667_vm9 = vcmask 123905  }
0x10d5   :  { %v1000_v11 = vsub.f32 1.0, %v999_v57  ;;  %vm1518_vm8 = vmand %vm933_vm14, %vm934_vm15  ;;  %v673_v57 = vld [vmem:[%s1657_s2 + $0x4] sm:$0x2] }
0x10d6   :  { %1232 = vrcp.f32 %v981_v3  ;;  %v994_v32 = vand.u32 2147483648, %v981_v3  ;;  %vm988_vm3 = vweird.f32 %v981_v3  ;;  %v992_v33 = vand.u32 2147483647, %v981_v3 }
0x10d7   :  { %v1001_v14 = vmul.f32 %v1229_v10, %v1000_v11 }
0x10d8   :  { %v995_v36 = vor.u32 1.1754944e-38, %v994_v32  ;;  %vm993_vm5 = vcmp.eq.f32.partialorder %v992_v33, 8.507059e+37 }
0x10d9   :  { %v1002_v15 = vadd.f32 %v1229_v10, %v1001_v14 }
0x10db   :  { %v1006_v53 = vsel %vm1005_vm0, %v1229_v10, %v1002_v15  ;;  %vm668_vm0 = vsmask.f32 7942  ;;  %v939_v15 = vld [vmem:[%s1657_s2 + $0x4] sm:$0x1] }
0x10dc   :  { %v1233_v23 = vpop.eup %1232  ;;  %v1470_v12 = vsel %vm1008_vm1, %v1010_v20, %v1006_v53  ;;  %vm267_vm1 = vsmask.f32 3328 }
0x10dd   :  { %v984_v25 = vmul.f32 %v1233_v23, %v981_v3  ;;  %vm989_vm2 = vweird.f32 %v1233_v23 }
0x10de   :  { %vm990_vm4 = vmor %vm988_vm3, %vm989_vm2 }
0x10df   :  { %v985_v26 = vsub.f32 1.0, %v984_v25  ;;  %vm669_vm2 = vmand %vm667_vm9, %vm668_vm0 }
0x10e0   :  { %vm1571_vm3 = vmand %vm132_vm6, %vm267_vm1  ;;  %vm534_vm6 = vsmask.f32 2304 }
0x10e1   :  { %v986_v29 = vmul.f32 %v1233_v23, %v985_v26  ;;  %vm535_vm7 = vmand %vm400_vm11, %vm534_vm6 }
0x10e3   :  { %v987_v31 = vadd.f32 %v1233_v23, %v986_v29 }
0x10e5   :  { %v991_v34 = vsel %vm990_vm4, %v1233_v23, %v987_v31  ;;  %vm801_vm4 = vsmask.f32 1280 }
0x10e6   :  { %v996_v37 = vsel %vm993_vm5, %v995_v36, %v991_v34  ;;  %vm1596_vm5 = vmand %vm667_vm9, %vm801_vm4 }
0x10e7   :  { %v1021_v51 = vmul.f32 %v1017_v49, %v996_v37 }
0x1122   :  { %v1028_v24 = vpop.permute.xlu2 %1027 }
0x1123   :  { %v1032_v6 = vmul.f32 %v1028_v24, %v1470_v12 }
0x1125   :  { %1037 = vrot.lane.b32.xlu1 %v1032_v6, %s1240_s15 }
0x112d   :  { %126 = vrot.lane.b32.xlu1 %v1279_v54, %s1242_s17  ;;  %v1018_v54 = vrot.slane %v1449_v35, 1 }
0x1135   :  { %396 = vrot.lane.b32.xlu1 %v1339_v1, %s1242_s17  ;;  %v1022_v1 = vmul.f32 %v1018_v54, %v1470_v12 }
0x1138   :  { %v1026_v21 = vpop.permute.xlu1 %1025 }
0x1139   :  { %v1031_v38 = vmul.f32 %v1026_v21, %v996_v37 }
0x113b   :  { %1035 = vrot.lane.b32.xlu0 %v1031_v38, %s1240_s15 }
0x113d   :  { %927 = vrot.lane.b32.xlu1 %v1455_v41, %s1242_s17 }
0x1145   :  { %263 = vrot.lane.b32.xlu1 %v1310_v61, %s1242_s17  ;;  %v135_v61 = vld [vmem:[%s1657_s2] sm:$0x8] }
0x114d   :  { %795 = vrot.lane.b32.xlu1 %v1424_v27, %s1242_s17 }
0x1197   :  { %v1038_v39 = vpop.permute.xlu1 %1037 }
0x1198   :  { %v1042_v42 = vadd.f32 %v1038_v39, %v1022_v1 }
0x119a   :  { %1234 = vtanh.f32 %v1042_v42 }
0x119f   :  { %v127_v41 = vpop.permute.xlu1 %126 }
0x11a0   :  { %v1235_v27 = vpop.eup %1234  ;;  %v136_v35 = vsel %vm1488_vm10, %v127_v41, %v135_v61 }
0x11a1   :  { %137 = vst [vmem:[%s1657_s2] sm:$0x8] %v136_v35  ;;  %1049 = vrot.lane.b32.xlu0 %v1235_v27, %s1241_s16 }
0x11a7   :  { %v397_v45 = vpop.permute.xlu1 %396 }
0x11a8   :  { %v407_v48 = vsel %vm1502_vm13, %v397_v45, %v406_v44 }
0x11a9   :  { %408 = vst [vmem:[%s1657_s2 + $0x4] sm:$0x4] %v407_v48  ;;  %394 = vrot.lane.b32.xlu0 %v1337_v0, %s1242_s17 }
0x11ad   :  { %v1036_v52 = vpop.permute.xlu0 %1035 }
0x11ae   :  { %v1041_v55 = vadd.f32 %v1036_v52, %v1021_v51 }
0x11af   :  { %v928_v59 = vpop.permute.xlu1 %927 }
0x11b0   :  { %1236 = vtanh.f32 %v1041_v55  ;;  %v937_v62 = vsel %vm1518_vm8, %v928_v59, %v936_v30  ;;  %v539_v32 = vld [vmem:[%s1657_s2 + $0x4] sm:$0x4] }
0x11b1   :  { %938 = vst [vmem:[%s1657_s2] sm:$0x1] %v937_v62  ;;  %663 = vrot.lane.b32.xlu0 %v1397_v18, %s1242_s17 }
0x11b6   :  { %v1237_v0 = vpop.eup %1236 }
0x11b7   :  { %1047 = vrot.lane.b32.xlu2 %v1237_v0, %s1241_s16  ;;  %v264_v56 = vpop.permute.xlu1 %263 }
0x11b8   :  { %v1067_v38 = vld [vmem:[%s1657_s2] sm:$0x1] }
0x11b9   :  { %261 = vrot.lane.b32.xlu0 %v1308_v60, %s1242_s17 }
0x11bf   :  { %128 = vrot.lane.b32.xlu2 %v1282_v58, %s1242_s17  ;;  %v796_v53 = vpop.permute.xlu1 %795 }
0x11c1   :  { %530 = vrot.lane.b32.xlu0 %v1368_v9, %s1242_s17 }
0x11c7   :  { %661 = vrot.lane.b32.xlu2 %v1395_v17, %s1242_s17  ;;  %v138_v17 = vld [vmem:[%s1657_s2 + $0x4] sm:$0x8] }
0x11cf   :  { %929 = vrot.lane.b32.xlu2 %v1453_v40, %s1242_s17 }
0x11d7   :  { %528 = vrot.lane.b32.xlu2 %v1366_v8, %s1242_s17 }
0x11df   :  { %797 = vrot.lane.b32.xlu2 %v1426_v28, %s1242_s17  ;;  %v403_v28 = vld [vmem:[%s1657_s2] sm:$0x4] }
0x1211   :  { %v1048_v18 = vpop.permute.xlu2 %1047 }
0x1212   :  { %v1053_v60 = vmul.f32 %v1048_v18, %v996_v37 }
0x1213   :  { %v1050_v46 = vpop.permute.xlu0 %1049 }
0x1214   :  { %v1055_v47 = vpack.c.bf16 %v1053_v60, %v1053_v60  ;;  %v1054_v58 = vmul.f32 %v1050_v46, %v1470_v12  ;;  %v269_v12 = vld [vmem:[%s1657_s2] sm:$0x8] }
0x1216   :  { %1059 = vrot.lane.b32.xlu0 %v1055_v47, %s1242_s17  ;;  %v1056_v9 = vpack.c.bf16 %v1054_v58, %v1054_v58 }
0x1218   :  { %1061 = vrot.lane.b32.xlu1 %v1056_v9, %s1242_s17 }
0x1219   :  { %v129_v40 = vpop.permute.xlu2 %128 }
0x121a   :  { %v139_v8 = vsel %vm1488_vm10, %v129_v40, %v138_v17  ;;  %vm1065_vm10 = vsmask.f32 256 }
0x121b   :  { %140 = vst [vmem:[%s1657_s2 + $0x4] sm:$0x8] %v139_v8  ;;  %v395_v63 = vpop.permute.xlu0 %394  ;;  %vm1066_vm11 = vmand %vm933_vm14, %vm1065_vm10 }
0x121c   :  { %v404_v2 = vsel %vm1502_vm13, %v395_v63, %v403_v28 }
0x121d   :  { %405 = vst [vmem:[%s1657_s2] sm:$0x4] %v404_v2 }
0x1221   :  { %v662_v7 = vpop.permute.xlu2 %661 }
0x1222   :  { %v671_v10 = vsel %vm669_vm2, %v662_v7, %v670_v4  ;;  %v272_v11 = vld [vmem:[%s1657_s2 + $0x4] sm:$0x8] }
0x1223   :  { %672 = vst [vmem:[%s1657_s2] sm:$0x2] %v671_v10  ;;  %v273_v13 = vsel %vm1571_vm3, %v264_v56, %v272_v11  ;;  %v664_v3 = vpop.permute.xlu0 %663 }
0x1224   :  { %274 = vst [vmem:[%s1657_s2 + $0x4] sm:$0x8] %v273_v13  ;;  %v674_v14 = vsel %vm669_vm2, %v664_v3, %v673_v57  ;;  %v536_v29 = vld [vmem:[%s1657_s2] sm:$0x4] }
0x1225   :  { %675 = vst [vmem:[%s1657_s2 + $0x4] sm:$0x2] %v674_v14 }
0x1229   :  { %v930_v19 = vpop.permute.xlu2 %929 }
0x122a   :  { %v940_v20 = vsel %vm1518_vm8, %v930_v19, %v939_v15  ;;  %v803_v23 = vld [vmem:[%s1657_s2] sm:$0x2] }
0x122b   :  { %941 = vst [vmem:[%s1657_s2 + $0x4] sm:$0x1] %v940_v20  ;;  %v804_v24 = vsel %vm1596_vm5, %v796_v53, %v803_v23  ;;  %v262_v6 = vpop.permute.xlu0 %261 }
0x122c   :  { %805 = vst [vmem:[%s1657_s2] sm:$0x2] %v804_v24  ;;  %v270_v25 = vsel %vm1571_vm3, %v262_v6, %v269_v12  ;;  %v806_v21 = vld [vmem:[%s1657_s2 + $0x4] sm:$0x2] }
0x122d   :  { %271 = vst [vmem:[%s1657_s2] sm:$0x8] %v270_v25 }
0x1231   :  { %v529_v26 = vpop.permute.xlu2 %528 }
0x1232   :  { %v537_v31 = vsel %vm535_vm7, %v529_v26, %v536_v29  ;;  %v1070_v39 = vld [vmem:[%s1657_s2 + $0x4] sm:$0x1] }
0x1233   :  { %538 = vst [vmem:[%s1657_s2] sm:$0x4] %v537_v31  ;;  %v531_v33 = vpop.permute.xlu0 %530 }
0x1234   :  { %v540_v34 = vsel %vm535_vm7, %v531_v33, %v539_v32 }
0x1235   :  { %541 = vst [vmem:[%s1657_s2 + $0x4] sm:$0x4] %v540_v34 }
0x1239   :  { %v798_v36 = vpop.permute.xlu2 %797 }
0x123a   :  { %v807_v37 = vsel %vm1596_vm5, %v798_v36, %v806_v21 }
0x123b   :  { %808 = vst [vmem:[%s1657_s2 + $0x4] sm:$0x2] %v807_v37 }
0x1288   :  { %v1060_v54 = vpop.permute.xlu0 %1059 }
0x1289   :  { %v1068_v1 = vsel %vm1066_vm11, %v1060_v54, %v1067_v38 }
0x128a   :  { %1069 = vst [vmem:[%s1657_s2] sm:$0x1] %v1068_v1  ;;  %v1062_v42 = vpop.permute.xlu1 %1061 }
0x128b   :  { %v1071_v22 = vsel %vm1066_vm11, %v1062_v42, %v1070_v39 }
0x128c   :  { %1072 = vst [vmem:[%s1657_s2 + $0x4] sm:$0x1] %v1071_v22 }

// kernel: ner_forward.18
= control target key start
LH: loop header
LB: loop body
LE: loop exit
PB: predicated region body
PF: predicated region fallthrough
CT: control target
= control target key end

     0   :  { %v1237_v1 = vmov 0   ;;  %s1239_s15 = smov 16   ;;  %s1240_s16 = smov 32   ;;  %vm147_vm8 = vcmask 1041409   ;;  %vm24_vm9 = vcmask 130048   ;;  %s1654_s1 = inlined_call_operand.vmem [shape: bf16[16,64], index: 1, kind: input, shape index: {}]   ;;  %s1655_s0 = inlined_call_operand.vmem [shape: bf16[2,8,64], index: 0, kind: input, shape index: {}]   ;;  %s1656_s2 = inlined_call_operand.vmem [shape: bf16[2,8,16], index: 2, kind: output, shape index: {}]  }
   0x1   :  { %v1103_v0 = vld [vmem:[%s1654_s1] sm:$0xff]  ;;  %s1238_s1 = smov 96   ;;  %s1241_s17 = smov 80  }
   0x2   :  { %35 = vmatpush.bf16.msra.mxu0 %v1103_v0  ;;  %162 = vmatpush.bf16.msra.mxu1 %v1103_v0  ;;  %v15_v2 = vld [vmem:[%s1655_s0 + $0x4] sm:$0x1]  ;;  %v14_v6 = vld [vmem:[%s1655_s0] sm:$0x1] }
   0x3   :  { %293 = vmatpush.bf16.msra.mxu2 %v1103_v0  ;;  %427 = vmatpush.bf16.msra.mxu3 %v1103_v0  ;;  %v17_v3 = vunpack.c.l.bf16 %v15_v2  ;;  %v16_v8 = vunpack.c.l.bf16 %v14_v6  ;;  %v141_v63 = vld [vmem:[%s1655_s0 + $0x4] sm:$0x1] }
   0x5   :  { %36 = vmatmul.bf16.vlgmr.msra.gmra.mxu0 %v1237_v1  ;;  %v143_v1 = vunpack.c.l.bf16 %v141_v63 }
   0x6   :  { %560 = vmatpush.bf16.msrb.mxu0 %v1103_v0  ;;  %694 = vmatpush.bf16.msrb.mxu1 %v1103_v0 }
   0x7   :  { %827 = vmatpush.bf16.msrb.mxu2 %v1103_v0  ;;  %961 = vmatpush.bf16.msrb.mxu3 %v1103_v0  ;;  %v140_v0 = vld [vmem:[%s1655_s0] sm:$0x1] }
   0x8   :  { %v142_v2 = vunpack.c.l.bf16 %v140_v0  ;;  %v272_v0 = vld [vmem:[%s1655_s0] sm:$0x2] }
  0x82   :  { %v37_v4 = vpop.f32.mrf.mxu0 }
  0x83   :  { %v42_v5 = vrot.slane %v37_v4, 1  ;;  %v45_v10 = vadd.f32 %v37_v4, %v16_v8 }
  0x85   :  { %v46_v7 = vadd.f32 %v42_v5, %v17_v3  ;;  %v1080_v14 = vmul.f32 -1.442695, %v45_v10 }
  0x87   :  { %1109 = vtanh.f32 %v46_v7  ;;  %v1081_v13 = vmul.f32 -1.442695, %v46_v7 }
  0x88   :  { %1111 = vtanh.f32 %v45_v10 }
  0x89   :  { %1113 = vpow2.f32 %v1081_v13 }
  0x8a   :  { %v39_v9 = vpop.f32.mrf.mxu0  ;;  %1115 = vpow2.f32 %v1080_v14 }
  0x8d   :  { %v1110_v11 = vpop.eup %1109 }
  0x8e   :  { %93 = vrot.lane.b32.xlu0 %v1110_v11, %s1238_s1  ;;  %v1112_v12 = vpop.eup %1111 }
  0x8f   :  { %v1114_v15 = vpop.eup %1113 }
  0x90   :  { %v54_v16 = vadd.f32 1.0, %v1114_v15  ;;  %v1116_v17 = vpop.eup %1115 }
  0x91   :  { %v53_v18 = vadd.f32 1.0, %v1116_v17 }
  0x92   :  { %1117 = vrcp.f32 %v54_v16  ;;  %v81_v27 = vand.u32 2147483648, %v54_v16  ;;  %vm75_vm1 = vweird.f32 %v54_v16  ;;  %v79_v28 = vand.u32 2147483647, %v54_v16 }
  0x93   :  { %1119 = vrcp.f32 %v53_v18  ;;  %v66_v36 = vand.u32 2147483648, %v53_v18  ;;  %vm60_vm5 = vweird.f32 %v53_v18  ;;  %v64_v37 = vand.u32 2147483647, %v53_v18 }
  0x94   :  { %v82_v31 = vor.u32 1.1754944e-38, %v81_v27  ;;  %vm80_vm3 = vcmp.eq.f32.partialorder %v79_v28, 8.507059e+37 }
  0x95   :  { %v67_v39 = vor.u32 1.1754944e-38, %v66_v36  ;;  %vm65_vm7 = vcmp.eq.f32.partialorder %v64_v37, 8.507059e+37 }
  0x96   :  { %91 = vrot.lane.b32.xlu0 %v1112_v12, %s1238_s1 }
  0x98   :  { %v1118_v19 = vpop.eup %1117 }
  0x99   :  { %v71_v20 = vmul.f32 %v1118_v19, %v54_v16  ;;  %v1120_v22 = vpop.eup %1119  ;;  %vm76_vm0 = vweird.f32 %v1118_v19 }
  0x9a   :  { %v56_v24 = vmul.f32 %v1120_v22, %v53_v18  ;;  %vm77_vm2 = vmor %vm75_vm1, %vm76_vm0  ;;  %vm61_vm4 = vweird.f32 %v1120_v22 }
  0x9b   :  { %v72_v21 = vsub.f32 1.0, %v71_v20  ;;  %vm62_vm6 = vmor %vm60_vm5, %vm61_vm4 }
  0x9c   :  { %v57_v26 = vsub.f32 1.0, %v56_v24 }
  0x9d   :  { %v73_v23 = vmul.f32 %v1118_v19, %v72_v21 }
  0x9e   :  { %v58_v30 = vmul.f32 %v1120_v22, %v57_v26 }
  0x9f   :  { %v74_v25 = vadd.f32 %v1118_v19, %v73_v23 }
  0xa0   :  { %v59_v35 = vadd.f32 %v1120_v22, %v58_v30 }
  0xa1   :  { %v78_v29 = vsel %vm77_vm2, %v1118_v19, %v74_v25 }
  0xa2   :  { %v83_v33 = vsel %vm80_vm3, %v82_v31, %v78_v29  ;;  %v63_v38 = vsel %vm62_vm6, %v1120_v22, %v59_v35 }
  0xa3   :  { %v68_v41 = vsel %vm65_vm7, %v67_v39, %v63_v38  ;;  %v88_v43 = vmul.f32 0.0, %v83_v33 }
  0xa4   :  { %v87_v46 = vmul.f32 0.0, %v68_v41 }
 0x100   :  { %v94_v32 = vpop.permute.xlu0 %93 }
 0x101   :  { %v98_v34 = vmul.f32 %v94_v32, %v83_v33 }
 0x103   :  { %103 = vrot.lane.b32.xlu1 %v98_v34, %s1239_s15 }
 0x108   :  { %v92_v40 = vpop.permute.xlu0 %91 }
 0x109   :  { %v97_v42 = vmul.f32 %v92_v40, %v68_v41 }
 0x10b   :  { %101 = vrot.lane.b32.xlu1 %v97_v42, %s1239_s15 }
 0x175   :  { %v104_v44 = vpop.permute.xlu1 %103 }
 0x176   :  { %v1270_v45 = vadd.f32 %v104_v44, %v88_v43 }
 0x178   :  { %1121 = vtanh.f32 %v1270_v45  ;;  %v217_v40 = vrot.slane %v1270_v45, 7 }
 0x17d   :  { %v102_v47 = vpop.permute.xlu1 %101 }
 0x17e   :  { %v1122_v48 = vpop.eup %1121  ;;  %v1273_v49 = vadd.f32 %v102_v47, %v87_v46 }
 0x17f   :  { %115 = vrot.lane.b32.xlu2 %v1122_v48, %s1240_s16 }
 0x180   :  { %1123 = vtanh.f32 %v1273_v49  ;;  %v216_v46 = vrot.slane %v1273_v49, 7 }
 0x186   :  { %v1124_v50 = vpop.eup %1123 }
 0x187   :  { %113 = vrot.lane.b32.xlu2 %v1124_v50, %s1240_s16 }
 0x1d9   :  { %v116_v51 = vpop.permute.xlu2 %115 }
 0x1da   :  { %v120_v52 = vmul.f32 %v116_v51, %v83_v33 }
 0x1dc   :  { %v1278_v53 = vpack.c.bf16 %v120_v52, %v120_v52 }
 0x1de   :  { %v145_v55 = vunpack.c.l.b16 %v1278_v53 }
 0x1e0   :  { %v146_v58 = vrot.slane %v145_v55, 7 }
 0x1e1   :  { %v114_v54 = vpop.permute.xlu2 %113 }
 0x1e2   :  { %v119_v56 = vmul.f32 %v114_v54, %v68_v41 }
 0x1e4   :  { %v1281_v57 = vpack.c.bf16 %v119_v56, %v119_v56 }
 0x1e6   :  { %v144_v59 = vunpack.c.l.b16 %v1281_v57 }
 0x1e8   :  { %v148_v60 = vsel %vm147_vm8, %v146_v58, %v144_v59 }
 0x1e9   :  { %v149_v61 = vpack.c.b16 %v148_v60, %v148_v60 }
 0x1eb   :  { %150 = vrot.lane.b32.xlu0 %v149_v61, %s1241_s17 }
 0x25d   :  { %v151_v62 = vpop.permute.xlu0 %150 }
 0x25e   :  { %1082 = vmatmul.msk.bf16.vlgmr.msra.gmra.mxu1 %vm24_vm9, %v151_v62 }
 0x2db   :  { %v164_v3 = vpop.f32.mrf.mxu1 }
 0x2dc   :  { %v169_v4 = vrot.slane %v164_v3, 7  ;;  %v173_v5 = vadd.f32 %v164_v3, %v143_v1  ;;  %v273_v1 = vld [vmem:[%s1655_s0 + $0x4] sm:$0x2] }
 0x2dd   :  { %v275_v3 = vunpack.c.l.bf16 %v273_v1 }
 0x2de   :  { %v172_v6 = vadd.f32 %v169_v4, %v142_v2  ;;  %1125 = vtanh.f32 %v173_v5  ;;  %v1084_v10 = vmul.f32 -1.442695, %v173_v5  ;;  %v274_v2 = vunpack.c.l.bf16 %v272_v0 }
 0x2e0   :  { %1127 = vtanh.f32 %v172_v6  ;;  %v1083_v15 = vmul.f32 -1.442695, %v172_v6 }
 0x2e1   :  { %1129 = vpow2.f32 %v1084_v10 }
 0x2e3   :  { %v166_v7 = vpop.f32.mrf.mxu1 }
 0x2e4   :  { %v1126_v8 = vpop.eup %1125 }
 0x2e5   :  { %226 = vrot.lane.b32.xlu2 %v1126_v8, %s1238_s1 }
 0x2e6   :  { %v1128_v9 = vpop.eup %1127 }
 0x2e7   :  { %224 = vrot.lane.b32.xlu1 %v1128_v9, %s1238_s1  ;;  %v1130_v11 = vpop.eup %1129 }
 0x2e8   :  { %v181_v12 = vadd.f32 1.0, %v1130_v11 }
 0x2ea   :  { %1131 = vrcp.f32 %v181_v12  ;;  %v208_v20 = vand.u32 2147483648, %v181_v12  ;;  %vm202_vm11 = vweird.f32 %v181_v12  ;;  %v206_v22 = vand.u32 2147483647, %v181_v12 }
 0x2eb   :  { %1133 = vpow2.f32 %v1083_v15 }
 0x2ec   :  { %v209_v24 = vor.u32 1.1754944e-38, %v208_v20  ;;  %vm207_vm13 = vcmp.eq.f32.partialorder %v206_v22, 8.507059e+37 }
 0x2f0   :  { %v1132_v13 = vpop.eup %1131 }
 0x2f1   :  { %v198_v14 = vmul.f32 %v1132_v13, %v181_v12  ;;  %v1134_v18 = vpop.eup %1133  ;;  %vm203_vm10 = vweird.f32 %v1132_v13 }
 0x2f2   :  { %v180_v21 = vadd.f32 1.0, %v1134_v18  ;;  %vm204_vm12 = vmor %vm202_vm11, %vm203_vm10 }
 0x2f3   :  { %v199_v16 = vsub.f32 1.0, %v198_v14 }
 0x2f4   :  { %1135 = vrcp.f32 %v180_v21  ;;  %v193_v33 = vand.u32 2147483648, %v180_v21  ;;  %vm187_vm15 = vweird.f32 %v180_v21  ;;  %v191_v34 = vand.u32 2147483647, %v180_v21 }
 0x2f5   :  { %v200_v17 = vmul.f32 %v1132_v13, %v199_v16 }
 0x2f6   :  { %v194_v36 = vor.u32 1.1754944e-38, %v193_v33  ;;  %vm192_vm1 = vcmp.eq.f32.partialorder %v191_v34, 8.507059e+37 }
 0x2f7   :  { %v201_v19 = vadd.f32 %v1132_v13, %v200_v17 }
 0x2f9   :  { %v205_v23 = vsel %vm204_vm12, %v1132_v13, %v201_v19 }
 0x2fa   :  { %v210_v26 = vsel %vm207_vm13, %v209_v24, %v205_v23  ;;  %v1136_v28 = vpop.eup %1135 }
 0x2fb   :  { %v183_v29 = vmul.f32 %v1136_v28, %v180_v21  ;;  %vm188_vm14 = vweird.f32 %v1136_v28  ;;  %v221_v41 = vmul.f32 %v217_v40, %v210_v26 }
 0x2fc   :  { %vm189_vm0 = vmor %vm187_vm15, %vm188_vm14 }
 0x2fd   :  { %v184_v30 = vsub.f32 1.0, %v183_v29 }
 0x2ff   :  { %v185_v31 = vmul.f32 %v1136_v28, %v184_v30 }
 0x301   :  { %v186_v32 = vadd.f32 %v1136_v28, %v185_v31 }
 0x303   :  { %v190_v35 = vsel %vm189_vm0, %v1136_v28, %v186_v32 }
 0x304   :  { %v195_v38 = vsel %vm192_vm1, %v194_v36, %v190_v35 }
 0x305   :  { %v220_v47 = vmul.f32 %v216_v46, %v195_v38 }
 0x33f   :  { %v227_v25 = vpop.permute.xlu2 %226 }
 0x340   :  { %v231_v27 = vmul.f32 %v227_v25, %v210_v26 }
 0x342   :  { %236 = vrot.lane.b32.xlu1 %v231_v27, %s1239_s15 }
 0x359   :  { %v225_v37 = vpop.permute.xlu1 %224 }
 0x35a   :  { %v230_v39 = vmul.f32 %v225_v37, %v195_v38 }
 0x35c   :  { %234 = vrot.lane.b32.xlu0 %v230_v39, %s1239_s15 }
 0x3b4   :  { %v237_v42 = vpop.permute.xlu1 %236 }
 0x3b5   :  { %v1298_v43 = vadd.f32 %v237_v42, %v221_v41 }
 0x3b7   :  { %1137 = vtanh.f32 %v1298_v43 }
 0x3bd   :  { %v1138_v44 = vpop.eup %1137 }
 0x3be   :  { %248 = vrot.lane.b32.xlu0 %v1138_v44, %s1240_s16  ;;  %v349_v44 = vrot.slane %v1298_v43, 7 }
 0x3ce   :  { %v235_v48 = vpop.permute.xlu0 %234 }
 0x3cf   :  { %v1303_v50 = vadd.f32 %v235_v48, %v220_v47 }
 0x3d1   :  { %1139 = vtanh.f32 %v1303_v50  ;;  %v348_v42 = vrot.slane %v1303_v50, 7 }
 0x3d7   :  { %v1140_v51 = vpop.eup %1139 }
 0x3d8   :  { %246 = vrot.lane.b32.xlu2 %v1140_v51, %s1240_s16 }
 0x430   :  { %v249_v45 = vpop.permute.xlu0 %248 }
 0x431   :  { %v253_v52 = vmul.f32 %v249_v45, %v210_v26 }
 0x432   :  { %v247_v54 = vpop.permute.xlu2 %246 }
 0x433   :  { %v252_v55 = vmul.f32 %v247_v54, %v195_v38  ;;  %v1307_v56 = vpack.c.bf16 %v253_v52, %v253_v52 }
 0x435   :  { %v1309_v58 = vpack.c.bf16 %v252_v55, %v252_v55  ;;  %v277_v49 = vunpack.c.l.b16 %v1307_v56 }
 0x437   :  { %v276_v59 = vunpack.c.l.b16 %v1309_v58 }
 0x439   :  { %v278_v60 = vrot.slane %v276_v59, 1 }
 0x43b   :  { %v279_v61 = vsel %vm147_vm8, %v277_v49, %v278_v60 }
 0x43c   :  { %v280_v62 = vpack.c.b16 %v279_v61, %v279_v61 }
 0x43e   :  { %281 = vrot.lane.b32.xlu1 %v280_v62, %s1241_s17 }
 0x4b0   :  { %v282_v63 = vpop.permute.xlu1 %281 }
 0x4b1   :  { %1085 = vmatmul.msk.bf16.vlgmr.msra.gmra.mxu2 %vm24_vm9, %v282_v63 }
 0x534   :  { %v295_v4 = vpop.f32.mrf.mxu2 }
 0x535   :  { %v300_v5 = vrot.slane %v295_v4, 6  ;;  %v301_v6 = vrot.slane %v295_v4, 7 }
 0x537   :  { %v304_v7 = vadd.f32 %v300_v5, %v274_v2  ;;  %v305_v8 = vadd.f32 %v301_v6, %v275_v3  ;;  %v405_v5 = vld [vmem:[%s1655_s0] sm:$0x2]  ;;  %v406_v6 = vld [vmem:[%s1655_s0 + $0x4] sm:$0x2] }
 0x539   :  { %1141 = vtanh.f32 %v304_v7  ;;  %v1086_v12 = vmul.f32 -1.442695, %v304_v7  ;;  %v1087_v16 = vmul.f32 -1.442695, %v305_v8  ;;  %v407_v7 = vunpack.c.l.bf16 %v405_v5 }
 0x53a   :  { %1143 = vtanh.f32 %v305_v8  ;;  %v408_v8 = vunpack.c.l.bf16 %v406_v6 }
 0x53b   :  { %1145 = vpow2.f32 %v1086_v12 }
 0x53c   :  { %v297_v9 = vpop.f32.mrf.mxu2 }
 0x53f   :  { %v1142_v10 = vpop.eup %1141 }
 0x540   :  { %v1144_v11 = vpop.eup %1143  ;;  %356 = vrot.lane.b32.xlu2 %v1142_v10, %s1238_s1 }
 0x541   :  { %358 = vrot.lane.b32.xlu0 %v1144_v11, %s1238_s1  ;;  %v1146_v13 = vpop.eup %1145 }
 0x542   :  { %v312_v14 = vadd.f32 1.0, %v1146_v13 }
 0x544   :  { %1147 = vrcp.f32 %v312_v14  ;;  %v325_v23 = vand.u32 2147483648, %v312_v14  ;;  %vm319_vm3 = vweird.f32 %v312_v14  ;;  %v323_v24 = vand.u32 2147483647, %v312_v14 }
 0x545   :  { %1149 = vpow2.f32 %v1087_v16 }
 0x546   :  { %v326_v26 = vor.u32 1.1754944e-38, %v325_v23  ;;  %vm324_vm5 = vcmp.eq.f32.partialorder %v323_v24, 8.507059e+37 }
 0x54a   :  { %v1148_v15 = vpop.eup %1147 }
 0x54b   :  { %v315_v17 = vmul.f32 %v1148_v15, %v312_v14  ;;  %v1150_v20 = vpop.eup %1149  ;;  %vm320_vm2 = vweird.f32 %v1148_v15 }
 0x54c   :  { %v313_v21 = vadd.f32 1.0, %v1150_v20  ;;  %vm321_vm4 = vmor %vm319_vm3, %vm320_vm2 }
 0x54d   :  { %v316_v18 = vsub.f32 1.0, %v315_v17 }
 0x54e   :  { %1151 = vrcp.f32 %v313_v21  ;;  %v340_v35 = vand.u32 2147483648, %v313_v21  ;;  %vm334_vm7 = vweird.f32 %v313_v21  ;;  %v338_v36 = vand.u32 2147483647, %v313_v21 }
 0x54f   :  { %v317_v19 = vmul.f32 %v1148_v15, %v316_v18 }
 0x550   :  { %v341_v38 = vor.u32 1.1754944e-38, %v340_v35  ;;  %vm339_vm11 = vcmp.eq.f32.partialorder %v338_v36, 8.507059e+37 }
 0x551   :  { %v318_v22 = vadd.f32 %v1148_v15, %v317_v19 }
 0x553   :  { %v322_v25 = vsel %vm321_vm4, %v1148_v15, %v318_v22 }
 0x554   :  { %v327_v28 = vsel %vm324_vm5, %v326_v26, %v322_v25  ;;  %v1152_v30 = vpop.eup %1151 }
 0x555   :  { %v330_v31 = vmul.f32 %v1152_v30, %v313_v21  ;;  %vm335_vm6 = vweird.f32 %v1152_v30  ;;  %v352_v46 = vmul.f32 %v348_v42, %v327_v28 }
 0x556   :  { %vm336_vm10 = vmor %vm334_vm7, %vm335_vm6 }
 0x557   :  { %v331_v32 = vsub.f32 1.0, %v330_v31 }
 0x559   :  { %v332_v33 = vmul.f32 %v1152_v30, %v331_v32 }
 0x55b   :  { %v333_v34 = vadd.f32 %v1152_v30, %v332_v33 }
 0x55d   :  { %v337_v37 = vsel %vm336_vm10, %v1152_v30, %v333_v34 }
 0x55e   :  { %v342_v40 = vsel %vm339_vm11, %v341_v38, %v337_v37 }
 0x55f   :  { %v353_v47 = vmul.f32 %v349_v44, %v342_v40 }
 0x59a   :  { %v357_v27 = vpop.permute.xlu2 %356 }
 0x59b   :  { %v362_v29 = vmul.f32 %v357_v27, %v327_v28 }
 0x59d   :  { %366 = vrot.lane.b32.xlu1 %v362_v29, %s1239_s15 }
 0x5b3   :  { %v359_v39 = vpop.permute.xlu0 %358 }
 0x5b4   :  { %v363_v41 = vmul.f32 %v359_v39, %v342_v40 }
 0x5b6   :  { %368 = vrot.lane.b32.xlu2 %v363_v41, %s1239_s15 }
 0x60f   :  { %v367_v48 = vpop.permute.xlu1 %366 }
 0x610   :  { %v369_v51 = vpop.permute.xlu2 %368  ;;  %v1328_v45 = vadd.f32 %v367_v48, %v352_v46 }
 0x611   :  { %v1330_v52 = vadd.f32 %v369_v51, %v353_v47 }
 0x612   :  { %1153 = vtanh.f32 %v1328_v45  ;;  %v482_v51 = vrot.slane %v1328_v45, 7 }
 0x613   :  { %1155 = vtanh.f32 %v1330_v52 }
 0x618   :  { %v1154_v54 = vpop.eup %1153 }
 0x619   :  { %v1156_v55 = vpop.eup %1155  ;;  %378 = vrot.lane.b32.xlu0 %v1154_v54, %s1240_s16 }
 0x61a   :  { %380 = vrot.lane.b32.xlu1 %v1156_v55, %s1240_s16 }
 0x68b   :  { %v379_v50 = vpop.permute.xlu0 %378 }
 0x68c   :  { %v381_v43 = vpop.permute.xlu1 %380  ;;  %v384_v59 = vmul.f32 %v379_v50, %v327_v28 }
 0x68d   :  { %v385_v49 = vmul.f32 %v381_v43, %v342_v40 }
 0x68e   :  { %v1336_v60 = vpack.c.bf16 %v384_v59, %v384_v59  ;;  %v483_v59 = vrot.slane %v1330_v52, 7 }
 0x68f   :  { %v1338_v61 = vpack.c.bf16 %v385_v49, %v385_v49 }
 0x690   :  { %v409_v62 = vunpack.c.l.b16 %v1336_v60 }
 0x691   :  { %v410_v63 = vunpack.c.l.b16 %v1338_v61 }
 0x692   :  { %v411_v0 = vrot.slane %v409_v62, 2 }
 0x693   :  { %v412_v1 = vrot.slane %v410_v63, 1 }
 0x695   :  { %v413_v2 = vsel %vm147_vm8, %v412_v1, %v411_v0 }
 0x696   :  { %v414_v3 = vpack.c.b16 %v413_v2, %v413_v2 }
 0x698   :  { %415 = vrot.lane.b32.xlu2 %v414_v3, %s1241_s17 }
 0x6f2   :  { %v416_v4 = vpop.permute.xlu2 %415 }
 0x6f3   :  { %1088 = vmatmul.msk.bf16.vlgmr.msra.gmra.mxu3 %vm24_vm9, %v416_v4 }
 0x776   :  { %v429_v9 = vpop.f32.mrf.mxu3 }
 0x777   :  { %v434_v10 = vrot.slane %v429_v9, 5  ;;  %v435_v11 = vrot.slane %v429_v9, 6 }
 0x779   :  { %v438_v12 = vadd.f32 %v434_v10, %v407_v7  ;;  %v439_v13 = vadd.f32 %v435_v11, %v408_v8 }
 0x77b   :  { %1157 = vtanh.f32 %v438_v12  ;;  %v1089_v17 = vmul.f32 -1.442695, %v438_v12  ;;  %v1090_v18 = vmul.f32 -1.442695, %v439_v13  ;;  %v538_v12 = vld [vmem:[%s1655_s0] sm:$0x4] }
 0x77c   :  { %1159 = vtanh.f32 %v439_v13  ;;  %v539_v13 = vld [vmem:[%s1655_s0 + $0x4] sm:$0x4] }
 0x77d   :  { %1161 = vpow2.f32 %v1089_v17 }
 0x77e   :  { %v431_v14 = vpop.f32.mrf.mxu3  ;;  %1163 = vpow2.f32 %v1090_v18 }
 0x77f   :  { %v540_v14 = vunpack.c.l.bf16 %v538_v12 }
 0x781   :  { %v1158_v15 = vpop.eup %1157 }
 0x782   :  { %v1160_v16 = vpop.eup %1159  ;;  %490 = vrot.lane.b32.xlu0 %v1158_v15, %s1238_s1  ;;  %v541_v15 = vunpack.c.l.bf16 %v539_v13 }
 0x783   :  { %492 = vrot.lane.b32.xlu1 %v1160_v16, %s1238_s1  ;;  %v1162_v19 = vpop.eup %1161 }
 0x784   :  { %v1164_v20 = vpop.eup %1163  ;;  %v446_v21 = vadd.f32 1.0, %v1162_v19 }
 0x785   :  { %v447_v22 = vadd.f32 1.0, %v1164_v20 }
 0x786   :  { %1165 = vrcp.f32 %v446_v21  ;;  %v459_v33 = vand.u32 2147483648, %v446_v21  ;;  %vm453_vm14 = vweird.f32 %v446_v21  ;;  %v457_v35 = vand.u32 2147483647, %v446_v21 }
 0x787   :  { %1167 = vrcp.f32 %v447_v22  ;;  %v474_v34 = vand.u32 2147483648, %v447_v22  ;;  %vm468_vm15 = vweird.f32 %v447_v22  ;;  %v472_v36 = vand.u32 2147483647, %v447_v22 }
 0x788   :  { %v460_v39 = vor.u32 1.1754944e-38, %v459_v33  ;;  %vm458_vm2 = vcmp.eq.f32.partialorder %v457_v35, 8.507059e+37 }
 0x789   :  { %v475_v40 = vor.u32 1.1754944e-38, %v474_v34  ;;  %vm473_vm3 = vcmp.eq.f32.partialorder %v472_v36, 8.507059e+37 }
 0x78c   :  { %v1166_v23 = vpop.eup %1165 }
 0x78d   :  { %v1168_v24 = vpop.eup %1167  ;;  %v449_v25 = vmul.f32 %v1166_v23, %v446_v21  ;;  %vm454_vm12 = vweird.f32 %v1166_v23 }
 0x78e   :  { %v464_v26 = vmul.f32 %v1168_v24, %v447_v22  ;;  %vm469_vm13 = vweird.f32 %v1168_v24  ;;  %vm455_vm0 = vmor %vm453_vm14, %vm454_vm12 }
 0x78f   :  { %v450_v27 = vsub.f32 1.0, %v449_v25  ;;  %vm470_vm1 = vmor %vm468_vm15, %vm469_vm13 }
 0x790   :  { %v465_v28 = vsub.f32 1.0, %v464_v26 }
 0x791   :  { %v451_v29 = vmul.f32 %v1166_v23, %v450_v27 }
 0x792   :  { %v466_v30 = vmul.f32 %v1168_v24, %v465_v28 }
 0x793   :  { %v452_v31 = vadd.f32 %v1166_v23, %v451_v29 }
 0x794   :  { %v467_v32 = vadd.f32 %v1168_v24, %v466_v30 }
 0x795   :  { %v456_v37 = vsel %vm455_vm0, %v1166_v23, %v452_v31 }
 0x796   :  { %v471_v38 = vsel %vm470_vm1, %v1168_v24, %v467_v32  ;;  %v461_v42 = vsel %vm458_vm2, %v460_v39, %v456_v37 }
 0x797   :  { %v476_v46 = vsel %vm473_vm3, %v475_v40, %v471_v38  ;;  %v486_v54 = vmul.f32 %v482_v51, %v461_v42 }
 0x798   :  { %v487_v49 = vmul.f32 %v483_v59, %v476_v46 }
 0x7f4   :  { %v491_v41 = vpop.permute.xlu0 %490 }
 0x7f5   :  { %v493_v44 = vpop.permute.xlu1 %492  ;;  %v496_v47 = vmul.f32 %v491_v41, %v461_v42 }
 0x7f6   :  { %v497_v48 = vmul.f32 %v493_v44, %v476_v46 }
 0x7f7   :  { %500 = vrot.lane.b32.xlu2 %v496_v47, %s1239_s15 }
 0x7f8   :  { %502 = vrot.lane.b32.xlu0 %v497_v48, %s1239_s15 }
 0x851   :  { %v501_v55 = vpop.permute.xlu2 %500 }
 0x852   :  { %v1356_v50 = vadd.f32 %v501_v55, %v486_v54 }
 0x854   :  { %1169 = vtanh.f32 %v1356_v50 }
 0x85a   :  { %v1170_v43 = vpop.eup %1169 }
 0x85b   :  { %512 = vrot.lane.b32.xlu1 %v1170_v43, %s1240_s16 }
 0x86a   :  { %v503_v62 = vpop.permute.xlu0 %502 }
 0x86b   :  { %v1361_v63 = vadd.f32 %v503_v62, %v487_v49 }
 0x86d   :  { %1171 = vtanh.f32 %v1361_v63 }
 0x873   :  { %v1172_v0 = vpop.eup %1171 }
 0x874   :  { %514 = vrot.lane.b32.xlu2 %v1172_v0, %s1240_s16  ;;  %v616_v0 = vrot.slane %v1361_v63, 7 }
 0x8cd   :  { %v513_v45 = vpop.permute.xlu1 %512 }
 0x8ce   :  { %v515_v1 = vpop.permute.xlu2 %514  ;;  %v518_v2 = vmul.f32 %v513_v45, %v461_v42 }
 0x8cf   :  { %v519_v3 = vmul.f32 %v515_v1, %v476_v46 }
 0x8d0   :  { %v1365_v4 = vpack.c.bf16 %v518_v2, %v518_v2 }
 0x8d1   :  { %v1367_v5 = vpack.c.bf16 %v519_v3, %v519_v3 }
 0x8d2   :  { %v542_v6 = vunpack.c.l.b16 %v1365_v4 }
 0x8d3   :  { %v543_v52 = vunpack.c.l.b16 %v1367_v5 }
 0x8d4   :  { %v544_v7 = vrot.slane %v542_v6, 3  ;;  %v615_v6 = vrot.slane %v1356_v50, 7 }
 0x8d5   :  { %v545_v8 = vrot.slane %v543_v52, 2 }
 0x8d7   :  { %v546_v9 = vsel %vm147_vm8, %v545_v8, %v544_v7 }
 0x8d8   :  { %v547_v10 = vpack.c.b16 %v546_v9, %v546_v9 }
 0x8da   :  { %548 = vrot.lane.b32.xlu0 %v547_v10, %s1241_s17 }
 0x94c   :  { %v549_v11 = vpop.permute.xlu0 %548 }
 0x94d   :  { %1091 = vmatmul.msk.bf16.vlgmr.msrb.gmra.mxu0 %vm24_vm9, %v549_v11 }
 0x9ca   :  { %v562_v16 = vpop.f32.mrf.mxu0 }
 0x9cb   :  { %v567_v17 = vrot.slane %v562_v16, 4  ;;  %v568_v18 = vrot.slane %v562_v16, 5 }
 0x9cd   :  { %v571_v19 = vadd.f32 %v567_v17, %v540_v14  ;;  %v572_v20 = vadd.f32 %v568_v18, %v541_v15 }
 0x9cf   :  { %1173 = vtanh.f32 %v571_v19  ;;  %v1093_v24 = vmul.f32 -1.442695, %v572_v20  ;;  %v1092_v28 = vmul.f32 -1.442695, %v571_v19 }
 0x9d0   :  { %1175 = vtanh.f32 %v572_v20 }
 0x9d1   :  { %1177 = vpow2.f32 %v1093_v24 }
 0x9d2   :  { %v564_v21 = vpop.f32.mrf.mxu0 }
 0x9d3   :  { %v672_v21 = vld [vmem:[%s1655_s0] sm:$0x4] }
 0x9d5   :  { %v1174_v22 = vpop.eup %1173 }
 0x9d6   :  { %v1176_v23 = vpop.eup %1175  ;;  %623 = vrot.lane.b32.xlu1 %v1174_v22, %s1238_s1  ;;  %v673_v22 = vld [vmem:[%s1655_s0 + $0x4] sm:$0x4] }
 0x9d7   :  { %625 = vrot.lane.b32.xlu2 %v1176_v23, %s1238_s1  ;;  %v1178_v25 = vpop.eup %1177  ;;  %v674_v23 = vunpack.c.l.bf16 %v672_v21  ;;  %v675_v24 = vunpack.c.l.bf16 %v673_v22 }
 0x9d8   :  { %v580_v26 = vadd.f32 1.0, %v1178_v25 }
 0x9da   :  { %1179 = vrcp.f32 %v580_v26  ;;  %v607_v35 = vand.u32 2147483648, %v580_v26  ;;  %vm601_vm5 = vweird.f32 %v580_v26  ;;  %v605_v36 = vand.u32 2147483647, %v580_v26 }
 0x9db   :  { %1181 = vpow2.f32 %v1092_v28 }
 0x9dc   :  { %v608_v38 = vor.u32 1.1754944e-38, %v607_v35  ;;  %vm606_vm7 = vcmp.eq.f32.partialorder %v605_v36, 8.507059e+37 }
 0x9e0   :  { %v1180_v27 = vpop.eup %1179 }
 0x9e1   :  { %v597_v29 = vmul.f32 %v1180_v27, %v580_v26  ;;  %v1182_v31 = vpop.eup %1181  ;;  %vm602_vm4 = vweird.f32 %v1180_v27 }
 0x9e2   :  { %v579_v33 = vadd.f32 1.0, %v1182_v31  ;;  %vm603_vm6 = vmor %vm601_vm5, %vm602_vm4 }
 0x9e3   :  { %v598_v30 = vsub.f32 1.0, %v597_v29 }
 0x9e4   :  { %1183 = vrcp.f32 %v579_v33  ;;  %v592_v51 = vand.u32 2147483648, %v579_v33  ;;  %vm586_vm11 = vweird.f32 %v579_v33  ;;  %v590_v54 = vand.u32 2147483647, %v579_v33 }
 0x9e5   :  { %v599_v32 = vmul.f32 %v1180_v27, %v598_v30 }
 0x9e6   :  { %v593_v43 = vor.u32 1.1754944e-38, %v592_v51  ;;  %vm591_vm13 = vcmp.eq.f32.partialorder %v590_v54, 8.507059e+37 }
 0x9e7   :  { %v600_v34 = vadd.f32 %v1180_v27, %v599_v32 }
 0x9e9   :  { %v604_v37 = vsel %vm603_vm6, %v1180_v27, %v600_v34 }
 0x9ea   :  { %v609_v40 = vsel %vm606_vm7, %v608_v38, %v604_v37  ;;  %v1184_v41 = vpop.eup %1183 }
 0x9eb   :  { %v582_v44 = vmul.f32 %v1184_v41, %v579_v33  ;;  %vm587_vm10 = vweird.f32 %v1184_v41  ;;  %v620_v45 = vmul.f32 %v616_v0, %v609_v40 }
 0x9ec   :  { %vm588_vm12 = vmor %vm586_vm11, %vm587_vm10 }
 0x9ed   :  { %v583_v46 = vsub.f32 1.0, %v582_v44 }
 0x9ef   :  { %v584_v47 = vmul.f32 %v1184_v41, %v583_v46 }
 0x9f1   :  { %v585_v48 = vadd.f32 %v1184_v41, %v584_v47 }
 0x9f3   :  { %v589_v55 = vsel %vm588_vm12, %v1184_v41, %v585_v48 }
 0x9f4   :  { %v594_v49 = vsel %vm591_vm13, %v593_v43, %v589_v55 }
 0x9f5   :  { %v619_v52 = vmul.f32 %v615_v6, %v594_v49 }
 0xa31   :  { %v626_v39 = vpop.permute.xlu2 %625 }
 0xa32   :  { %v630_v42 = vmul.f32 %v626_v39, %v609_v40 }
 0xa34   :  { %635 = vrot.lane.b32.xlu1 %v630_v42, %s1239_s15 }
 0xa48   :  { %v624_v59 = vpop.permute.xlu1 %623 }
 0xa49   :  { %v629_v62 = vmul.f32 %v624_v59, %v594_v49 }
 0xa4b   :  { %633 = vrot.lane.b32.xlu0 %v629_v62, %s1239_s15 }
 0xaa6   :  { %v636_v1 = vpop.permute.xlu1 %635 }
 0xaa7   :  { %v1385_v2 = vadd.f32 %v636_v1, %v620_v45 }
 0xaa9   :  { %1185 = vtanh.f32 %v1385_v2 }
 0xaaf   :  { %v1186_v3 = vpop.eup %1185 }
 0xab0   :  { %647 = vrot.lane.b32.xlu0 %v1186_v3, %s1240_s16 }
 0xabd   :  { %v634_v7 = vpop.permute.xlu0 %633 }
 0xabe   :  { %v1390_v8 = vadd.f32 %v634_v7, %v619_v52 }
 0xac0   :  { %1187 = vtanh.f32 %v1390_v8 }
 0xac6   :  { %v1188_v9 = vpop.eup %1187 }
 0xac7   :  { %645 = vrot.lane.b32.xlu2 %v1188_v9, %s1240_s16 }
 0xb21   :  { %v646_v63 = vpop.permute.xlu2 %645 }
 0xb22   :  { %v648_v10 = vpop.permute.xlu0 %647  ;;  %v651_v11 = vmul.f32 %v646_v63, %v594_v49 }
 0xb23   :  { %v652_v12 = vmul.f32 %v648_v10, %v609_v40  ;;  %v749_v10 = vrot.slane %v1390_v8, 7 }
 0xb24   :  { %v1394_v13 = vpack.c.bf16 %v651_v11, %v651_v11  ;;  %v750_v11 = vrot.slane %v1385_v2, 7 }
 0xb25   :  { %v1396_v14 = vpack.c.bf16 %v652_v12, %v652_v12 }
 0xb26   :  { %v676_v15 = vunpack.c.l.b16 %v1394_v13 }
 0xb27   :  { %v677_v50 = vunpack.c.l.b16 %v1396_v14 }
 0xb28   :  { %v678_v16 = vrot.slane %v676_v15, 4 }
 0xb29   :  { %v679_v17 = vrot.slane %v677_v50, 3 }
 0xb2b   :  { %v680_v18 = vsel %vm147_vm8, %v679_v17, %v678_v16 }
 0xb2c   :  { %v681_v19 = vpack.c.b16 %v680_v18, %v680_v18 }
 0xb2e   :  { %682 = vrot.lane.b32.xlu1 %v681_v19, %s1241_s17 }
 0xba0   :  { %v683_v20 = vpop.permute.xlu1 %682 }
 0xba1   :  { %1094 = vmatmul.msk.bf16.vlgmr.msrb.gmra.mxu1 %vm24_vm9, %v683_v20 }
 0xc1e   :  { %v696_v25 = vpop.f32.mrf.mxu1 }
 0xc1f   :  { %v701_v26 = vrot.slane %v696_v25, 3  ;;  %v702_v27 = vrot.slane %v696_v25, 4 }
 0xc21   :  { %v705_v28 = vadd.f32 %v701_v26, %v674_v23  ;;  %v706_v29 = vadd.f32 %v702_v27, %v675_v24 }
 0xc23   :  { %1189 = vtanh.f32 %v705_v28  ;;  %v1095_v33 = vmul.f32 -1.442695, %v705_v28  ;;  %v1096_v37 = vmul.f32 -1.442695, %v706_v29 }
 0xc24   :  { %1191 = vtanh.f32 %v706_v29 }
 0xc25   :  { %1193 = vpow2.f32 %v1095_v33  ;;  %v806_v33 = vld [vmem:[%s1655_s0 + $0x4] sm:$0x8] }
 0xc26   :  { %v698_v30 = vpop.f32.mrf.mxu1 }
 0xc29   :  { %v1190_v31 = vpop.eup %1189 }
 0xc2a   :  { %v1192_v32 = vpop.eup %1191  ;;  %757 = vrot.lane.b32.xlu2 %v1190_v31, %s1238_s1 }
 0xc2b   :  { %759 = vrot.lane.b32.xlu0 %v1192_v32, %s1238_s1  ;;  %v1194_v34 = vpop.eup %1193  ;;  %v805_v32 = vld [vmem:[%s1655_s0] sm:$0x8] }
 0xc2c   :  { %v713_v35 = vadd.f32 1.0, %v1194_v34  ;;  %v807_v34 = vunpack.c.l.bf16 %v805_v32 }
 0xc2e   :  { %1195 = vrcp.f32 %v713_v35  ;;  %v726_v46 = vand.u32 2147483648, %v713_v35  ;;  %vm720_vm15 = vweird.f32 %v713_v35  ;;  %v724_v47 = vand.u32 2147483647, %v713_v35 }
 0xc2f   :  { %1197 = vpow2.f32 %v1096_v37 }
 0xc30   :  { %v727_v51 = vor.u32 1.1754944e-38, %v726_v46  ;;  %vm725_vm1 = vcmp.eq.f32.partialorder %v724_v47, 8.507059e+37 }
 0xc34   :  { %v1196_v36 = vpop.eup %1195 }
 0xc35   :  { %v716_v38 = vmul.f32 %v1196_v36, %v713_v35  ;;  %v1198_v41 = vpop.eup %1197  ;;  %vm721_vm14 = vweird.f32 %v1196_v36  ;;  %v808_v35 = vunpack.c.l.bf16 %v806_v33 }
 0xc36   :  { %v714_v42 = vadd.f32 1.0, %v1198_v41  ;;  %vm722_vm0 = vmor %vm720_vm15, %vm721_vm14 }
 0xc37   :  { %v717_v39 = vsub.f32 1.0, %v716_v38 }
 0xc38   :  { %1199 = vrcp.f32 %v714_v42  ;;  %v741_v1 = vand.u32 2147483648, %v714_v42  ;;  %vm735_vm3 = vweird.f32 %v714_v42  ;;  %v739_v3 = vand.u32 2147483647, %v714_v42 }
 0xc39   :  { %v718_v40 = vmul.f32 %v1196_v36, %v717_v39 }
 0xc3a   :  { %v742_v52 = vor.u32 1.1754944e-38, %v741_v1  ;;  %vm740_vm5 = vcmp.eq.f32.partialorder %v739_v3, 8.507059e+37 }
 0xc3b   :  { %v719_v44 = vadd.f32 %v1196_v36, %v718_v40 }
 0xc3d   :  { %v723_v48 = vsel %vm722_vm0, %v1196_v36, %v719_v44 }
 0xc3e   :  { %v728_v55 = vsel %vm725_vm1, %v727_v51, %v723_v48  ;;  %v1200_v59 = vpop.eup %1199 }
 0xc3f   :  { %v731_v49 = vmul.f32 %v1200_v59, %v714_v42  ;;  %vm736_vm2 = vweird.f32 %v1200_v59  ;;  %v753_v12 = vmul.f32 %v749_v10, %v728_v55 }
 0xc40   :  { %vm737_vm4 = vmor %vm735_vm3, %vm736_vm2 }
 0xc41   :  { %v732_v62 = vsub.f32 1.0, %v731_v49 }
 0xc43   :  { %v733_v0 = vmul.f32 %v1200_v59, %v732_v62 }
 0xc45   :  { %v734_v45 = vadd.f32 %v1200_v59, %v733_v0 }
 0xc47   :  { %v738_v6 = vsel %vm737_vm4, %v1200_v59, %v734_v45 }
 0xc48   :  { %v743_v9 = vsel %vm740_vm5, %v742_v52, %v738_v6 }
 0xc49   :  { %v754_v15 = vmul.f32 %v750_v11, %v743_v9 }
 0xc84   :  { %v758_v54 = vpop.permute.xlu2 %757 }
 0xc85   :  { %v763_v43 = vmul.f32 %v758_v54, %v728_v55 }
 0xc87   :  { %767 = vrot.lane.b32.xlu1 %v763_v43, %s1239_s15 }
 0xc9d   :  { %v760_v7 = vpop.permute.xlu0 %759 }
 0xc9e   :  { %v764_v63 = vmul.f32 %v760_v7, %v743_v9 }
 0xca0   :  { %769 = vrot.lane.b32.xlu2 %v764_v63, %s1239_s15 }
 0xcf9   :  { %v768_v50 = vpop.permute.xlu1 %767 }
 0xcfa   :  { %v770_v16 = vpop.permute.xlu2 %769  ;;  %v1415_v17 = vadd.f32 %v768_v50, %v753_v12 }
 0xcfb   :  { %v1417_v18 = vadd.f32 %v770_v16, %v754_v15 }
 0xcfc   :  { %1201 = vtanh.f32 %v1415_v17 }
 0xcfd   :  { %1203 = vtanh.f32 %v1417_v18 }
 0xd02   :  { %v1202_v19 = vpop.eup %1201 }
 0xd03   :  { %v1204_v20 = vpop.eup %1203  ;;  %779 = vrot.lane.b32.xlu0 %v1202_v19, %s1240_s16 }
 0xd04   :  { %781 = vrot.lane.b32.xlu1 %v1204_v20, %s1240_s16 }
 0xd75   :  { %v780_v8 = vpop.permute.xlu0 %779 }
 0xd76   :  { %v782_v2 = vpop.permute.xlu1 %781  ;;  %v785_v21 = vmul.f32 %v780_v8, %v728_v55 }
 0xd77   :  { %v786_v22 = vmul.f32 %v782_v2, %v743_v9 }
 0xd78   :  { %v1423_v23 = vpack.c.bf16 %v785_v21, %v785_v21 }
 0xd79   :  { %v1425_v24 = vpack.c.bf16 %v786_v22, %v786_v22  ;;  %v882_v22 = vrot.slane %v1415_v17, 7 }
 0xd7a   :  { %v809_v25 = vunpack.c.l.b16 %v1423_v23 }
 0xd7b   :  { %v810_v26 = vunpack.c.l.b16 %v1425_v24 }
 0xd7c   :  { %v811_v27 = vrot.slane %v809_v25, 5 }
 0xd7d   :  { %v812_v28 = vrot.slane %v810_v26, 4 }
 0xd7f   :  { %v813_v29 = vsel %vm147_vm8, %v812_v28, %v811_v27 }
 0xd80   :  { %v814_v30 = vpack.c.b16 %v813_v29, %v813_v29  ;;  %v883_v29 = vrot.slane %v1417_v18, 7 }
 0xd82   :  { %815 = vrot.lane.b32.xlu2 %v814_v30, %s1241_s17 }
 0xddc   :  { %v816_v31 = vpop.permute.xlu2 %815 }
 0xddd   :  { %1097 = vmatmul.msk.bf16.vlgmr.msrb.gmra.mxu2 %vm24_vm9, %v816_v31 }
 0xe60   :  { %v829_v36 = vpop.f32.mrf.mxu2 }
 0xe61   :  { %v834_v37 = vrot.slane %v829_v36, 2  ;;  %v835_v38 = vrot.slane %v829_v36, 3 }
 0xe63   :  { %v838_v39 = vadd.f32 %v834_v37, %v807_v34  ;;  %v839_v40 = vadd.f32 %v835_v38, %v808_v35 }
 0xe65   :  { %1205 = vtanh.f32 %v838_v39  ;;  %v1098_v46 = vmul.f32 -1.442695, %v838_v39  ;;  %v1099_v47 = vmul.f32 -1.442695, %v839_v40 }
 0xe66   :  { %1207 = vtanh.f32 %v839_v40 }
 0xe67   :  { %1209 = vpow2.f32 %v1098_v46 }
 0xe68   :  { %v831_v41 = vpop.f32.mrf.mxu2  ;;  %1211 = vpow2.f32 %v1099_v47  ;;  %v939_v47 = vld [vmem:[%s1655_s0] sm:$0x8] }
 0xe6b   :  { %v1206_v42 = vpop.eup %1205 }
 0xe6c   :  { %v1208_v44 = vpop.eup %1207  ;;  %890 = vrot.lane.b32.xlu0 %v1206_v42, %s1238_s1 }
 0xe6d   :  { %892 = vrot.lane.b32.xlu1 %v1208_v44, %s1238_s1  ;;  %v1210_v48 = vpop.eup %1209 }
 0xe6e   :  { %v1212_v51 = vpop.eup %1211  ;;  %v846_v54 = vadd.f32 1.0, %v1210_v48  ;;  %v940_v48 = vld [vmem:[%s1655_s0 + $0x4] sm:$0x8] }
 0xe6f   :  { %v847_v55 = vadd.f32 1.0, %v1212_v51  ;;  %v941_v51 = vunpack.c.l.bf16 %v939_v47 }
 0xe70   :  { %1213 = vrcp.f32 %v846_v54  ;;  %v859_v7 = vand.u32 2147483648, %v846_v54  ;;  %vm853_vm10 = vweird.f32 %v846_v54  ;;  %v857_v63 = vand.u32 2147483647, %v846_v54 }
 0xe71   :  { %1215 = vrcp.f32 %v847_v55  ;;  %v874_v9 = vand.u32 2147483648, %v847_v55  ;;  %vm868_vm11 = vweird.f32 %v847_v55  ;;  %v872_v10 = vand.u32 2147483647, %v847_v55 }
 0xe72   :  { %v860_v15 = vor.u32 1.1754944e-38, %v859_v7  ;;  %vm858_vm14 = vcmp.eq.f32.partialorder %v857_v63, 8.507059e+37 }
 0xe73   :  { %v875_v50 = vor.u32 1.1754944e-38, %v874_v9  ;;  %vm873_vm15 = vcmp.eq.f32.partialorder %v872_v10, 8.507059e+37 }
 0xe76   :  { %v1214_v43 = vpop.eup %1213 }
 0xe77   :  { %v1216_v59 = vpop.eup %1215  ;;  %v849_v49 = vmul.f32 %v1214_v43, %v846_v54  ;;  %vm854_vm6 = vweird.f32 %v1214_v43  ;;  %v942_v54 = vunpack.c.l.bf16 %v940_v48 }
 0xe78   :  { %v864_v62 = vmul.f32 %v1216_v59, %v847_v55  ;;  %vm869_vm7 = vweird.f32 %v1216_v59  ;;  %vm855_vm12 = vmor %vm853_vm10, %vm854_vm6  ;;  %vm131_vm6 = vcmask 122880  }
 0xe79   :  { %v850_v0 = vsub.f32 1.0, %v849_v49  ;;  %vm870_vm13 = vmor %vm868_vm11, %vm869_vm7  ;;  %vm132_vm7 = vsmask.f32 256  ;;  %vm396_vm11 = vcmask 123905  }
 0xe7a   :  { %v865_v45 = vsub.f32 1.0, %v864_v62  ;;  %vm1487_vm10 = vmand %vm131_vm6, %vm132_vm7 }
 0xe7b   :  { %v851_v1 = vmul.f32 %v1214_v43, %v850_v0 }
 0xe7c   :  { %v866_v3 = vmul.f32 %v1216_v59, %v865_v45 }
 0xe7d   :  { %v852_v6 = vadd.f32 %v1214_v43, %v851_v1 }
 0xe7e   :  { %v867_v52 = vadd.f32 %v1216_v59, %v866_v3 }
 0xe7f   :  { %v856_v11 = vsel %vm855_vm12, %v1214_v43, %v852_v6  ;;  %vm397_vm12 = vsmask.f32 1280 }
 0xe80   :  { %v871_v12 = vsel %vm870_vm13, %v1216_v59, %v867_v52  ;;  %v861_v19 = vsel %vm858_vm14, %v860_v15, %v856_v11  ;;  %vm1501_vm13 = vmand %vm396_vm11, %vm397_vm12  ;;  %vm930_vm14 = vcmask 125955  }
 0xe81   :  { %v876_v8 = vsel %vm873_vm15, %v875_v50, %v871_v12  ;;  %v886_v25 = vmul.f32 %v882_v22, %v861_v19  ;;  %vm931_vm15 = vsmask.f32 3328 }
 0xe82   :  { %v887_v30 = vmul.f32 %v883_v29, %v876_v8 }
 0xede   :  { %v891_v16 = vpop.permute.xlu0 %890 }
 0xedf   :  { %v893_v20 = vpop.permute.xlu1 %892  ;;  %v896_v2 = vmul.f32 %v891_v16, %v861_v19 }
 0xee0   :  { %v897_v21 = vmul.f32 %v893_v20, %v876_v8 }
 0xee1   :  { %900 = vrot.lane.b32.xlu2 %v896_v2, %s1239_s15 }
 0xee2   :  { %902 = vrot.lane.b32.xlu0 %v897_v21, %s1239_s15 }
 0xf3b   :  { %v901_v26 = vpop.permute.xlu2 %900 }
 0xf3c   :  { %v1443_v27 = vadd.f32 %v901_v26, %v886_v25 }
 0xf3e   :  { %1217 = vtanh.f32 %v1443_v27  ;;  %v1016_v48 = vrot.slane %v1443_v27, 7 }
 0xf44   :  { %v1218_v28 = vpop.eup %1217 }
 0xf45   :  { %912 = vrot.lane.b32.xlu1 %v1218_v28, %s1240_s16 }
 0xf54   :  { %v903_v31 = vpop.permute.xlu0 %902 }
 0xf55   :  { %v1448_v32 = vadd.f32 %v903_v31, %v887_v30 }
 0xf57   :  { %1219 = vtanh.f32 %v1448_v32 }
 0xf5d   :  { %v1220_v33 = vpop.eup %1219 }
 0xf5e   :  { %914 = vrot.lane.b32.xlu2 %v1220_v33, %s1240_s16 }
 0xfb7   :  { %v913_v17 = vpop.permute.xlu1 %912 }
 0xfb8   :  { %v915_v34 = vpop.permute.xlu2 %914  ;;  %v918_v35 = vmul.f32 %v913_v17, %v861_v19 }
 0xfb9   :  { %v919_v36 = vmul.f32 %v915_v34, %v876_v8 }
 0xfba   :  { %v1452_v37 = vpack.c.bf16 %v918_v35, %v918_v35 }
 0xfbb   :  { %v1454_v38 = vpack.c.bf16 %v919_v36, %v919_v36 }
 0xfbc   :  { %v943_v39 = vunpack.c.l.b16 %v1452_v37 }
 0xfbd   :  { %v944_v18 = vunpack.c.l.b16 %v1454_v38 }
 0xfbe   :  { %v945_v40 = vrot.slane %v943_v39, 6 }
 0xfbf   :  { %v946_v41 = vrot.slane %v944_v18, 5 }
 0xfc1   :  { %v947_v42 = vsel %vm147_vm8, %v946_v41, %v945_v40 }
 0xfc2   :  { %v948_v44 = vpack.c.b16 %v947_v42, %v947_v42 }
 0xfc4   :  { %949 = vrot.lane.b32.xlu0 %v948_v44, %s1241_s17  ;;  %v402_v44 = vld [vmem:[%s1656_s2 + $0x4] sm:$0x2] }
0x1036   :  { %v950_v46 = vpop.permute.xlu0 %949 }
0x1037   :  { %1100 = vmatmul.msk.bf16.vlgmr.msrb.gmra.mxu3 %vm24_vm9, %v950_v46 }
0x10ba   :  { %v963_v55 = vpop.f32.mrf.mxu3 }
0x10bb   :  { %v968_v43 = vrot.slane %v963_v55, 1  ;;  %v969_v59 = vrot.slane %v963_v55, 2 }
0x10bd   :  { %v972_v49 = vadd.f32 %v968_v43, %v941_v51  ;;  %v973_v62 = vadd.f32 %v969_v59, %v942_v54  ;;  %v933_v54 = vld [vmem:[%s1656_s2] sm:$0x8] }
0x10bf   :  { %1221 = vtanh.f32 %v972_v49  ;;  %v1102_v3 = vmul.f32 -1.442695, %v973_v62  ;;  %v1101_v9 = vmul.f32 -1.442695, %v972_v49 }
0x10c0   :  { %1223 = vtanh.f32 %v973_v62 }
0x10c1   :  { %1225 = vpow2.f32 %v1102_v3  ;;  %v666_v3 = vld [vmem:[%s1656_s2] sm:$0x4] }
0x10c2   :  { %v965_v0 = vpop.f32.mrf.mxu3 }
0x10c5   :  { %v1222_v45 = vpop.eup %1221 }
0x10c6   :  { %v1224_v1 = vpop.eup %1223  ;;  %1024 = vrot.lane.b32.xlu1 %v1222_v45, %s1238_s1 }
0x10c7   :  { %1026 = vrot.lane.b32.xlu2 %v1224_v1, %s1238_s1  ;;  %v1226_v6 = vpop.eup %1225 }
0x10c8   :  { %v981_v52 = vadd.f32 1.0, %v1226_v6 }
0x10ca   :  { %1227 = vrcp.f32 %v981_v52  ;;  %v1008_v16 = vand.u32 2147483648, %v981_v52  ;;  %vm1002_vm9 = vweird.f32 %v981_v52  ;;  %v1006_v19 = vand.u32 2147483647, %v981_v52 }
0x10cb   :  { %1229 = vpow2.f32 %v1101_v9 }
0x10cc   :  { %v1009_v8 = vor.u32 1.1754944e-38, %v1008_v16  ;;  %vm1007_vm1 = vcmp.eq.f32.partialorder %v1006_v19, 8.507059e+37 }
0x10d0   :  { %v1228_v7 = vpop.eup %1227 }
0x10d1   :  { %v998_v63 = vmul.f32 %v1228_v7, %v981_v52  ;;  %v1230_v11 = vpop.eup %1229  ;;  %vm1003_vm8 = vweird.f32 %v1228_v7  ;;  %v669_v52 = vld [vmem:[%s1656_s2 + $0x4] sm:$0x4] }
0x10d2   :  { %v980_v15 = vadd.f32 1.0, %v1230_v11  ;;  %vm1004_vm0 = vmor %vm1002_vm9, %vm1003_vm8  ;;  %vm663_vm9 = vcmask 124930  }
0x10d3   :  { %v999_v10 = vsub.f32 1.0, %v998_v63  ;;  %vm1517_vm8 = vmand %vm930_vm14, %vm931_vm15 }
0x10d4   :  { %1231 = vrcp.f32 %v980_v15  ;;  %v993_v31 = vand.u32 2147483648, %v980_v15  ;;  %vm987_vm3 = vweird.f32 %v980_v15  ;;  %v991_v33 = vand.u32 2147483647, %v980_v15 }
0x10d5   :  { %v1000_v12 = vmul.f32 %v1228_v7, %v999_v10 }
0x10d6   :  { %v994_v34 = vor.u32 1.1754944e-38, %v993_v31  ;;  %vm992_vm5 = vcmp.eq.f32.partialorder %v991_v33, 8.507059e+37 }
0x10d7   :  { %v1001_v50 = vadd.f32 %v1228_v7, %v1000_v12 }
0x10d9   :  { %v1005_v20 = vsel %vm1004_vm0, %v1228_v7, %v1001_v50  ;;  %vm664_vm0 = vsmask.f32 2304  ;;  %v936_v50 = vld [vmem:[%s1656_s2 + $0x4] sm:$0x8] }
0x10da   :  { %v1469_v21 = vsel %vm1007_vm1, %v1009_v8, %v1005_v20  ;;  %v1232_v22 = vpop.eup %1231  ;;  %vm264_vm1 = vsmask.f32 7938 }
0x10db   :  { %v983_v26 = vmul.f32 %v1232_v22, %v980_v15  ;;  %vm988_vm2 = vweird.f32 %v1232_v22 }
0x10dc   :  { %vm989_vm4 = vmor %vm987_vm3, %vm988_vm2 }
0x10dd   :  { %v984_v28 = vsub.f32 1.0, %v983_v26  ;;  %vm665_vm2 = vmand %vm663_vm9, %vm664_vm0 }
0x10de   :  { %vm1573_vm3 = vmand %vm131_vm6, %vm264_vm1  ;;  %vm530_vm6 = vsmask.f32 7942 }
0x10df   :  { %v985_v29 = vmul.f32 %v1232_v22, %v984_v28  ;;  %vm531_vm7 = vmand %vm396_vm11, %vm530_vm6 }
0x10e1   :  { %v986_v30 = vadd.f32 %v1232_v22, %v985_v29 }
0x10e3   :  { %v990_v17 = vsel %vm989_vm4, %v1232_v22, %v986_v30  ;;  %vm797_vm4 = vsmask.f32 7946 }
0x10e4   :  { %v995_v36 = vsel %vm992_vm5, %v994_v34, %v990_v17  ;;  %vm1595_vm5 = vmand %vm663_vm9, %vm797_vm4 }
0x10e5   :  { %v1020_v55 = vmul.f32 %v1016_v48, %v995_v36 }
0x1121   :  { %v1027_v2 = vpop.permute.xlu2 %1026 }
0x1122   :  { %v1031_v25 = vmul.f32 %v1027_v2, %v1469_v21 }
0x1124   :  { %1036 = vrot.lane.b32.xlu1 %v1031_v25, %s1239_s15 }
0x112c   :  { %125 = vrot.lane.b32.xlu1 %v1281_v57, %s1241_s17  ;;  %v1017_v57 = vrot.slane %v1448_v32, 7 }
0x1134   :  { %392 = vrot.lane.b32.xlu1 %v1338_v61, %s1241_s17  ;;  %v1021_v61 = vmul.f32 %v1017_v57, %v1469_v21 }
0x1138   :  { %v1025_v35 = vpop.permute.xlu1 %1024 }
0x1139   :  { %v1030_v39 = vmul.f32 %v1025_v35, %v995_v36 }
0x113b   :  { %1034 = vrot.lane.b32.xlu0 %v1030_v39, %s1239_s15 }
0x113c   :  { %924 = vrot.lane.b32.xlu1 %v1452_v37, %s1241_s17 }
0x1144   :  { %260 = vrot.lane.b32.xlu1 %v1307_v56, %s1241_s17  ;;  %v134_v56 = vld [vmem:[%s1656_s2] sm:$0x1] }
0x114c   :  { %791 = vrot.lane.b32.xlu1 %v1423_v23, %s1241_s17 }
0x1196   :  { %v1037_v18 = vpop.permute.xlu1 %1036 }
0x1197   :  { %v1041_v40 = vadd.f32 %v1037_v18, %v1021_v61 }
0x1199   :  { %1233 = vtanh.f32 %v1041_v40 }
0x119e   :  { %v126_v37 = vpop.permute.xlu1 %125 }
0x119f   :  { %v1234_v23 = vpop.eup %1233  ;;  %v135_v32 = vsel %vm1487_vm10, %v126_v37, %v134_v56 }
0x11a0   :  { %136 = vst [vmem:[%s1656_s2] sm:$0x1] %v135_v32  ;;  %1048 = vrot.lane.b32.xlu0 %v1234_v23, %s1240_s16 }
0x11a6   :  { %v393_v46 = vpop.permute.xlu1 %392 }
0x11a7   :  { %v403_v47 = vsel %vm1501_vm13, %v393_v46, %v402_v44  ;;  %v266_v8 = vld [vmem:[%s1656_s2] sm:$0x1] }
0x11a8   :  { %404 = vst [vmem:[%s1656_s2 + $0x4] sm:$0x2] %v403_v47  ;;  %390 = vrot.lane.b32.xlu0 %v1336_v60, %s1241_s17 }
0x11ad   :  { %v1035_v43 = vpop.permute.xlu0 %1034 }
0x11ae   :  { %v925_v59 = vpop.permute.xlu1 %924  ;;  %v1040_v49 = vadd.f32 %v1035_v43, %v1020_v55 }
0x11af   :  { %v934_v60 = vsel %vm1517_vm8, %v925_v59, %v933_v54  ;;  %v535_v30 = vld [vmem:[%s1656_s2 + $0x4] sm:$0x2] }
0x11b0   :  { %935 = vst [vmem:[%s1656_s2] sm:$0x8] %v934_v60  ;;  %1235 = vtanh.f32 %v1040_v49  ;;  %659 = vrot.lane.b32.xlu0 %v1396_v14, %s1241_s17 }
0x11b6   :  { %v1236_v27 = vpop.eup %1235  ;;  %v261_v6 = vpop.permute.xlu1 %260 }
0x11b7   :  { %1046 = vrot.lane.b32.xlu2 %v1236_v27, %s1240_s16  ;;  %v1066_v39 = vld [vmem:[%s1656_s2] sm:$0x8] }
0x11b8   :  { %258 = vrot.lane.b32.xlu0 %v1309_v58, %s1241_s17 }
0x11be   :  { %v792_v20 = vpop.permute.xlu1 %791 }
0x11bf   :  { %127 = vrot.lane.b32.xlu2 %v1278_v53, %s1241_s17 }
0x11c0   :  { %526 = vrot.lane.b32.xlu0 %v1367_v5, %s1241_s17  ;;  %v137_v5 = vld [vmem:[%s1656_s2 + $0x4] sm:$0x1] }
0x11c7   :  { %657 = vrot.lane.b32.xlu2 %v1394_v13, %s1241_s17 }
0x11cf   :  { %926 = vrot.lane.b32.xlu2 %v1454_v38, %s1241_s17 }
0x11d7   :  { %524 = vrot.lane.b32.xlu2 %v1365_v4, %s1241_s17  ;;  %v399_v4 = vld [vmem:[%s1656_s2] sm:$0x2] }
0x11df   :  { %793 = vrot.lane.b32.xlu2 %v1425_v24, %s1241_s17 }
0x1211   :  { %v1047_v14 = vpop.permute.xlu2 %1046 }
0x1212   :  { %v1049_v58 = vpop.permute.xlu0 %1048  ;;  %v1052_v62 = vmul.f32 %v1047_v14, %v995_v36 }
0x1213   :  { %v1053_v53 = vmul.f32 %v1049_v58, %v1469_v21 }
0x1214   :  { %v1054_v0 = vpack.c.bf16 %v1052_v62, %v1052_v62 }
0x1215   :  { %v1055_v45 = vpack.c.bf16 %v1053_v53, %v1053_v53 }
0x1216   :  { %1058 = vrot.lane.b32.xlu0 %v1054_v0, %s1241_s17 }
0x1217   :  { %1060 = vrot.lane.b32.xlu1 %v1055_v45, %s1241_s17 }
0x1219   :  { %v128_v13 = vpop.permute.xlu2 %127 }
0x121a   :  { %v391_v24 = vpop.permute.xlu0 %390  ;;  %v138_v38 = vsel %vm1487_vm10, %v128_v13, %v137_v5  ;;  %vm1064_vm10 = vsmask.f32 7950 }
0x121b   :  { %v400_v1 = vsel %vm1501_vm13, %v391_v24, %v399_v4  ;;  %139 = vst [vmem:[%s1656_s2 + $0x4] sm:$0x1] %v138_v38  ;;  %vm1065_vm11 = vmand %vm930_vm14, %vm1064_vm10 }
0x121c   :  { %401 = vst [vmem:[%s1656_s2] sm:$0x2] %v400_v1 }
0x1221   :  { %v658_v9 = vpop.permute.xlu2 %657 }
0x1222   :  { %v660_v63 = vpop.permute.xlu0 %659  ;;  %v667_v10 = vsel %vm665_vm2, %v658_v9, %v666_v3  ;;  %v269_v11 = vld [vmem:[%s1656_s2 + $0x4] sm:$0x1] }
0x1223   :  { %v670_v12 = vsel %vm665_vm2, %v660_v63, %v669_v52  ;;  %668 = vst [vmem:[%s1656_s2] sm:$0x4] %v667_v10  ;;  %v270_v15 = vsel %vm1573_vm3, %v261_v6, %v269_v11  ;;  %v532_v28 = vld [vmem:[%s1656_s2] sm:$0x2] }
0x1224   :  { %671 = vst [vmem:[%s1656_s2 + $0x4] sm:$0x4] %v670_v12 }
0x1225   :  { %271 = vst [vmem:[%s1656_s2 + $0x4] sm:$0x1] %v270_v15 }
0x1229   :  { %v927_v19 = vpop.permute.xlu2 %926 }
0x122a   :  { %v259_v2 = vpop.permute.xlu0 %258  ;;  %v937_v21 = vsel %vm1517_vm8, %v927_v19, %v936_v50  ;;  %v799_v22 = vld [vmem:[%s1656_s2] sm:$0x4] }
0x122b   :  { %v267_v25 = vsel %vm1573_vm3, %v259_v2, %v266_v8  ;;  %938 = vst [vmem:[%s1656_s2 + $0x4] sm:$0x8] %v937_v21  ;;  %v800_v26 = vsel %vm1595_vm5, %v792_v20, %v799_v22  ;;  %v802_v34 = vld [vmem:[%s1656_s2 + $0x4] sm:$0x4] }
0x122c   :  { %268 = vst [vmem:[%s1656_s2] sm:$0x1] %v267_v25 }
0x122d   :  { %801 = vst [vmem:[%s1656_s2] sm:$0x4] %v800_v26 }
0x1231   :  { %v525_v29 = vpop.permute.xlu2 %524 }
0x1232   :  { %v527_v31 = vpop.permute.xlu0 %526  ;;  %v533_v33 = vsel %vm531_vm7, %v525_v29, %v532_v28  ;;  %v1069_v18 = vld [vmem:[%s1656_s2 + $0x4] sm:$0x8] }
0x1233   :  { %v536_v17 = vsel %vm531_vm7, %v527_v31, %v535_v30  ;;  %534 = vst [vmem:[%s1656_s2] sm:$0x2] %v533_v33 }
0x1234   :  { %537 = vst [vmem:[%s1656_s2 + $0x4] sm:$0x2] %v536_v17 }
0x1239   :  { %v794_v35 = vpop.permute.xlu2 %793 }
0x123a   :  { %v803_v36 = vsel %vm1595_vm5, %v794_v35, %v802_v34 }
0x123b   :  { %804 = vst [vmem:[%s1656_s2 + $0x4] sm:$0x4] %v803_v36 }
0x1288   :  { %v1059_v57 = vpop.permute.xlu0 %1058 }
0x1289   :  { %v1061_v61 = vpop.permute.xlu1 %1060  ;;  %v1067_v40 = vsel %vm1065_vm11, %v1059_v57, %v1066_v39 }
0x128a   :  { %v1070_v41 = vsel %vm1065_vm11, %v1061_v61, %v1069_v18  ;;  %1068 = vst [vmem:[%s1656_s2] sm:$0x8] %v1067_v40 }
0x128b   :  { %1071 = vst [vmem:[%s1656_s2 + $0x4] sm:$0x8] %v1070_v41 }

</bundles_post_ra>
